<compile_context>
chip_gen: v6e
topology: v6e:2x2x1
jax: 0.10.0
libtpu: 0.0.40
codegen_flags: <defaults>
</compile_context>

<pallas_src>
import math

import jax
import jax.numpy as jnp
import numpy as np
from jax.experimental import pallas as pl
from jax.experimental.pallas import tpu as pltpu

EPS = 1e-5  # nn.LayerNorm default


# --------------------------------------------------------------------------------------
# Fused forward kernel (one batch element per grid step)
# --------------------------------------------------------------------------------------
def _convformer_kernel(xn_ref, xr_ref, g_ref, bln_ref, m_ref, t_ref, dw_ref,
                       wqkv_ref, bqkv_ref, wo_ref, bo_ref, o_ref, qkv_ref):
    # xn_ref  : (1, C, S)  input, NCHW flattened to (C, H*W)        [lane-dense]
    # xr_ref  : (1, S, C)  same input bytes viewed as (H*W, C)      [module's raw-reshape view]
    # g_/bln_ : (1, S)     LayerNorm affine params tiled over H (gamma[s % W])
    # m_ref   : (S, S)     block-diagonal chunk-averaging matrix (LN mean over each W chunk)
    # t_ref   : (S, 9*S)   stacked 0/1 shift+boundary matrices for the 9 depthwise taps
    # dw_ref  : (C, 9)     depthwise per-channel tap weights
    # wqkv_ref: (3C, C)    in_proj_weight @ pointwise_weight (1x1 conv folded in)
    # bqkv_ref: (3C, 1)    in_proj_bias
    # wo_ref  : (C, C)     out_proj weight (transposed)
    # bo_ref  : (1, C)     out_proj bias
    # o_ref   : (1, S, C)  attention output + residual (raw (S, C) view of the NCHW result)
    # qkv_ref : VMEM scratch (3C, S)
    f32 = jnp.float32
    C = xn_ref.shape[1]
    S = xn_ref.shape[2]

    x = xn_ref[0]                                                      # (C, S)

    # ---- LayerNorm over each W-wide chunk of the lane axis (chunk means via MXU) ----
    mmat = m_ref[...]
    mu = jnp.dot(x, mmat, preferred_element_type=f32)                  # per-(c,h) mean, bcast
    xc = x - mu
    var = jnp.dot(xc * xc, mmat, preferred_element_type=f32)           # per-(c,h) variance
    x_ln = xc * jax.lax.rsqrt(var + EPS) * g_ref[...] + bln_ref[...]

    # ---- depthwise 3x3 'same' conv: one matmul against 9 stacked shift matrices ----
    shifted = jnp.dot(x_ln, t_ref[...], preferred_element_type=f32)    # (C, 9*S)
    acc = jnp.zeros((C, S), f32)
    for tap in range(9):                                               # static unroll
        acc = acc + shifted[:, tap * S:(tap + 1) * S] * dw_ref[:, tap:tap + 1]

    # ---- pointwise 1x1 conv folded into a single fused QKV projection --------------
    qkv_ref[...] = (jnp.dot(wqkv_ref[...], acc, preferred_element_type=f32)
                    + bqkv_ref[...])                                   # (3C, S)
    q = qkv_ref[0:C, :]                                                # (C, S)
    k = qkv_ref[C:2 * C, :]
    v = qkv_ref[2 * C:3 * C, :]

    # ---- single-head self-attention --------------------------------------------------
    # q must become tokens-major; do the (C,S)->(S,C) transpose on the MXU with an
    # identity matrix (the rhs-transposed matmul pattern is the natively supported one).
    rows = jax.lax.broadcasted_iota(jnp.int32, (S, S), 0)
    cols = jax.lax.broadcasted_iota(jnp.int32, (S, S), 1)
    eye = (rows == cols).astype(f32)
    q_t = jax.lax.dot_general(eye, q, (((1,), (1,)), ((), ())),
                              preferred_element_type=f32)              # (S, C) == q^T
    scores = jnp.dot(q_t, k, preferred_element_type=f32) * (1.0 / math.sqrt(C))
    scores = scores - jnp.max(scores, axis=-1, keepdims=True)
    p = jnp.exp(scores)
    p = p * pl.reciprocal(jnp.sum(p, axis=-1, keepdims=True), approx=True)
    ctx = jax.lax.dot_general(p, v, (((1,), (1,)), ((), ())),
                              preferred_element_type=f32)              # (S, C)
    attn = jnp.dot(ctx, wo_ref[...], preferred_element_type=f32) + bo_ref[...]

    # ---- residual add fused into the store (module does a RAW reshape, so the add is
    #      done in the (S, C) view; the wrapper reshape back to NCHW is a bitcast) ----
    o_ref[0] = attn + xr_ref[0]


# --------------------------------------------------------------------------------------
# Optional (dead) MLP branch: linear1 -> GELU -> linear2, in lane-dense (C, S) layout
# --------------------------------------------------------------------------------------
def _mlp_kernel(x_ref, w1_ref, b1_ref, w2_ref, b2_ref, o_ref):
    f32 = jnp.float32
    xc = x_ref[0]                                                      # (C, S)
    h = jnp.dot(w1_ref[...], xc, preferred_element_type=f32) + b1_ref[...]
    # TODO(synk): PyTorch nn.GELU() is erf-exact; tanh approximation used since erf
    # lowering in Pallas/Mosaic is not guaranteed (branch is dead w.r.t. `out`).
    h = 0.5 * h * (1.0 + jnp.tanh(0.7978845608028654 * (h + 0.044715 * h * h * h)))
    y = jnp.dot(w2_ref[...], h, preferred_element_type=f32) + b2_ref[...]
    o_ref[0] = xc + y                                                  # out + x1


# --------------------------------------------------------------------------------------
# Wrapper (module forward).  Returns `out` (what the PyTorch module returns); if
# compute_out_tensor=True also returns the module's internally-computed `out_tensor`.
# --------------------------------------------------------------------------------------
def convformer_forward(x, params, compute_out_tensor=False):
    B, C, H, W = x.shape
    S = H * W
    f32 = jnp.float32
    x = x.astype(f32)

    # ---- trace-time constants (depend only on the static spatial shape) -------------
    idx = np.arange(S)
    h_pos, w_pos = idx // W, idx % W
    cid = idx // W
    m_np = (cid[:, None] == cid[None, :]).astype(np.float32) / float(W)     # (S, S)
    t_np = np.zeros((9, S, S), np.float32)
    for tap in range(9):
        di, dj = tap // 3 - 1, tap % 3 - 1
        hs, ws = h_pos + di, w_pos + dj
        valid = (hs >= 0) & (hs < H) & (ws >= 0) & (ws < W)
        src = hs * W + ws
        t_np[tap, src[valid], idx[valid]] = 1.0
    t_all = jnp.asarray(t_np.transpose(1, 0, 2).reshape(S, 9 * S))           # (S, 9*S)
    m_mat = jnp.asarray(m_np)

    # ---- parameter prep (tiny, channel-sized) ---------------------------------------
    g_s = jnp.tile(params['ln_g'].astype(f32), H).reshape(1, S)
    b_s = jnp.tile(params['ln_b'].astype(f32), H).reshape(1, S)
    dw9 = params['dw_w'].astype(f32).reshape(C, 9)
    w_qkv = params['in_proj_w'].astype(f32) @ params['pw_w'].astype(f32)     # (3C, C)
    b_qkv = params['in_proj_b'].astype(f32).reshape(3 * C, 1)
    wo_t = params['out_proj_w'].astype(f32).T
    bo = params['out_proj_b'].astype(f32).reshape(1, C)

    x_nat = x.reshape(B, C, S)     # NCHW flattened (bitcast)
    x_raw = x.reshape(B, S, C)     # raw (B, S, C) view for the fused residual (bitcast)

    out_sc = pl.pallas_call(
        _convformer_kernel,
        out_shape=jax.ShapeDtypeStruct((B, S, C), f32),
        grid=(B,),
        in_specs=[
            pl.BlockSpec((1, C, S), lambda b: (b, 0, 0)),      # x, (C, S) view
            pl.BlockSpec((1, S, C), lambda b: (b, 0, 0)),      # x, raw (S, C) view
            pl.BlockSpec((1, S), lambda b: (0, 0)),            # LN gamma (tiled)
            pl.BlockSpec((1, S), lambda b: (0, 0)),            # LN beta  (tiled)
            pl.BlockSpec((S, S), lambda b: (0, 0)),            # LN chunk-mean matrix
            pl.BlockSpec((S, 9 * S), lambda b: (0, 0)),        # depthwise shift matrices
            pl.BlockSpec((C, 9), lambda b: (0, 0)),            # depthwise weights
            pl.BlockSpec((3 * C, C), lambda b: (0, 0)),        # fused pointwise+QKV weight
            pl.BlockSpec((3 * C, 1), lambda b: (0, 0)),        # QKV bias
            pl.BlockSpec((C, C), lambda b: (0, 0)),            # out_proj weight^T
            pl.BlockSpec((1, C), lambda b: (0, 0)),            # out_proj bias
        ],
        out_specs=pl.BlockSpec((1, S, C), lambda b: (b, 0, 0)),
        scratch_shapes=[pltpu.VMEM((3 * C, S), f32)],
        compiler_params=pltpu.CompilerParams(
            dimension_semantics=("parallel",),
            vmem_limit_bytes=32 * 1024 * 1024),
    )(x_nat, x_raw, g_s, b_s, m_mat, t_all, dw9, w_qkv, b_qkv, wo_t, bo)

    # Raw reshape, exactly as the PyTorch module's _undo_reshape_input (a bitcast here).
    out = out_sc.reshape(B, C, H, W)

    if not compute_out_tensor:
        return out

    # ---- optional dead branch (module returns `out` regardless) ----------------------
    out_cs = out.reshape(B, C, S)
    ot = pl.pallas_call(
        _mlp_kernel,
        out_shape=jax.ShapeDtypeStruct((B, C, S), f32),
        grid=(B,),
        in_specs=[pl.BlockSpec((1, C, S), lambda b: (b, 0, 0)),
                  pl.BlockSpec((C, C), lambda b: (0, 0)),
                  pl.BlockSpec((C, 1), lambda b: (0, 0)),
                  pl.BlockSpec((C, C), lambda b: (0, 0)),
                  pl.BlockSpec((C, 1), lambda b: (0, 0))],
        out_specs=pl.BlockSpec((1, C, S), lambda b: (b, 0, 0)),
        compiler_params=pltpu.CompilerParams(dimension_semantics=("parallel",)),
    )(out_cs,
      params['lin1_w'].astype(f32), params['lin1_b'].astype(f32).reshape(C, 1),
      params['lin2_w'].astype(f32), params['lin2_b'].astype(f32).reshape(C, 1))
    out_tensor = ot.reshape(B, C, H, W)
    return out, out_tensor


# --------------------------------------------------------------------------------------
# Pure-JAX references (correctness checks)
# --------------------------------------------------------------------------------------
def _reference_forward(x, params):
    B, C, H, W = x.shape
    mu = x.mean(-1, keepdims=True)
    var = ((x - mu) ** 2).mean(-1, keepdims=True)
    xn = (x - mu) / jnp.sqrt(var + EPS) * params['ln_g'] + params['ln_b']
    dw = jax.lax.conv_general_dilated(
        xn, params['dw_w'][:, None, :, :], (1, 1), ((1, 1), (1, 1)),
        feature_group_count=C, dimension_numbers=('NCHW', 'OIHW', 'NCHW'))
    pw = jax.lax.conv_general_dilated(
        dw, params['pw_w'][:, :, None, None], (1, 1), 'VALID',
        dimension_numbers=('NCHW', 'OIHW', 'NCHW'))
    seq = pw.transpose(0, 2, 3, 1).reshape(B, H * W, C)
    wq, wk, wv = jnp.split(params['in_proj_w'], 3, axis=0)
    bq, bk, bv = jnp.split(params['in_proj_b'], 3, axis=0)
    q = seq @ wq.T + bq
    k = seq @ wk.T + bk
    v = seq @ wv.T + bv
    s = jnp.einsum('bqc,bkc->bqk', q, k) / jnp.sqrt(jnp.float32(C))
    a = jax.nn.softmax(s, axis=-1)
    ctx = jnp.einsum('bqk,bkc->bqc', a, v)
    attn = ctx @ params['out_proj_w'].T + params['out_proj_b']
    return attn.reshape(B, C, H, W) + x


def _reference_out_tensor(out, params):
    tok = out.transpose(0, 2, 3, 1)
    h = tok @ params['lin1_w'].T + params['lin1_b']
    h = 0.5 * h * (1.0 + jnp.tanh(0.7978845608028654 * (h + 0.044715 * h * h * h)))
    y = h @ params['lin2_w'].T + params['lin2_b']
    return out + y.transpose(0, 3, 1, 2)


# --------------------------------------------------------------------------------------
if __name__ == "__main__":
    B, C, H, W = 2, 4, 16, 16          # filters = C = 4; LayerNorm input_shape = W = 16
    key = jax.random.PRNGKey(0)
    ks = jax.random.split(key, 12)

    def rnd(k, shape, scale=0.3):
        return scale * jax.random.normal(k, shape, dtype=jnp.float32)

    params = {
        'ln_g': 1.0 + rnd(ks[0], (W,), 0.1),          # LayerNorm affine weight
        'ln_b': rnd(ks[1], (W,), 0.1),                # LayerNorm affine bias
        'dw_w': rnd(ks[2], (C, 3, 3)),                # depthwise Conv2d weight (C,1,3,3) squeezed
        'pw_w': rnd(ks[3], (C, C)),                   # pointwise Conv2d weight (C,C,1,1) squeezed
        'in_proj_w': rnd(ks[4], (3 * C, C)),          # MHA in_proj_weight
        'in_proj_b': rnd(ks[5], (3 * C,)),            # MHA in_proj_bias
        'out_proj_w': rnd(ks[6], (C, C)),             # MHA out_proj weight
        'out_proj_b': rnd(ks[7], (C,)),               # MHA out_proj bias
        'lin1_w': rnd(ks[8], (C, C), (2.0 / C) ** 0.5),   # kaiming_normal-like
        'lin1_b': jnp.zeros((C,), jnp.float32),           # constant_(0)
        'lin2_w': rnd(ks[9], (C, C), (2.0 / C) ** 0.5),
        'lin2_b': jnp.zeros((C,), jnp.float32),
    }
    x = jax.random.normal(ks[10], (B, C, H, W), dtype=jnp.float32)

    fwd = jax.jit(convformer_forward, static_argnames=("compute_out_tensor",))

    # Default path: exactly what the PyTorch module returns (no dead MLP work).
    out = fwd(x, params)
    jax.block_until_ready(out)

    ref = _reference_forward(x, params)
    assert out.shape == (B, C, H, W) and out.dtype == jnp.float32
    # Tolerance loosened slightly from 1e-4 only because of the approximate EUP
    # reciprocal in the softmax; any semantic bug would produce O(0.1+) errors.
    np.testing.assert_allclose(np.asarray(out), np.asarray(ref), rtol=5e-3, atol=5e-3)

    # Optional path: also compute the module's (dead) out_tensor branch.
    out2, out_tensor = fwd(x, params, compute_out_tensor=True)
    jax.block_until_ready((out2, out_tensor))
    ref_ot = _reference_out_tensor(ref, params)
    np.testing.assert_allclose(np.asarray(out_tensor), np.asarray(ref_ot),
                               rtol=5e-3, atol=5e-3)

    print("KERNEL_OK")
</pallas_src>

<mosaic_0001>
module attributes {stable_mosaic.version = 11 : i64} {
  func.func @_convformer_kernel(%arg0: i32, %arg1: memref<1x4x256xf32, #tpu.memory_space<vmem>>, %arg2: memref<1x256x4xf32, #tpu.memory_space<vmem>>, %arg3: memref<1x256xf32, #tpu.memory_space<vmem>>, %arg4: memref<1x256xf32, #tpu.memory_space<vmem>>, %arg5: memref<256x256xf32, #tpu.memory_space<vmem>>, %arg6: memref<256x2304xf32, #tpu.memory_space<vmem>>, %arg7: memref<4x9xf32, #tpu.memory_space<vmem>>, %arg8: memref<12x4xf32, #tpu.memory_space<vmem>>, %arg9: memref<12x1xf32, #tpu.memory_space<vmem>>, %arg10: memref<4x4xf32, #tpu.memory_space<vmem>>, %arg11: memref<1x4xf32, #tpu.memory_space<vmem>>, %arg12: memref<1x256x4xf32, #tpu.memory_space<vmem>>, %arg13: memref<12x256xf32, #tpu.memory_space<vmem>>) attributes {dimension_semantics = [#tpu.dimension_semantics<parallel>], iteration_bounds = array<i64: 2>, scalar_prefetch = 0 : i64, scratch_operands = 1 : i64, tpu.core_type = #tpu.core_type<tc>, window_params = [{transform_indices = @transform_0, window_bounds = array<i64: 1, 4, 256>}, {transform_indices = @transform_1, window_bounds = array<i64: 1, 256, 4>}, {pipeline_mode = #tpu.pipeline_mode<synchronous>, transform_indices = @transform_2, window_bounds = array<i64: 1, 256>}, {pipeline_mode = #tpu.pipeline_mode<synchronous>, transform_indices = @transform_3, window_bounds = array<i64: 1, 256>}, {pipeline_mode = #tpu.pipeline_mode<synchronous>, transform_indices = @transform_4, window_bounds = array<i64: 256, 256>}, {pipeline_mode = #tpu.pipeline_mode<synchronous>, transform_indices = @transform_5, window_bounds = array<i64: 256, 2304>}, {pipeline_mode = #tpu.pipeline_mode<synchronous>, transform_indices = @transform_6, window_bounds = array<i64: 4, 9>}, {pipeline_mode = #tpu.pipeline_mode<synchronous>, transform_indices = @transform_7, window_bounds = array<i64: 12, 4>}, {pipeline_mode = #tpu.pipeline_mode<synchronous>, transform_indices = @transform_8, window_bounds = array<i64: 12, 1>}, {pipeline_mode = #tpu.pipeline_mode<synchronous>, transform_indices = @transform_9, window_bounds = array<i64: 4, 4>}, {pipeline_mode = #tpu.pipeline_mode<synchronous>, transform_indices = @transform_10, window_bounds = array<i64: 1, 4>}, {transform_indices = @transform_11, window_bounds = array<i64: 1, 256, 4>}]} {
    %c0 = arith.constant 0 : index
    %c0_0 = arith.constant 0 : index
    %c0_1 = arith.constant 0 : index
    %0 = vector.load %arg1[%c0, %c0_0, %c0_1] : memref<1x4x256xf32, #tpu.memory_space<vmem>>, vector<1x4x256xf32>
    %1 = vector.shape_cast %0 : vector<1x4x256xf32> to vector<4x256xf32>
    %c0_2 = arith.constant 0 : index
    %c0_3 = arith.constant 0 : index
    %2 = vector.load %arg5[%c0_2, %c0_3] : memref<256x256xf32, #tpu.memory_space<vmem>>, vector<256x256xf32>
    %cst = arith.constant dense<0.000000e+00> : vector<4x256xf32>
    %3 = tpu.matmul %1, %2, %cst {dimension_numbers = #tpu.dot_dimension_numbers<[1], [0], [0], [1], [0, 0, 1, 1], [], []>} : vector<4x256xf32>, vector<256x256xf32>, vector<4x256xf32> -> vector<4x256xf32>
    %4 = arith.subf %1, %3 : vector<4x256xf32>
    %5 = arith.mulf %4, %4 : vector<4x256xf32>
    %cst_4 = arith.constant dense<0.000000e+00> : vector<4x256xf32>
    %6 = tpu.matmul %5, %2, %cst_4 {dimension_numbers = #tpu.dot_dimension_numbers<[1], [0], [0], [1], [0, 0, 1, 1], [], []>} : vector<4x256xf32>, vector<256x256xf32>, vector<4x256xf32> -> vector<4x256xf32>
    %cst_5 = arith.constant 9.99999974E-6 : f32
    %7 = vector.broadcast %cst_5 : f32 to vector<4x256xf32>
    %8 = arith.addf %6, %7 : vector<4x256xf32>
    %9 = math.rsqrt %8 : vector<4x256xf32>
    %10 = arith.mulf %4, %9 : vector<4x256xf32>
    %c0_6 = arith.constant 0 : index
    %c0_7 = arith.constant 0 : index
    %11 = vector.load %arg3[%c0_6, %c0_7] : memref<1x256xf32, #tpu.memory_space<vmem>>, vector<1x256xf32>
    %12 = vector.broadcast %11 : vector<1x256xf32> to vector<4x256xf32>
    %13 = arith.mulf %10, %12 : vector<4x256xf32>
    %c0_8 = arith.constant 0 : index
    %c0_9 = arith.constant 0 : index
    %14 = vector.load %arg4[%c0_8, %c0_9] : memref<1x256xf32, #tpu.memory_space<vmem>>, vector<1x256xf32>
    %15 = vector.broadcast %14 : vector<1x256xf32> to vector<4x256xf32>
    %16 = arith.addf %13, %15 : vector<4x256xf32>
    %c0_10 = arith.constant 0 : index
    %c0_11 = arith.constant 0 : index
    %17 = vector.load %arg6[%c0_10, %c0_11] : memref<256x2304xf32, #tpu.memory_space<vmem>>, vector<256x2304xf32>
    %cst_12 = arith.constant dense<0.000000e+00> : vector<4x2304xf32>
    %18 = tpu.matmul %16, %17, %cst_12 {dimension_numbers = #tpu.dot_dimension_numbers<[1], [0], [0], [1], [0, 0, 1, 1], [], []>} : vector<4x256xf32>, vector<256x2304xf32>, vector<4x2304xf32> -> vector<4x2304xf32>
    %cst_13 = arith.constant 0.000000e+00 : f32
    %19 = vector.broadcast %cst_13 : f32 to vector<4x256xf32>
    %20 = vector.extract_strided_slice %18 {offsets = [0, 0], sizes = [4, 256], strides = [1, 1]} : vector<4x2304xf32> to vector<4x256xf32>
    %c0_14 = arith.constant 0 : index
    %c0_15 = arith.constant 0 : index
    %21 = vector.load %arg7[%c0_14, %c0_15] : memref<4x9xf32, #tpu.memory_space<vmem>>, vector<4x1xf32>
    %22 = vector.broadcast %21 : vector<4x1xf32> to vector<4x256xf32>
    %23 = arith.mulf %20, %22 : vector<4x256xf32>
    %24 = arith.addf %19, %23 : vector<4x256xf32>
    %25 = vector.extract_strided_slice %18 {offsets = [0, 256], sizes = [4, 256], strides = [1, 1]} : vector<4x2304xf32> to vector<4x256xf32>
    %c0_16 = arith.constant 0 : index
    %c1 = arith.constant 1 : index
    %26 = vector.load %arg7[%c0_16, %c1] : memref<4x9xf32, #tpu.memory_space<vmem>>, vector<4x1xf32>
    %27 = vector.broadcast %26 : vector<4x1xf32> to vector<4x256xf32>
    %28 = arith.mulf %25, %27 : vector<4x256xf32>
    %29 = arith.addf %24, %28 : vector<4x256xf32>
    %30 = vector.extract_strided_slice %18 {offsets = [0, 512], sizes = [4, 256], strides = [1, 1]} : vector<4x2304xf32> to vector<4x256xf32>
    %c0_17 = arith.constant 0 : index
    %c2 = arith.constant 2 : index
    %31 = vector.load %arg7[%c0_17, %c2] : memref<4x9xf32, #tpu.memory_space<vmem>>, vector<4x1xf32>
    %32 = vector.broadcast %31 : vector<4x1xf32> to vector<4x256xf32>
    %33 = arith.mulf %30, %32 : vector<4x256xf32>
    %34 = arith.addf %29, %33 : vector<4x256xf32>
    %35 = vector.extract_strided_slice %18 {offsets = [0, 768], sizes = [4, 256], strides = [1, 1]} : vector<4x2304xf32> to vector<4x256xf32>
    %c0_18 = arith.constant 0 : index
    %c3 = arith.constant 3 : index
    %36 = vector.load %arg7[%c0_18, %c3] : memref<4x9xf32, #tpu.memory_space<vmem>>, vector<4x1xf32>
    %37 = vector.broadcast %36 : vector<4x1xf32> to vector<4x256xf32>
    %38 = arith.mulf %35, %37 : vector<4x256xf32>
    %39 = arith.addf %34, %38 : vector<4x256xf32>
    %40 = vector.extract_strided_slice %18 {offsets = [0, 1024], sizes = [4, 256], strides = [1, 1]} : vector<4x2304xf32> to vector<4x256xf32>
    %c0_19 = arith.constant 0 : index
    %c4 = arith.constant 4 : index
    %41 = vector.load %arg7[%c0_19, %c4] : memref<4x9xf32, #tpu.memory_space<vmem>>, vector<4x1xf32>
    %42 = vector.broadcast %41 : vector<4x1xf32> to vector<4x256xf32>
    %43 = arith.mulf %40, %42 : vector<4x256xf32>
    %44 = arith.addf %39, %43 : vector<4x256xf32>
    %45 = vector.extract_strided_slice %18 {offsets = [0, 1280], sizes = [4, 256], strides = [1, 1]} : vector<4x2304xf32> to vector<4x256xf32>
    %c0_20 = arith.constant 0 : index
    %c5 = arith.constant 5 : index
    %46 = vector.load %arg7[%c0_20, %c5] : memref<4x9xf32, #tpu.memory_space<vmem>>, vector<4x1xf32>
    %47 = vector.broadcast %46 : vector<4x1xf32> to vector<4x256xf32>
    %48 = arith.mulf %45, %47 : vector<4x256xf32>
    %49 = arith.addf %44, %48 : vector<4x256xf32>
    %50 = vector.extract_strided_slice %18 {offsets = [0, 1536], sizes = [4, 256], strides = [1, 1]} : vector<4x2304xf32> to vector<4x256xf32>
    %c0_21 = arith.constant 0 : index
    %c6 = arith.constant 6 : index
    %51 = vector.load %arg7[%c0_21, %c6] : memref<4x9xf32, #tpu.memory_space<vmem>>, vector<4x1xf32>
    %52 = vector.broadcast %51 : vector<4x1xf32> to vector<4x256xf32>
    %53 = arith.mulf %50, %52 : vector<4x256xf32>
    %54 = arith.addf %49, %53 : vector<4x256xf32>
    %55 = vector.extract_strided_slice %18 {offsets = [0, 1792], sizes = [4, 256], strides = [1, 1]} : vector<4x2304xf32> to vector<4x256xf32>
    %c0_22 = arith.constant 0 : index
    %c7 = arith.constant 7 : index
    %56 = vector.load %arg7[%c0_22, %c7] : memref<4x9xf32, #tpu.memory_space<vmem>>, vector<4x1xf32>
    %57 = vector.broadcast %56 : vector<4x1xf32> to vector<4x256xf32>
    %58 = arith.mulf %55, %57 : vector<4x256xf32>
    %59 = arith.addf %54, %58 : vector<4x256xf32>
    %60 = vector.extract_strided_slice %18 {offsets = [0, 2048], sizes = [4, 256], strides = [1, 1]} : vector<4x2304xf32> to vector<4x256xf32>
    %c0_23 = arith.constant 0 : index
    %c8 = arith.constant 8 : index
    %61 = vector.load %arg7[%c0_23, %c8] : memref<4x9xf32, #tpu.memory_space<vmem>>, vector<4x1xf32>
    %62 = vector.broadcast %61 : vector<4x1xf32> to vector<4x256xf32>
    %63 = arith.mulf %60, %62 : vector<4x256xf32>
    %64 = arith.addf %59, %63 : vector<4x256xf32>
    %c0_24 = arith.constant 0 : index
    %c0_25 = arith.constant 0 : index
    %65 = vector.load %arg8[%c0_24, %c0_25] : memref<12x4xf32, #tpu.memory_space<vmem>>, vector<12x4xf32>
    %cst_26 = arith.constant dense<0.000000e+00> : vector<12x256xf32>
    %66 = tpu.matmul %65, %64, %cst_26 {dimension_numbers = #tpu.dot_dimension_numbers<[1], [0], [0], [1], [0, 0, 1, 1], [], []>} : vector<12x4xf32>, vector<4x256xf32>, vector<12x256xf32> -> vector<12x256xf32>
    %c0_27 = arith.constant 0 : index
    %c0_28 = arith.constant 0 : index
    %67 = vector.load %arg9[%c0_27, %c0_28] : memref<12x1xf32, #tpu.memory_space<vmem>>, vector<12x1xf32>
    %68 = vector.broadcast %67 : vector<12x1xf32> to vector<12x256xf32>
    %69 = arith.addf %66, %68 : vector<12x256xf32>
    %c0_29 = arith.constant 0 : index
    %c0_30 = arith.constant 0 : index
    %70 = vector.load %arg13[%c0_29, %c0_30] : memref<12x256xf32, #tpu.memory_space<vmem>>, vector<12x256xf32>
    tpu.vector_store %arg13[%c0_29, %c0_30], %69 {strides = array<i32>} : memref<12x256xf32, #tpu.memory_space<vmem>>, vector<12x256xf32>,
    %c0_31 = arith.constant 0 : index
    %c0_32 = arith.constant 0 : index
    %71 = vector.load %arg13[%c0_31, %c0_32] : memref<12x256xf32, #tpu.memory_space<vmem>>, vector<4x256xf32>
    %c4_33 = arith.constant 4 : index
    %c0_34 = arith.constant 0 : index
    %72 = vector.load %arg13[%c4_33, %c0_34] : memref<12x256xf32, #tpu.memory_space<vmem>>, vector<4x256xf32>
    %c8_35 = arith.constant 8 : index
    %c0_36 = arith.constant 0 : index
    %73 = vector.load %arg13[%c8_35, %c0_36] : memref<12x256xf32, #tpu.memory_space<vmem>>, vector<4x256xf32>
    %74 = tpu.iota {dimensions = array<i32: 0>} : vector<256x256xi32>
    %75 = tpu.iota {dimensions = array<i32: 1>} : vector<256x256xi32>
    %76 = arith.cmpi eq, %74, %75 : vector<256x256xi32>
    %77 = arith.extui %76 : vector<256x256xi1> to vector<256x256xi32>
    %78 = arith.sitofp %77 : vector<256x256xi32> to vector<256x256xf32>
    %cst_37 = arith.constant dense<0.000000e+00> : vector<256x4xf32>
    %79 = tpu.matmul %78, %71, %cst_37 {dimension_numbers = #tpu.dot_dimension_numbers<[1], [1], [0], [0], [0, 0, 1, 0], [], []>} : vector<256x256xf32>, vector<4x256xf32>, vector<256x4xf32> -> vector<256x4xf32>
    %cst_38 = arith.constant dense<0.000000e+00> : vector<256x256xf32>
    %80 = tpu.matmul %79, %72, %cst_38 {dimension_numbers = #tpu.dot_dimension_numbers<[1], [0], [0], [1], [0, 0, 1, 1], [], []>} : vector<256x4xf32>, vector<4x256xf32>, vector<256x256xf32> -> vector<256x256xf32>
    %cst_39 = arith.constant 5.000000e-01 : f32
    %81 = vector.broadcast %cst_39 : f32 to vector<256x256xf32>
    %82 = arith.mulf %80, %81 : vector<256x256xf32>
    %cst_40 = arith.constant dense<0xFF800000> : vector<256xf32>
    %83 = vector.multi_reduction <maximumf>, %82, %cst_40 [1] : vector<256x256xf32> to vector<256xf32>
    %84 = vector.shape_cast %83 : vector<256xf32> to vector<256x1xf32>
    %85 = vector.broadcast %84 : vector<256x1xf32> to vector<256x256xf32>
    %86 = arith.subf %82, %85 : vector<256x256xf32>
    %87 = math.exp %86 : vector<256x256xf32>
    %cst_41 = arith.constant dense<0.000000e+00> : vector<256xf32>
    %88 = vector.multi_reduction <add>, %87, %cst_41 [1] : vector<256x256xf32> to vector<256xf32>
    %89 = vector.shape_cast %88 : vector<256xf32> to vector<256x1xf32>
    %90 = tpu.reciprocal %89 {approx = true} : vector<256x1xf32> -> vector<256x1xf32>
    %91 = vector.broadcast %90 : vector<256x1xf32> to vector<256x256xf32>
    %92 = arith.mulf %87, %91 : vector<256x256xf32>
    %cst_42 = arith.constant dense<0.000000e+00> : vector<256x4xf32>
    %93 = tpu.matmul %92, %73, %cst_42 {dimension_numbers = #tpu.dot_dimension_numbers<[1], [1], [0], [0], [0, 0, 1, 0], [], []>} : vector<256x256xf32>, vector<4x256xf32>, vector<256x4xf32> -> vector<256x4xf32>
    %c0_43 = arith.constant 0 : index
    %c0_44 = arith.constant 0 : index
    %94 = vector.load %arg10[%c0_43, %c0_44] : memref<4x4xf32, #tpu.memory_space<vmem>>, vector<4x4xf32>
    %cst_45 = arith.constant dense<0.000000e+00> : vector<256x4xf32>
    %95 = tpu.matmul %93, %94, %cst_45 {dimension_numbers = #tpu.dot_dimension_numbers<[1], [0], [0], [1], [0, 0, 1, 1], [], []>} : vector<256x4xf32>, vector<4x4xf32>, vector<256x4xf32> -> vector<256x4xf32>
    %c0_46 = arith.constant 0 : index
    %c0_47 = arith.constant 0 : index
    %96 = vector.load %arg11[%c0_46, %c0_47] : memref<1x4xf32, #tpu.memory_space<vmem>>, vector<1x4xf32>
    %97 = vector.broadcast %96 : vector<1x4xf32> to vector<256x4xf32>
    %98 = arith.addf %95, %97 : vector<256x4xf32>
    %c0_48 = arith.constant 0 : index
    %c0_49 = arith.constant 0 : index
    %c0_50 = arith.constant 0 : index
    %99 = vector.load %arg2[%c0_48, %c0_49, %c0_50] : memref<1x256x4xf32, #tpu.memory_space<vmem>>, vector<1x256x4xf32>
    %100 = vector.shape_cast %99 : vector<1x256x4xf32> to vector<256x4xf32>
    %101 = arith.addf %98, %100 : vector<256x4xf32>
    %c0_51 = arith.constant 0 : index
    %c0_52 = arith.constant 0 : index
    %c0_53 = arith.constant 0 : index
    %102 = vector.load %arg12[%c0_51, %c0_52, %c0_53] : memref<1x256x4xf32, #tpu.memory_space<vmem>>, vector<1x256x4xf32>
    %103 = vector.shape_cast %102 : vector<1x256x4xf32> to vector<256x4xf32>
    %104 = vector.shape_cast %101 : vector<256x4xf32> to vector<1x256x4xf32>
    tpu.vector_store %arg12[%c0_51, %c0_52, %c0_53], %104 {strides = array<i32>} : memref<1x256x4xf32, #tpu.memory_space<vmem>>, vector<1x256x4xf32>,
    return
  }
  func.func @transform_0(%arg0: i32) -> (i32, i32, i32) {
    %c0_i32 = arith.constant 0 : i32
    %c0_i32_0 = arith.constant 0 : i32
    %c0_i32_1 = arith.constant 0 : i32
    return %arg0, %c0_i32, %c0_i32_0 : i32, i32, i32
  }
  func.func @transform_1(%arg0: i32) -> (i32, i32, i32) {
    %c0_i32 = arith.constant 0 : i32
    %c0_i32_0 = arith.constant 0 : i32
    %c0_i32_1 = arith.constant 0 : i32
    return %arg0, %c0_i32, %c0_i32_0 : i32, i32, i32
  }
  func.func @transform_2(%arg0: i32) -> (i32, i32) {
    %c0_i32 = arith.constant 0 : i32
    %c0_i32_0 = arith.constant 0 : i32
    %c0_i32_1 = arith.constant 0 : i32
    return %c0_i32, %c0_i32_0 : i32, i32
  }
  func.func @transform_3(%arg0: i32) -> (i32, i32) {
    %c0_i32 = arith.constant 0 : i32
    %c0_i32_0 = arith.constant 0 : i32
    %c0_i32_1 = arith.constant 0 : i32
    return %c0_i32, %c0_i32_0 : i32, i32
  }
  func.func @transform_4(%arg0: i32) -> (i32, i32) {
    %c0_i32 = arith.constant 0 : i32
    %c0_i32_0 = arith.constant 0 : i32
    %c0_i32_1 = arith.constant 0 : i32
    return %c0_i32, %c0_i32_0 : i32, i32
  }
  func.func @transform_5(%arg0: i32) -> (i32, i32) {
    %c0_i32 = arith.constant 0 : i32
    %c0_i32_0 = arith.constant 0 : i32
    %c0_i32_1 = arith.constant 0 : i32
    return %c0_i32, %c0_i32_0 : i32, i32
  }
  func.func @transform_6(%arg0: i32) -> (i32, i32) {
    %c0_i32 = arith.constant 0 : i32
    %c0_i32_0 = arith.constant 0 : i32
    %c0_i32_1 = arith.constant 0 : i32
    return %c0_i32, %c0_i32_0 : i32, i32
  }
  func.func @transform_7(%arg0: i32) -> (i32, i32) {
    %c0_i32 = arith.constant 0 : i32
    %c0_i32_0 = arith.constant 0 : i32
    %c0_i32_1 = arith.constant 0 : i32
    return %c0_i32, %c0_i32_0 : i32, i32
  }
  func.func @transform_8(%arg0: i32) -> (i32, i32) {
    %c0_i32 = arith.constant 0 : i32
    %c0_i32_0 = arith.constant 0 : i32
    %c0_i32_1 = arith.constant 0 : i32
    return %c0_i32, %c0_i32_0 : i32, i32
  }
  func.func @transform_9(%arg0: i32) -> (i32, i32) {
    %c0_i32 = arith.constant 0 : i32
    %c0_i32_0 = arith.constant 0 : i32
    %c0_i32_1 = arith.constant 0 : i32
    return %c0_i32, %c0_i32_0 : i32, i32
  }
  func.func @transform_10(%arg0: i32) -> (i32, i32) {
    %c0_i32 = arith.constant 0 : i32
    %c0_i32_0 = arith.constant 0 : i32
    %c0_i32_1 = arith.constant 0 : i32
    return %c0_i32, %c0_i32_0 : i32, i32
  }
  func.func @transform_11(%arg0: i32) -> (i32, i32, i32) {
    %c0_i32 = arith.constant 0 : i32
    %c0_i32_0 = arith.constant 0 : i32
    %c0_i32_1 = arith.constant 0 : i32
    return %arg0, %c0_i32, %c0_i32_0 : i32, i32, i32
  }
}

</mosaic_0001>

<bundles_post_ra>
// kernel: tile.18
= control target key start
LH: loop header
LB: loop body
LE: loop exit
PB: predicated region body
PF: predicated region fallthrough
CT: control target
= control target key end

     0   :  { %2 = vsyncpa [#allocation1], 0  ;;  %s45_s6 = smov [#allocation0]   ;;  %s65_s0 = inlined_call_operand.hbm [shape: f32[16], index: 0, kind: input, shape index: {}]   ;;  %s66_s1 = inlined_call_operand.vmem [shape: f32[16,16], index: 1, kind: output, shape index: {}]  }
   0x1   :  { %s9_s7 = sshll.u32 %s45_s6, 4  ;;  %s10_s7 = int_to_ptr.vmem [resolvable:$true] %s9_s7 }
   0x2   :  { %s31_s8 = scalar_lea.vmem %s10_s7, 16  ;;  %s35_s9 = scalar_lea.vmem %s10_s7, 32 }
   0x3   :  { %p32_p0 = scmp.ne.s32.totalorder %s10_s7, %s31_s8  ;;  %p36_p1 = scmp.lt.s32.totalorder %s10_s7, %s10_s7 }
   0x4   :  { %p37_p2 = scmp.lt.s32.totalorder %s35_s9, %s31_s8 }
   0x6   :  { %p38_p3 = por %p37_p2, %p36_p1 }
   0x8   :  { %p39_p4 = pnand %p38_p3, %p32_p0 }
   0xa   :  { %42 = shalt.err (!%p39_p4)
}
   0xb   :  { %12 = dma.hbm_to_vmem [thread:$0]  %s65_s0, 16, %s10_s7, [#allocation1]  }
   0xc   :  { %43 = dma.done.wait [#allocation1], 16  }
   0xd   :  { %44 = vsyncadd [#allocation1], 4294967280  ;;  %v16_v0 = vld [vmem:[#allocation0] ss:$0 sm:$0xff] }
   0xe   :  { %17 = vst [vmem:[%s66_s1] sm:$0xff] %v16_v0  ;;  %21 = vst [vmem:[%s66_s1 + $0x8] sm:$0xff] %v16_v0 }
   0xf   :  { %20 = vsyncpa [#allocation1], 1 }

// kernel: tile.19
= control target key start
LH: loop header
LB: loop body
LE: loop exit
PB: predicated region body
PF: predicated region fallthrough
CT: control target
= control target key end

     0   :  { %s7_s6 = smov 3  ;;  %s21_s9 = smov 3  ;;  %vm4_vm0 = vcmask 130048   ;;  %vm11_vm1 = vcmask 1048448   ;;  %vm18_vm2 = vcmask 917248   ;;  %vm25_vm3 = vcmask 786048   ;;  %s131_s0 = inlined_call_operand.vmem [shape: f32[16,16], index: 0, kind: input, shape index: {}]   ;;  %s132_s1 = inlined_call_operand.vmem [shape: f32[1,256], index: 1, kind: output, shape index: {}]  }
   0x1   :  { %v69_v0 = vld [vmem:[%s131_s0 + $0x7] ss:$8 sm:%s7_s6]   ;;  %s84_s10 = smov 112   ;;  %v71_v1 = vld [vmem:[%s131_s0 + $0x5] ss:$8 sm:%s21_s9]   ;;  %s14_s13 = smov 3 }
   0x2   :  { %9 = vrot.lane.b32.xlu0 %v69_v0, %s84_s10  ;;  %s85_s14 = smov 80   ;;  %v70_v2 = vld [vmem:[%s131_s0 + $0x6] ss:$8 sm:%s14_s13]   ;;  %s28_s17 = smov 3  ;;  %vm32_vm4 = vcmask 654848   ;;  %vm39_vm5 = vcmask 523648  }
   0x3   :  { %23 = vrot.lane.b32.xlu1 %v71_v1, %s85_s14  ;;  %v72_v3 = vld [vmem:[%s131_s0 + $0x4] ss:$8 sm:%s28_s17]   ;;  %s35_s20 = smov 3  ;;  %s42_s21 = smov 3  ;;  %vm46_vm6 = vcmask 392448   ;;  %vm53_vm7 = vcmask 261248  }
   0x4   :  { %s86_s22 = smov 96   ;;  %s87_s23 = smov 64   ;;  %v73_v4 = vld [vmem:[%s131_s0 + $0x3] ss:$8 sm:%s35_s20]   ;;  %v74_v5 = vld [vmem:[%s131_s0 + $0x2] ss:$8 sm:%s42_s21]  }
   0x5   :  { %s2_s26 = smov 3  ;;  %s49_s29 = smov 3 }
   0x6   :  { %16 = vrot.lane.b32.xlu0 %v70_v2, %s86_s22  ;;  %v3_v6 = vld [vmem:[%s131_s0] ss:$8 sm:%s2_s26]   ;;  %s88_s3 = smov 48   ;;  %s89_s4 = smov 32  }
   0x7   :  { %30 = vrot.lane.b32.xlu1 %v72_v3, %s87_s23  ;;  %5 = vst.msk [vmem:[#allocation0] ss:$8 sm:$0x3] %vm4_vm0, %v3_v6   ;;  %v75_v7 = vld [vmem:[%s131_s0 + $0x1] ss:$8 sm:%s49_s29]   ;;  %s90_s0 = smov 16  }
   0xa   :  { %37 = vrot.lane.b32.xlu0 %v73_v4, %s88_s3 }
   0xb   :  { %44 = vrot.lane.b32.xlu1 %v74_v5, %s89_s4 }
   0xe   :  { %51 = vrot.lane.b32.xlu0 %v75_v7, %s90_s0 }
  0x74   :  { %v10_v8 = vpop.permute.xlu0 %9  }
  0x75   :  { %12 = vst.msk [vmem:[#allocation0] ss:$8 sm:$0x3] %vm11_vm1, %v10_v8   ;;  %v24_v9 = vpop.permute.xlu1 %23  }
  0x78   :  { %v17_v10 = vpop.permute.xlu0 %16  }
  0x79   :  { %19 = vst.msk [vmem:[#allocation0] ss:$8 sm:$0x3] %vm18_vm2, %v17_v10   ;;  %v31_v11 = vpop.permute.xlu1 %30  }
  0x7a   :  { %26 = vst.msk [vmem:[#allocation0] ss:$8 sm:$0x3] %vm25_vm3, %v24_v9  }
  0x7b   :  { %33 = vst.msk [vmem:[#allocation0] ss:$8 sm:$0x3] %vm32_vm4, %v31_v11  }
  0x7c   :  { %v38_v12 = vpop.permute.xlu0 %37  }
  0x7d   :  { %40 = vst.msk [vmem:[#allocation0] ss:$8 sm:$0x3] %vm39_vm5, %v38_v12   ;;  %v45_v13 = vpop.permute.xlu1 %44  }
  0x7e   :  { %47 = vst.msk [vmem:[#allocation0] ss:$8 sm:$0x3] %vm46_vm6, %v45_v13  }
  0x80   :  { %v52_v14 = vpop.permute.xlu0 %51  }
  0x81   :  { %54 = vst.msk [vmem:[#allocation0] ss:$8 sm:$0x3] %vm53_vm7, %v52_v14  }
  0x88   :  { %v59_v15 = vld [vmem:[#allocation0] sm:$0x1]  ;;  %v64_v16 = vld [vmem:[#allocation0 + $0x8] sm:$0x1] }
  0x89   :  { %62 = vst [vmem:[%s132_s1] sm:$0x1] %v59_v15  ;;  %76 = vst [vmem:[%s132_s1 + $0x1] sm:$0x1] %v64_v16 }

// kernel: convformer_forward.1
= control target key start
LH: loop header
LB: loop body
LE: loop exit
PB: predicated region body
PF: predicated region fallthrough
CT: control target
= control target key end

     0   :  { %16 = vsyncpa [#allocation4], 0  ;;  %s5955_s0 = inlined_call_operand.vmem [shape: f32[2,4,256], index: 0, kind: input, shape index: {}]   ;;  %s5956_s1 = inlined_call_operand.vmem [shape: f32[2,256,4], index: 1, kind: input, shape index: {}]   ;;  %s5957_s2 = inlined_call_operand.vmem [shape: f32[1,256], index: 2, kind: input, shape index: {}]   ;;  %s5958_s3 = inlined_call_operand.vmem [shape: f32[1,256], index: 3, kind: input, shape index: {}]   ;;  %s5959_s4 = inlined_call_operand.hbm [shape: f32[256,256], index: 4, kind: input, shape index: {}]   ;;  %s5960_s5 = inlined_call_operand.hbm [shape: f32[256,2304], index: 5, kind: input, shape index: {}]   ;;  %s5961_s6 = inlined_call_operand.vmem [shape: f32[4,9], index: 6, kind: input, shape index: {}]   ;;  %s5962_s7 = inlined_call_operand.vmem [shape: f32[12,4], index: 7, kind: input, shape index: {}]   ;;  %s5963_s8 = inlined_call_operand.vmem [shape: f32[12,1], index: 8, kind: input, shape index: {}]   ;;  %s5964_s9 = inlined_call_operand.vmem [shape: f32[4,4], index: 9, kind: input, shape index: {}]   ;;  %s5965_s10 = inlined_call_operand.hbm [shape: f32[1,4], index: 10, kind: input, shape index: {}]   ;;  %s5966_s11 = inlined_call_operand.vmem [shape: f32[2,256,4], index: 11, kind: output, shape index: {}]  }
   0x1   :  { %17 = vsyncpa [#allocation6], 0  ;;  %s4895_s17 = smov 0  }
   0x2 LB: > { %s4817_s18 = smov [#allocation5]   ;;  %s4901_s20 = sadd.s32 4294967295, %s4815_s17   ;;  %s4815_s17 = sphi %s4895_s17, %s23_s17  }
   0x3   : > { %s326_s19 = sshll.u32 %s4817_s18, 4  ;;  %p4219_p0 = scmp.ge.s32.totalorder %s4815_s17, 1  ;;  %s327_s19 = int_to_ptr.vmem [resolvable:$true] %s326_s19 }
   0x4   : > { %p295_p1 = scmp.lt.s32.totalorder %s4815_s17, 3  ;;  %p4482_p2 = scmp.eq.s32.totalorder %s4901_s20, 0 }
   0x5   : > { %s4818_s22 = smov [#allocation3]   ;;  %s4819_s25 = smov [#allocation7]  }
   0x6   : > { %p4906_p3 = pnand %p4219_p0, %p295_p1  ;;  %s313_s23 = sshll.u32 %s4818_s22, 4  ;;  %s4912_s23 = int_to_ptr.vmem [resolvable:$true] %s313_s23 }
   0x7   : > { %s4920_s26 = sshll.u32 %s4819_s25, 4  ;;  %s4734_s27 = scalar_lea.vmem %s327_s19, 73728  ;;  %s353_s26 = int_to_ptr.vmem [resolvable:$true] %s4920_s26 }
   0x8   : > { %p4472_p4 = pneg %p4906_p3  ;;  %p4735_p7 = scmp.ne.s32.totalorder %s327_s19, %s4734_s27 }
   0x9   : > { %p4742_p10 = scmp.lt.s32.totalorder %s327_s19, %s327_s19  ;;  %p4743_p11 = scmp.lt.s32.totalorder %s4734_s27, %s4734_s27 }
   0xa   : > { %p4916_p5 = pnand %p4482_p2, %p4472_p4 }
   0xb   : > { %p4744_p12 = por %p4743_p11, %p4742_p10 }
   0xc   : > { %p4725_p6 = pneg %p4916_p5 }
   0xe   : > { %p4737_p8 = pnand %p4735_p7, %p4725_p6 }
  0x10   : > { %p4738_p9 = pneg %p4737_p8 }
  0x12   : > { %p4745_p13 = pnand %p4744_p12, %p4738_p9 }
  0x14   : > { %4748 = shalt.err (!%p4745_p13)
}
  0x15   : > { %s4820_s28 = smov 2304   ;;  %s4821_s29 = smov 144  }
  0x16   : > { %4478 = dma.hbm_to_vmem [thread:$0]  (!%p4916_p5), %s5960_s5, 73728, %s327_s19, [#allocation6], %s4820_s28, %s4820_s28, %s4821_s29  }
  0x17   : > { %s4760_s13 = scalar_lea.vmem %s4912_s23, 8192  ;;  %p4768_p7 = scmp.lt.s32.totalorder %s4912_s23, %s4912_s23 }
  0x18   : > { %p4761_p0 = scmp.ne.s32.totalorder %s4912_s23, %s4760_s13  ;;  %p4769_p8 = scmp.lt.s32.totalorder %s4760_s13, %s4760_s13 }
  0x1a   : > { %p4763_p1 = pnand %p4761_p0, %p4725_p6  ;;  %p4770_p9 = por %p4769_p8, %p4768_p7 }
  0x1c   : > { %p4764_p4 = pneg %p4763_p1 }
  0x1e   : > { %p4771_p10 = pnand %p4770_p9, %p4764_p4 }
  0x20   : > { %4774 = shalt.err (!%p4771_p10)
}
  0x21   : > { %s4822_s14 = smov 256   ;;  %s4823_s15 = smov 16  }
  0x22   : > { %4475 = dma.hbm_to_vmem [thread:$0]  (!%p4916_p5), %s5959_s4, 8192, %s4912_s23, [#allocation4], %s4822_s14, %s4822_s14, %s4823_s15  }
  0x23   : > { %s4786_s19 = scalar_lea.vmem %s353_s26, 16  ;;  %s4793_s22 = scalar_lea.vmem %s353_s26, 32 }
  0x24   : > { %p4787_p11 = scmp.ne.s32.totalorder %s353_s26, %s4786_s19  ;;  %p4794_p0 = scmp.lt.s32.totalorder %s353_s26, %s353_s26 }
  0x25   : > { %p4795_p1 = scmp.lt.s32.totalorder %s4793_s22, %s4786_s19 }
  0x26   : > { %p4789_p12 = pnand %p4787_p11, %p4725_p6 }
  0x27   : > { %p4796_p4 = por %p4795_p1, %p4794_p0 }
  0x28   : > { %p4790_p13 = pneg %p4789_p12 }
  0x2a   : > { %p4797_p7 = pnand %p4796_p4, %p4790_p13 }
  0x2c   : > { %4800 = shalt.err (!%p4797_p7)
}
  0x2d   : > { %4481 = dma.hbm_to_vmem [thread:$0]  (!%p4916_p5), %s5965_s10, 16, %s353_s26, [#allocation6]  }
  0x2e   : > { %381 = sbr.rel (%p4906_p3) target bundleno = 2509 (0x9cd), region = 64 }
  0x33   : > { %4806 = dma.done.wait (%p4482_p2), [#allocation4], 8192  }
  0x34   : > { %4808 = vsyncadd (%p4482_p2), [#allocation4], 4294959104 }
  0x35   : > { %4810 = dma.done.wait (%p4482_p2), [#allocation6], 73744  }
  0x36   : > { %4812 = vsyncadd (%p4482_p2), [#allocation6], 4294893552  ;;  %v481_v0 = vld [vmem:[#allocation3 + $0xf8] sm:$0xff]  ;;  %v480_v1 = vld [vmem:[#allocation3 + $0xf0] sm:$0xff]  ;;  %p434_p2 = scmp.lt.s32.totalorder %s4901_s20, 1  ;;  %vm2014_vm0 = vcmask 1043456  }
  0x37   : > { %v479_v2 = vld [vmem:[#allocation3 + $0xe8] sm:$0xff]  ;;  %517 = vmatprep.subr.mxu0 %v481_v0  ;;  %v478_v3 = vld [vmem:[#allocation3 + $0xe0] sm:$0xff]  ;;  %597 = vmatprep.subr.mxu1 %v481_v0  ;;  %v477_v4 = vld [vmem:[#allocation3 + $0xd8] sm:$0xff]  ;;  %vm2007_vm1 = vcmask 31744  }
  0x38   : > { %518 = vmatpush1.msra.mxu0 %v480_v1  ;;  %598 = vmatpush1.msra.mxu1 %v480_v1  ;;  %v476_v5 = vld [vmem:[#allocation3 + $0xd0] sm:$0xff]  ;;  %v475_v6 = vld [vmem:[#allocation3 + $0xc8] sm:$0xff]  ;;  %v474_v7 = vld [vmem:[#allocation3 + $0xc0] sm:$0xff]  ;;  %s6040_s20 = smov (!%p434_p2, %s4901_s20), 1 }
  0x39   : > { %519 = vmatprep.subr.mxu0 %v479_v2  ;;  %599 = vmatprep.subr.mxu1 %v479_v2  ;;  %v473_v8 = vld [vmem:[#allocation3 + $0xb8] sm:$0xff]  ;;  %v472_v9 = vld [vmem:[#allocation3 + $0xb0] sm:$0xff]  ;;  %v471_v10 = vld [vmem:[#allocation3 + $0xa8] sm:$0xff]  ;;  %s4372_s21 = sshll.u32 %s6040_s20, 3  ;;  %s4373_s29 = sshll.u32 %s6040_s20, 8 }
  0x3a   : > { %520 = vmatpush1.msra.mxu0 %v478_v3  ;;  %600 = vmatpush1.msra.mxu1 %v478_v3  ;;  %v470_v11 = vld [vmem:[#allocation3 + $0xa0] sm:$0xff]  ;;  %v469_v12 = vld [vmem:[#allocation3 + $0x98] sm:$0xff]  ;;  %v468_v13 = vld [vmem:[#allocation3 + $0x90] sm:$0xff]  ;;  %s438_s26 = scalar_lea.vmem %s5955_s0, %s4372_s21  ;;  %s5815_s13 = scalar_lea.vmem %s5956_s1, %s4373_s29 }
  0x3b   : > { %521 = vmatprep.subr.mxu0 %v477_v4  ;;  %601 = vmatprep.subr.mxu1 %v477_v4  ;;  %v467_v14 = vld [vmem:[#allocation3 + $0x88] sm:$0xff]  ;;  %v466_v15 = vld [vmem:[#allocation3 + $0x80] sm:$0xff]  ;;  %v465_v16 = vld [vmem:[#allocation3 + $0x78] sm:$0xff]  ;;  %s5824_s15 = scalar_lea.vmem %s5966_s11, %s4373_s29 }
  0x3c   : > { %522 = vmatpush1.msra.mxu0 %v476_v5  ;;  %602 = vmatpush1.msra.mxu1 %v476_v5  ;;  %v464_v17 = vld [vmem:[#allocation3 + $0x70] sm:$0xff]  ;;  %v463_v18 = vld [vmem:[#allocation3 + $0x68] sm:$0xff]  ;;  %v462_v19 = vld [vmem:[#allocation3 + $0x60] sm:$0xff] }
  0x3d   : > { %523 = vmatprep.subr.mxu0 %v475_v6  ;;  %603 = vmatprep.subr.mxu1 %v475_v6  ;;  %v461_v20 = vld [vmem:[#allocation3 + $0x58] sm:$0xff]  ;;  %v460_v21 = vld [vmem:[#allocation3 + $0x50] sm:$0xff]  ;;  %v459_v22 = vld [vmem:[#allocation3 + $0x48] sm:$0xff] }
  0x3e   : > { %524 = vmatpush1.msra.mxu0 %v474_v7  ;;  %604 = vmatpush1.msra.mxu1 %v474_v7  ;;  %v458_v23 = vld [vmem:[#allocation3 + $0x40] sm:$0xff]  ;;  %v457_v25 = vld [vmem:[#allocation3 + $0x38] sm:$0xff]  ;;  %v456_v27 = vld [vmem:[#allocation3 + $0x30] sm:$0xff] }
  0x3f   : > { %525 = vmatprep.subr.mxu0 %v473_v8  ;;  %605 = vmatprep.subr.mxu1 %v473_v8  ;;  %v4972_v24 = vld [vmem:[%s438_s26] sm:$0xff]  ;;  %v455_v28 = vld [vmem:[#allocation3 + $0x28] sm:$0xff]  ;;  %v453_v30 = vld [vmem:[#allocation3 + $0x18] sm:$0xff] }
  0x40   : > { %526 = vmatpush1.msra.mxu0 %v472_v9  ;;  %606 = vmatpush1.msra.mxu1 %v472_v9  ;;  %v515_v26 = vcombine.high %v4972_v24, %v4972_v24  ;;  %v454_v29 = vld [vmem:[#allocation3 + $0x20] sm:$0xff]  ;;  %v452_v31 = vld [vmem:[#allocation3 + $0x10] sm:$0xff]  ;;  %v451_v32 = vld [vmem:[#allocation3 + $0x8] sm:$0xff] }
  0x41   : > { %527 = vmatprep.subr.mxu0 %v471_v10  ;;  %607 = vmatprep.subr.mxu1 %v471_v10  ;;  %v450_v33 = vld [vmem:[#allocation3] sm:$0xff]  ;;  %v513_v34 = vld [vmem:[#allocation3 + $0x1f8] sm:$0xff]  ;;  %v512_v35 = vld [vmem:[#allocation3 + $0x1f0] sm:$0xff] }
  0x42   : > { %528 = vmatpush1.msra.mxu0 %v470_v11  ;;  %608 = vmatpush1.msra.mxu1 %v470_v11  ;;  %v511_v36 = vld [vmem:[#allocation3 + $0x1e8] sm:$0xff]  ;;  %v510_v37 = vld [vmem:[#allocation3 + $0x1e0] sm:$0xff]  ;;  %v509_v38 = vld [vmem:[#allocation3 + $0x1d8] sm:$0xff] }
  0x43   : > { %529 = vmatprep.subr.mxu0 %v469_v12  ;;  %609 = vmatprep.subr.mxu1 %v469_v12  ;;  %v508_v39 = vld [vmem:[#allocation3 + $0x1d0] sm:$0xff]  ;;  %v507_v40 = vld [vmem:[#allocation3 + $0x1c8] sm:$0xff]  ;;  %v506_v41 = vld [vmem:[#allocation3 + $0x1c0] sm:$0xff] }
  0x44   : > { %530 = vmatpush1.msra.mxu0 %v468_v13  ;;  %610 = vmatpush1.msra.mxu1 %v468_v13  ;;  %v505_v42 = vld [vmem:[#allocation3 + $0x1b8] sm:$0xff]  ;;  %v504_v43 = vld [vmem:[#allocation3 + $0x1b0] sm:$0xff]  ;;  %v503_v44 = vld [vmem:[#allocation3 + $0x1a8] sm:$0xff] }
  0x45   : > { %531 = vmatprep.subr.mxu0 %v467_v14  ;;  %611 = vmatprep.subr.mxu1 %v467_v14  ;;  %v502_v45 = vld [vmem:[#allocation3 + $0x1a0] sm:$0xff]  ;;  %v501_v46 = vld [vmem:[#allocation3 + $0x198] sm:$0xff]  ;;  %v500_v47 = vld [vmem:[#allocation3 + $0x190] sm:$0xff] }
  0x46   : > { %532 = vmatpush1.msra.mxu0 %v466_v15  ;;  %612 = vmatpush1.msra.mxu1 %v466_v15  ;;  %v499_v48 = vld [vmem:[#allocation3 + $0x188] sm:$0xff]  ;;  %v498_v49 = vld [vmem:[#allocation3 + $0x180] sm:$0xff]  ;;  %v497_v50 = vld [vmem:[#allocation3 + $0x178] sm:$0xff] }
  0x47   : > { %533 = vmatprep.subr.mxu0 %v465_v16  ;;  %613 = vmatprep.subr.mxu1 %v465_v16  ;;  %v496_v51 = vld [vmem:[#allocation3 + $0x170] sm:$0xff]  ;;  %v495_v52 = vld [vmem:[#allocation3 + $0x168] sm:$0xff]  ;;  %v494_v53 = vld [vmem:[#allocation3 + $0x160] sm:$0xff] }
  0x48   : > { %534 = vmatpush1.msra.mxu0 %v464_v17  ;;  %614 = vmatpush1.msra.mxu1 %v464_v17  ;;  %v493_v54 = vld [vmem:[#allocation3 + $0x158] sm:$0xff]  ;;  %v492_v55 = vld [vmem:[#allocation3 + $0x150] sm:$0xff]  ;;  %v491_v56 = vld [vmem:[#allocation3 + $0x148] sm:$0xff] }
  0x49   : > { %535 = vmatprep.subr.mxu0 %v463_v18  ;;  %615 = vmatprep.subr.mxu1 %v463_v18  ;;  %v490_v57 = vld [vmem:[#allocation3 + $0x140] sm:$0xff]  ;;  %v489_v58 = vld [vmem:[#allocation3 + $0x138] sm:$0xff]  ;;  %v488_v59 = vld [vmem:[#allocation3 + $0x130] sm:$0xff] }
  0x4a   : > { %536 = vmatpush1.msra.mxu0 %v462_v19  ;;  %616 = vmatpush1.msra.mxu1 %v462_v19  ;;  %v487_v60 = vld [vmem:[#allocation3 + $0x128] sm:$0xff]  ;;  %v486_v61 = vld [vmem:[#allocation3 + $0x120] sm:$0xff]  ;;  %v485_v62 = vld [vmem:[#allocation3 + $0x118] sm:$0xff] }
  0x4b   : > { %537 = vmatprep.subr.mxu0 %v461_v20  ;;  %617 = vmatprep.subr.mxu1 %v461_v20  ;;  %v484_v63 = vld [vmem:[#allocation3 + $0x110] sm:$0xff]  ;;  %v483_v0 = vld [vmem:[#allocation3 + $0x108] sm:$0xff]  ;;  %v482_v1 = vld [vmem:[#allocation3 + $0x100] sm:$0xff] }
  0x4c   : > { %538 = vmatpush1.msra.mxu0 %v460_v21  ;;  %618 = vmatpush1.msra.mxu1 %v460_v21  ;;  %v972_v2 = vld [vmem:[#allocation5 + $0x878] sm:$0xff]  ;;  %v974_v3 = vld [vmem:[#allocation5 + $0x888] sm:$0xff]  ;;  %v971_v4 = vld [vmem:[#allocation5 + $0x870] sm:$0xff] }
  0x4d   : > { %539 = vmatprep.subr.mxu0 %v459_v22  ;;  %619 = vmatprep.subr.mxu1 %v459_v22  ;;  %v954_v5 = vld [vmem:[#allocation5 + $0x7e8] sm:$0xff]  ;;  %v953_v6 = vld [vmem:[#allocation5 + $0x7e0] sm:$0xff]  ;;  %v936_v7 = vld [vmem:[#allocation5 + $0x758] sm:$0xff] }
  0x4e   : > { %540 = vmatpush1.msra.mxu0 %v458_v23  ;;  %581 = vmatprep.mubr.f32.mxu0 %v515_v26  ;;  %v935_v8 = vld [vmem:[#allocation5 + $0x750] sm:$0xff]  ;;  %v918_v9 = vld [vmem:[#allocation5 + $0x6c8] sm:$0xff]  ;;  %v917_v10 = vld [vmem:[#allocation5 + $0x6c0] sm:$0xff] }
  0x4f   : > { %541 = vmatprep.subr.mxu0 %v457_v25  ;;  %620 = vmatpush1.msra.mxu1 %v458_v23  ;;  %v900_v11 = vld [vmem:[#allocation5 + $0x638] sm:$0xff]  ;;  %v899_v12 = vld [vmem:[#allocation5 + $0x630] sm:$0xff]  ;;  %v882_v13 = vld [vmem:[#allocation5 + $0x5a8] sm:$0xff] }
  0x50   : > { %542 = vmatpush1.msra.mxu0 %v456_v27  ;;  %621 = vmatprep.subr.mxu1 %v457_v25  ;;  %v881_v14 = vld [vmem:[#allocation5 + $0x5a0] sm:$0xff]  ;;  %v864_v15 = vld [vmem:[#allocation5 + $0x518] sm:$0xff]  ;;  %v863_v16 = vld [vmem:[#allocation5 + $0x510] sm:$0xff] }
  0x51   : > { %543 = vmatprep.subr.mxu0 %v455_v28  ;;  %622 = vmatpush1.msra.mxu1 %v456_v27  ;;  %v846_v17 = vld [vmem:[#allocation5 + $0x488] sm:$0xff]  ;;  %v845_v18 = vld [vmem:[#allocation5 + $0x480] sm:$0xff]  ;;  %v828_v19 = vld [vmem:[#allocation5 + $0x3f8] sm:$0xff] }
  0x52   : > { %544 = vmatpush1.msra.mxu0 %v454_v29  ;;  %623 = vmatprep.subr.mxu1 %v455_v28  ;;  %v827_v20 = vld [vmem:[#allocation5 + $0x3f0] sm:$0xff]  ;;  %v810_v21 = vld [vmem:[#allocation5 + $0x368] sm:$0xff]  ;;  %v809_v22 = vld [vmem:[#allocation5 + $0x360] sm:$0xff] }
  0x53   : > { %545 = vmatprep.subr.mxu0 %v453_v30  ;;  %624 = vmatpush1.msra.mxu1 %v454_v29  ;;  %v792_v23 = vld [vmem:[#allocation5 + $0x2d8] sm:$0xff]  ;;  %v791_v25 = vld [vmem:[#allocation5 + $0x2d0] sm:$0xff]  ;;  %v774_v26 = vld [vmem:[#allocation5 + $0x248] sm:$0xff] }
  0x54   : > { %546 = vmatpush1.msra.mxu0 %v452_v31  ;;  %625 = vmatprep.subr.mxu1 %v453_v30  ;;  %v773_v27 = vld [vmem:[#allocation5 + $0x240] sm:$0xff]  ;;  %v756_v28 = vld [vmem:[#allocation5 + $0x1b8] sm:$0xff]  ;;  %v755_v29 = vld [vmem:[#allocation5 + $0x1b0] sm:$0xff] }
  0x55   : > { %547 = vmatprep.subr.mxu0 %v451_v32  ;;  %626 = vmatpush1.msra.mxu1 %v452_v31  ;;  %v738_v30 = vld [vmem:[#allocation5 + $0x128] sm:$0xff]  ;;  %v737_v31 = vld [vmem:[#allocation5 + $0x120] sm:$0xff] }
  0x56   : > { %548 = vmatpush1.msra.mxu0 %v450_v33  ;;  %627 = vmatprep.subr.mxu1 %v451_v32  ;;  %v720_v32 = vld [vmem:[#allocation5 + $0x98] sm:$0xff] }
  0x57   : > { %549 = vmatprep.subr.mxu0 %v513_v34  ;;  %628 = vmatpush1.msra.mxu1 %v450_v33  ;;  %v719_v33 = vld [vmem:[#allocation5 + $0x90] sm:$0xff] }
  0x58   : > { %550 = vmatpush2.msra.mxu0 %v512_v35  ;;  %629 = vmatprep.subr.mxu1 %v513_v34  ;;  %v702_v34 = vld [vmem:[#allocation5 + $0x8] sm:$0xff] }
  0x59   : > { %551 = vmatprep.subr.mxu0 %v511_v36  ;;  %630 = vmatpush2.msra.mxu1 %v512_v35  ;;  %v701_v35 = vld [vmem:[#allocation5] sm:$0xff] }
  0x5a   : > { %552 = vmatpush2.msra.mxu0 %v510_v37  ;;  %631 = vmatprep.subr.mxu1 %v511_v36  ;;  %v1260_v36 = vld [vmem:[#allocation5 + $0x1178] sm:$0xff] }
  0x5b   : > { %553 = vmatprep.subr.mxu0 %v509_v38  ;;  %632 = vmatpush2.msra.mxu1 %v510_v37  ;;  %v1259_v37 = vld [vmem:[#allocation5 + $0x1170] sm:$0xff] }
  0x5c   : > { %554 = vmatpush2.msra.mxu0 %v508_v39  ;;  %633 = vmatprep.subr.mxu1 %v509_v38  ;;  %v1242_v38 = vld [vmem:[#allocation5 + $0x10e8] sm:$0xff] }
  0x5d   : > { %555 = vmatprep.subr.mxu0 %v507_v40  ;;  %634 = vmatpush2.msra.mxu1 %v508_v39 }
  0x5e   : > { %556 = vmatpush2.msra.mxu0 %v506_v41  ;;  %635 = vmatprep.subr.mxu1 %v507_v40 }
  0x5f   : > { %557 = vmatprep.subr.mxu0 %v505_v42  ;;  %636 = vmatpush2.msra.mxu1 %v506_v41 }
  0x60   : > { %558 = vmatpush2.msra.mxu0 %v504_v43  ;;  %637 = vmatprep.subr.mxu1 %v505_v42 }
  0x61   : > { %559 = vmatprep.subr.mxu0 %v503_v44  ;;  %638 = vmatpush2.msra.mxu1 %v504_v43 }
  0x62   : > { %560 = vmatpush2.msra.mxu0 %v502_v45  ;;  %639 = vmatprep.subr.mxu1 %v503_v44 }
  0x63   : > { %561 = vmatprep.subr.mxu0 %v501_v46  ;;  %640 = vmatpush2.msra.mxu1 %v502_v45  ;;  %v973_v45 = vld [vmem:[#allocation5 + $0x880] sm:$0xff] }
  0x64   : > { %562 = vmatpush2.msra.mxu0 %v500_v47  ;;  %641 = vmatprep.subr.mxu1 %v501_v46  ;;  %v956_v46 = vld [vmem:[#allocation5 + $0x7f8] sm:$0xff] }
  0x65   : > { %563 = vmatprep.subr.mxu0 %v499_v48  ;;  %642 = vmatpush2.msra.mxu1 %v500_v47  ;;  %v955_v47 = vld [vmem:[#allocation5 + $0x7f0] sm:$0xff] }
  0x66   : > { %564 = vmatpush2.msra.mxu0 %v498_v49  ;;  %643 = vmatprep.subr.mxu1 %v499_v48  ;;  %v938_v48 = vld [vmem:[#allocation5 + $0x768] sm:$0xff] }
  0x67   : > { %565 = vmatprep.subr.mxu0 %v497_v50  ;;  %644 = vmatpush2.msra.mxu1 %v498_v49  ;;  %v937_v49 = vld [vmem:[#allocation5 + $0x760] sm:$0xff] }
  0x68   : > { %566 = vmatpush2.msra.mxu0 %v496_v51  ;;  %645 = vmatprep.subr.mxu1 %v497_v50  ;;  %v920_v50 = vld [vmem:[#allocation5 + $0x6d8] sm:$0xff] }
  0x69   : > { %567 = vmatprep.subr.mxu0 %v495_v52  ;;  %646 = vmatpush2.msra.mxu1 %v496_v51  ;;  %v919_v51 = vld [vmem:[#allocation5 + $0x6d0] sm:$0xff] }
  0x6a   : > { %568 = vmatpush2.msra.mxu0 %v494_v53  ;;  %647 = vmatprep.subr.mxu1 %v495_v52  ;;  %v901_v52 = vld [vmem:[#allocation5 + $0x640] sm:$0xff] }
  0x6b   : > { %569 = vmatprep.subr.mxu0 %v493_v54  ;;  %648 = vmatpush2.msra.mxu1 %v494_v53  ;;  %v884_v53 = vld [vmem:[#allocation5 + $0x5b8] sm:$0xff] }
  0x6c   : > { %570 = vmatpush2.msra.mxu0 %v492_v55  ;;  %649 = vmatprep.subr.mxu1 %v493_v54  ;;  %v883_v54 = vld [vmem:[#allocation5 + $0x5b0] sm:$0xff] }
  0x6d   : > { %571 = vmatprep.subr.mxu0 %v491_v56  ;;  %650 = vmatpush2.msra.mxu1 %v492_v55  ;;  %v866_v55 = vld [vmem:[#allocation5 + $0x528] sm:$0xff] }
  0x6e   : > { %572 = vmatpush2.msra.mxu0 %v490_v57  ;;  %651 = vmatprep.subr.mxu1 %v491_v56  ;;  %v865_v56 = vld [vmem:[#allocation5 + $0x520] sm:$0xff] }
  0x6f   : > { %573 = vmatprep.subr.mxu0 %v489_v58  ;;  %652 = vmatpush2.msra.mxu1 %v490_v57  ;;  %v848_v57 = vld [vmem:[#allocation5 + $0x498] sm:$0xff] }
  0x70   : > { %574 = vmatpush2.msra.mxu0 %v488_v59  ;;  %653 = vmatprep.subr.mxu1 %v489_v58  ;;  %v847_v58 = vld [vmem:[#allocation5 + $0x490] sm:$0xff] }
  0x71   : > { %575 = vmatprep.subr.mxu0 %v487_v60  ;;  %654 = vmatpush2.msra.mxu1 %v488_v59  ;;  %v830_v59 = vld [vmem:[#allocation5 + $0x408] sm:$0xff] }
  0x72   : > { %576 = vmatpush2.msra.mxu0 %v486_v61  ;;  %655 = vmatprep.subr.mxu1 %v487_v60  ;;  %v829_v60 = vld [vmem:[#allocation5 + $0x400] sm:$0xff] }
  0x73   : > { %577 = vmatprep.subr.mxu0 %v485_v62  ;;  %656 = vmatpush2.msra.mxu1 %v486_v61  ;;  %v812_v61 = vld [vmem:[#allocation5 + $0x378] sm:$0xff] }
  0x74   : > { %578 = vmatpush2.msra.mxu0 %v484_v63  ;;  %657 = vmatprep.subr.mxu1 %v485_v62  ;;  %v811_v62 = vld [vmem:[#allocation5 + $0x370] sm:$0xff] }
  0x75   : > { %579 = vmatprep.subr.mxu0 %v483_v0  ;;  %658 = vmatpush2.msra.mxu1 %v484_v63  ;;  %v794_v63 = vld [vmem:[#allocation5 + $0x2e8] sm:$0xff] }
  0x76   : > { %580 = vmatpush2.msra.mxu0 %v482_v1  ;;  %659 = vmatprep.subr.mxu1 %v483_v0  ;;  %v793_v0 = vld [vmem:[#allocation5 + $0x2e0] sm:$0xff] }
  0x77   : > { %582 = vmatmul.mubr.f32.vlgmr.msra.gmra.mxu0 %v4972_v24  ;;  %660 = vmatpush2.msra.mxu1 %v482_v1  ;;  %v776_v1 = vld [vmem:[#allocation5 + $0x258] sm:$0xff] }
  0x78   : > { %1280 = vmatprep.subr.mxu0 %v972_v2  ;;  %1351 = vmatprep.subr.mxu1 %v974_v3  ;;  %v775_v2 = vld [vmem:[#allocation5 + $0x250] sm:$0xff]  ;;  %v758_v3 = vld [vmem:[#allocation5 + $0x1c8] sm:$0xff] }
  0x79   : > { %1281 = vmatpush1.msra.mxu0 %v971_v4  ;;  %v757_v4 = vld [vmem:[#allocation5 + $0x1c0] sm:$0xff] }
  0x7a   : > { %1282 = vmatprep.subr.mxu0 %v954_v5  ;;  %v740_v5 = vld [vmem:[#allocation5 + $0x138] sm:$0xff] }
  0x7b   : > { %1283 = vmatpush1.msra.mxu0 %v953_v6  ;;  %v739_v6 = vld [vmem:[#allocation5 + $0x130] sm:$0xff] }
  0x7c   : > { %1284 = vmatprep.subr.mxu0 %v936_v7  ;;  %v722_v7 = vld [vmem:[#allocation5 + $0xa8] sm:$0xff] }
  0x7d   : > { %1285 = vmatpush1.msra.mxu0 %v935_v8  ;;  %v721_v8 = vld [vmem:[#allocation5 + $0xa0] sm:$0xff] }
  0x7e   : > { %1286 = vmatprep.subr.mxu0 %v918_v9  ;;  %v704_v9 = vld [vmem:[#allocation5 + $0x18] sm:$0xff] }
  0x7f   : > { %1287 = vmatpush1.msra.mxu0 %v917_v10  ;;  %v703_v10 = vld [vmem:[#allocation5 + $0x10] sm:$0xff] }
  0x80   : > { %1288 = vmatprep.subr.mxu0 %v900_v11  ;;  %v1262_v11 = vld [vmem:[#allocation5 + $0x1188] sm:$0xff] }
  0x81   : > { %1289 = vmatpush1.msra.mxu0 %v899_v12  ;;  %v1261_v12 = vld [vmem:[#allocation5 + $0x1180] sm:$0xff] }
  0x82   : > { %1290 = vmatprep.subr.mxu0 %v882_v13  ;;  %v1244_v13 = vld [vmem:[#allocation5 + $0x10f8] sm:$0xff] }
  0x83   : > { %1291 = vmatpush1.msra.mxu0 %v881_v14  ;;  %v1241_v14 = vld [vmem:[#allocation5 + $0x10e0] sm:$0xff] }
  0x84   : > { %1292 = vmatprep.subr.mxu0 %v864_v15  ;;  %v1243_v15 = vld [vmem:[#allocation5 + $0x10f0] sm:$0xff] }
  0x85   : > { %1293 = vmatpush1.msra.mxu0 %v863_v16  ;;  %v1224_v16 = vld [vmem:[#allocation5 + $0x1058] sm:$0xff] }
  0x86   : > { %1294 = vmatprep.subr.mxu0 %v846_v17  ;;  %v1226_v17 = vld [vmem:[#allocation5 + $0x1068] sm:$0xff] }
  0x87   : > { %1295 = vmatpush1.msra.mxu0 %v845_v18  ;;  %v1223_v18 = vld [vmem:[#allocation5 + $0x1050] sm:$0xff] }
  0x88   : > { %1296 = vmatprep.subr.mxu0 %v828_v19  ;;  %v1225_v19 = vld [vmem:[#allocation5 + $0x1060] sm:$0xff] }
  0x89   : > { %1297 = vmatpush1.msra.mxu0 %v827_v20  ;;  %v1206_v20 = vld [vmem:[#allocation5 + $0xfc8] sm:$0xff] }
  0x8a   : > { %1298 = vmatprep.subr.mxu0 %v810_v21  ;;  %v1208_v21 = vld [vmem:[#allocation5 + $0xfd8] sm:$0xff] }
  0x8b   : > { %1299 = vmatpush1.msra.mxu0 %v809_v22  ;;  %v1205_v22 = vld [vmem:[#allocation5 + $0xfc0] sm:$0xff] }
  0x8c   : > { %1300 = vmatprep.subr.mxu0 %v792_v23  ;;  %v1207_v23 = vld [vmem:[#allocation5 + $0xfd0] sm:$0xff] }
  0x8d   : > { %1301 = vmatpush1.msra.mxu0 %v791_v25  ;;  %v1188_v25 = vld [vmem:[#allocation5 + $0xf38] sm:$0xff] }
  0x8e   : > { %1302 = vmatprep.subr.mxu0 %v774_v26  ;;  %v1190_v26 = vld [vmem:[#allocation5 + $0xf48] sm:$0xff] }
  0x8f   : > { %1303 = vmatpush1.msra.mxu0 %v773_v27  ;;  %v1187_v27 = vld [vmem:[#allocation5 + $0xf30] sm:$0xff] }
  0x90   : > { %1304 = vmatprep.subr.mxu0 %v756_v28  ;;  %v1189_v28 = vld [vmem:[#allocation5 + $0xf40] sm:$0xff] }
  0x91   : > { %1305 = vmatpush1.msra.mxu0 %v755_v29  ;;  %v1170_v29 = vld [vmem:[#allocation5 + $0xea8] sm:$0xff] }
  0x92   : > { %1306 = vmatprep.subr.mxu0 %v738_v30  ;;  %v1172_v30 = vld [vmem:[#allocation5 + $0xeb8] sm:$0xff] }
  0x93   : > { %1307 = vmatpush1.msra.mxu0 %v737_v31  ;;  %v1169_v31 = vld [vmem:[#allocation5 + $0xea0] sm:$0xff] }
  0x94   : > { %1308 = vmatprep.subr.mxu0 %v720_v32  ;;  %v1171_v32 = vld [vmem:[#allocation5 + $0xeb0] sm:$0xff] }
  0x95   : > { %1309 = vmatpush1.msra.mxu0 %v719_v33  ;;  %v1152_v33 = vld [vmem:[#allocation5 + $0xe18] sm:$0xff] }
  0x96   : > { %1310 = vmatprep.subr.mxu0 %v702_v34  ;;  %v1154_v34 = vld [vmem:[#allocation5 + $0xe28] sm:$0xff] }
  0x97   : > { %1311 = vmatpush1.msra.mxu0 %v701_v35  ;;  %v1151_v35 = vld [vmem:[#allocation5 + $0xe10] sm:$0xff] }
  0x98   : > { %1312 = vmatprep.subr.mxu0 %v1260_v36  ;;  %v1153_v36 = vld [vmem:[#allocation5 + $0xe20] sm:$0xff] }
  0x99   : > { %1313 = vmatpush2.msra.mxu0 %v1259_v37  ;;  %v1134_v37 = vld [vmem:[#allocation5 + $0xd88] sm:$0xff] }
  0x9a   : > { %1314 = vmatprep.subr.mxu0 %v1242_v38  ;;  %v1136_v38 = vld [vmem:[#allocation5 + $0xd98] sm:$0xff] }
  0x9b   : > { %1315 = vmatpush2.msra.mxu0 %v1241_v14 }
  0x9c   : > { %1316 = vmatprep.subr.mxu0 %v1224_v16 }
  0x9d   : > { %1317 = vmatpush2.msra.mxu0 %v1223_v18  ;;  %v677_v18 = vlaneseq }
  0x9e   : > { %1318 = vmatprep.subr.mxu0 %v1206_v20 }
  0x9f   : > { %1319 = vmatpush2.msra.mxu0 %v1205_v22  ;;  %v675_v22 = vld [vmem:[%s5957_s2] sm:$0x3] }
  0xa0   : > { %1320 = vmatprep.subr.mxu0 %v1188_v25 }
  0xa1   : > { %1321 = vmatpush2.msra.mxu0 %v1187_v27 }
  0xa2   : > { %1322 = vmatprep.subr.mxu0 %v1170_v29 }
  0xa3   : > { %1323 = vmatpush2.msra.mxu0 %v1169_v31 }
  0xa4   : > { %1324 = vmatprep.subr.mxu0 %v1152_v33 }
  0xa5   : > { %1325 = vmatpush2.msra.mxu0 %v1151_v35 }
  0xa6   : > { %1326 = vmatprep.subr.mxu0 %v1134_v37 }
 0x137   : > { %v583_v39 = vpop.f32.mrf.mxu0 }
 0x139   : > { %v585_v40 = vpop.f32.mrf.mxu0 }
 0x13a   : > { %v590_v41 = vcombine.low %v583_v39, %v585_v40  ;;  %v1133_v39 = vld [vmem:[#allocation5 + $0xd80] sm:$0xff]  ;;  %v1135_v40 = vld [vmem:[#allocation5 + $0xd90] sm:$0xff] }
 0x13b   : > { %1327 = vmatpush2.msra.mxu0 %v1133_v39  ;;  %v977_v39 = vld [vmem:[#allocation5 + $0x8a0] sm:$0xff] }
 0x13c   : > { %v4978_v42 = vsub.f32 %v4972_v24, %v590_v41  ;;  %v902_v24 = vld [vmem:[#allocation5 + $0x648] sm:$0xff]  ;;  %v1116_v41 = vld [vmem:[#allocation5 + $0xcf8] sm:$0xff] }
 0x13d   : > { %1328 = vmatprep.subr.mxu0 %v1116_v41  ;;  %v957_v41 = vld [vmem:[#allocation5 + $0x800] sm:$0xff] }
 0x13e   : > { %v593_v43 = vmul.f32 %v4978_v42, %v4978_v42 }
 0x140   : > { %v595_v44 = vcombine.high %v593_v43, %v593_v43 }
 0x142   : > { %661 = vmatprep.mubr.f32.mxu1 %v595_v44  ;;  %v1115_v44 = vld [vmem:[#allocation5 + $0xcf0] sm:$0xff] }
 0x143   : > { %662 = vmatmul.mubr.f32.vlgmr.msra.gmra.mxu1 %v593_v43  ;;  %v1118_v43 = vld [vmem:[#allocation5 + $0xd08] sm:$0xff]  ;;  %1329 = vmatpush2.msra.mxu0 %v1115_v44  ;;  %v940_v44 = vld [vmem:[#allocation5 + $0x778] sm:$0xff] }
 0x144   : > { %1352 = vmatpush1.msra.mxu1 %v973_v45  ;;  %v1117_v45 = vld [vmem:[#allocation5 + $0xd00] sm:$0xff] }
 0x145   : > { %1353 = vmatprep.subr.mxu1 %v956_v46  ;;  %v1098_v46 = vld [vmem:[#allocation5 + $0xc68] sm:$0xff] }
 0x146   : > { %1354 = vmatpush1.msra.mxu1 %v955_v47  ;;  %v1100_v47 = vld [vmem:[#allocation5 + $0xc78] sm:$0xff]  ;;  %1330 = vmatprep.subr.mxu0 %v1098_v46  ;;  %v939_v46 = vld [vmem:[#allocation5 + $0x770] sm:$0xff] }
 0x147   : > { %1355 = vmatprep.subr.mxu1 %v938_v48  ;;  %v1097_v48 = vld [vmem:[#allocation5 + $0xc60] sm:$0xff] }
 0x148   : > { %1356 = vmatpush1.msra.mxu1 %v937_v49  ;;  %v1099_v49 = vld [vmem:[#allocation5 + $0xc70] sm:$0xff]  ;;  %1331 = vmatpush2.msra.mxu0 %v1097_v48  ;;  %v922_v48 = vld [vmem:[#allocation5 + $0x6e8] sm:$0xff] }
 0x149   : > { %1357 = vmatprep.subr.mxu1 %v920_v50  ;;  %v1080_v50 = vld [vmem:[#allocation5 + $0xbd8] sm:$0xff] }
 0x14a   : > { %1358 = vmatpush1.msra.mxu1 %v919_v51  ;;  %v1082_v51 = vld [vmem:[#allocation5 + $0xbe8] sm:$0xff]  ;;  %1332 = vmatprep.subr.mxu0 %v1080_v50  ;;  %v921_v50 = vld [vmem:[#allocation5 + $0x6e0] sm:$0xff] }
 0x14b   : > { %1359 = vmatprep.subr.mxu1 %v902_v24  ;;  %v1079_v24 = vld [vmem:[#allocation5 + $0xbd0] sm:$0xff] }
 0x14c   : > { %1360 = vmatpush1.msra.mxu1 %v901_v52  ;;  %v1081_v52 = vld [vmem:[#allocation5 + $0xbe0] sm:$0xff]  ;;  %1333 = vmatpush2.msra.mxu0 %v1079_v24  ;;  %v904_v24 = vld [vmem:[#allocation5 + $0x658] sm:$0xff] }
 0x14d   : > { %1361 = vmatprep.subr.mxu1 %v884_v53  ;;  %v1062_v53 = vld [vmem:[#allocation5 + $0xb48] sm:$0xff] }
 0x14e   : > { %1362 = vmatpush1.msra.mxu1 %v883_v54  ;;  %v1064_v54 = vld [vmem:[#allocation5 + $0xb58] sm:$0xff]  ;;  %1334 = vmatprep.subr.mxu0 %v1062_v53  ;;  %v903_v53 = vld [vmem:[#allocation5 + $0x650] sm:$0xff] }
 0x14f   : > { %1363 = vmatprep.subr.mxu1 %v866_v55  ;;  %v1061_v55 = vld [vmem:[#allocation5 + $0xb40] sm:$0xff] }
 0x150   : > { %1364 = vmatpush1.msra.mxu1 %v865_v56  ;;  %v1063_v56 = vld [vmem:[#allocation5 + $0xb50] sm:$0xff]  ;;  %1335 = vmatpush2.msra.mxu0 %v1061_v55  ;;  %v886_v55 = vld [vmem:[#allocation5 + $0x5c8] sm:$0xff] }
 0x151   : > { %1365 = vmatprep.subr.mxu1 %v848_v57  ;;  %v1044_v57 = vld [vmem:[#allocation5 + $0xab8] sm:$0xff] }
 0x152   : > { %1366 = vmatpush1.msra.mxu1 %v847_v58  ;;  %v1046_v58 = vld [vmem:[#allocation5 + $0xac8] sm:$0xff]  ;;  %1336 = vmatprep.subr.mxu0 %v1044_v57  ;;  %v885_v57 = vld [vmem:[#allocation5 + $0x5c0] sm:$0xff] }
 0x153   : > { %1367 = vmatprep.subr.mxu1 %v830_v59  ;;  %v1043_v59 = vld [vmem:[#allocation5 + $0xab0] sm:$0xff] }
 0x154   : > { %1368 = vmatpush1.msra.mxu1 %v829_v60  ;;  %v1045_v60 = vld [vmem:[#allocation5 + $0xac0] sm:$0xff]  ;;  %1337 = vmatpush2.msra.mxu0 %v1043_v59  ;;  %v868_v59 = vld [vmem:[#allocation5 + $0x538] sm:$0xff] }
 0x155   : > { %1369 = vmatprep.subr.mxu1 %v812_v61  ;;  %v1026_v61 = vld [vmem:[#allocation5 + $0xa28] sm:$0xff] }
 0x156   : > { %1370 = vmatpush1.msra.mxu1 %v811_v62  ;;  %v1028_v62 = vld [vmem:[#allocation5 + $0xa38] sm:$0xff]  ;;  %1338 = vmatprep.subr.mxu0 %v1026_v61  ;;  %v867_v61 = vld [vmem:[#allocation5 + $0x530] sm:$0xff] }
 0x157   : > { %1371 = vmatprep.subr.mxu1 %v794_v63  ;;  %v1025_v63 = vld [vmem:[#allocation5 + $0xa20] sm:$0xff] }
 0x158   : > { %1372 = vmatpush1.msra.mxu1 %v793_v0  ;;  %v1027_v0 = vld [vmem:[#allocation5 + $0xa30] sm:$0xff]  ;;  %1339 = vmatpush2.msra.mxu0 %v1025_v63  ;;  %v850_v63 = vld [vmem:[#allocation5 + $0x4a8] sm:$0xff] }
 0x159   : > { %1373 = vmatprep.subr.mxu1 %v776_v1  ;;  %v1008_v1 = vld [vmem:[#allocation5 + $0x998] sm:$0xff] }
 0x15a   : > { %1374 = vmatpush1.msra.mxu1 %v775_v2  ;;  %v1010_v2 = vld [vmem:[#allocation5 + $0x9a8] sm:$0xff]  ;;  %1340 = vmatprep.subr.mxu0 %v1008_v1  ;;  %v849_v1 = vld [vmem:[#allocation5 + $0x4a0] sm:$0xff] }
 0x15b   : > { %1375 = vmatprep.subr.mxu1 %v758_v3  ;;  %v1007_v3 = vld [vmem:[#allocation5 + $0x990] sm:$0xff] }
 0x15c   : > { %1376 = vmatpush1.msra.mxu1 %v757_v4  ;;  %v1009_v4 = vld [vmem:[#allocation5 + $0x9a0] sm:$0xff]  ;;  %1341 = vmatpush2.msra.mxu0 %v1007_v3  ;;  %v832_v3 = vld [vmem:[#allocation5 + $0x418] sm:$0xff] }
 0x15d   : > { %1377 = vmatprep.subr.mxu1 %v740_v5  ;;  %v990_v5 = vld [vmem:[#allocation5 + $0x908] sm:$0xff] }
 0x15e   : > { %1378 = vmatpush1.msra.mxu1 %v739_v6  ;;  %v992_v6 = vld [vmem:[#allocation5 + $0x918] sm:$0xff]  ;;  %1342 = vmatprep.subr.mxu0 %v990_v5  ;;  %v831_v5 = vld [vmem:[#allocation5 + $0x410] sm:$0xff] }
 0x15f   : > { %1379 = vmatprep.subr.mxu1 %v722_v7  ;;  %v989_v7 = vld [vmem:[#allocation5 + $0x900] sm:$0xff] }
 0x160   : > { %1380 = vmatpush1.msra.mxu1 %v721_v8  ;;  %v991_v8 = vld [vmem:[#allocation5 + $0x910] sm:$0xff]  ;;  %1343 = vmatpush2.msra.mxu0 %v989_v7  ;;  %v814_v7 = vld [vmem:[#allocation5 + $0x388] sm:$0xff] }
 0x161   : > { %1381 = vmatprep.subr.mxu1 %v704_v9  ;;  %v976_v9 = vld [vmem:[#allocation5 + $0x898] sm:$0xff] }
 0x162   : > { %1382 = vmatpush1.msra.mxu1 %v703_v10  ;;  %v978_v10 = vld [vmem:[#allocation5 + $0x8a8] sm:$0xff]  ;;  %1422 = vmatprep.subr.mxu0 %v976_v9  ;;  %v813_v9 = vld [vmem:[#allocation5 + $0x380] sm:$0xff] }
 0x163   : > { %1383 = vmatprep.subr.mxu1 %v1262_v11  ;;  %v4824_v11 = vmov 0  }
 0x164   : > { %1384 = vmatpush2.msra.mxu1 %v1261_v12  ;;  %4514 = vset.pattern.permute.xlu0 %v4824_v11  ;;  %v1919_v12 = vld [vmem:[%s5961_s6] sm:$0xf] }
 0x165   : > { %1385 = vmatprep.subr.mxu1 %v1244_v13  ;;  %1922 = vperm.xlu0 %4514, %v1919_v12   ;;  %v4825_v13 = vmov 1  }
 0x166   : > { %1386 = vmatpush2.msra.mxu1 %v1243_v15 }
 0x167   : > { %1387 = vmatprep.subr.mxu1 %v1226_v17 }
 0x168   : > { %1388 = vmatpush2.msra.mxu1 %v1225_v19  ;;  %v4987_v19 = vshrl.u32 %v677_v18, 7 }
 0x169   : > { %1389 = vmatprep.subr.mxu1 %v1208_v21  ;;  %4515 = vset.pattern.permute.xlu0 %v4825_v13  ;;  %v798_v13 = vld [vmem:[#allocation5 + $0x308] sm:$0xff] }
 0x16a   : > { %1390 = vmatpush2.msra.mxu1 %v1207_v23  ;;  %1930 = vperm.xlu0 %4515, %v1919_v12   ;;  %v679_v20 = vsub.s32 0, %v4987_v19  ;;  %v683_v21 = vsub.s32 1, %v4987_v19  ;;  %v688_v23 = vld [vmem:[%s5958_s3] sm:$0x3]  ;;  %v796_v12 = vld [vmem:[#allocation5 + $0x2f8] sm:$0xff] }
 0x16b   : > { %1391 = vmatprep.subr.mxu1 %v1190_v26 }
 0x16c   : > { %1392 = vmatpush2.msra.mxu1 %v1189_v28  ;;  %v680_v25 = vrot.slane %v675_v22, %v679_v20  ;;  %v684_v26 = vrot.slane %v675_v22, %v683_v21  ;;  %v693_v28 = vrot.slane %v688_v23, %v679_v20  ;;  %v697_v29 = vrot.slane %v688_v23, %v683_v21  ;;  %v777_v20 = vld [vmem:[#allocation5 + $0x260] sm:$0xff]  ;;  %v779_v21 = vld [vmem:[#allocation5 + $0x270] sm:$0xff]  ;;  %v760_v22 = vld [vmem:[#allocation5 + $0x1d8] sm:$0xff] }
 0x16d   : > { %1393 = vmatprep.subr.mxu1 %v1172_v30  ;;  %v762_v23 = vld [vmem:[#allocation5 + $0x1e8] sm:$0xff] }
 0x16e   : > { %1394 = vmatpush2.msra.mxu1 %v1171_v32  ;;  %v685_v32 = vcombine.low %v680_v25, %v684_v26  ;;  %v759_v25 = vld [vmem:[#allocation5 + $0x1d0] sm:$0xff]  ;;  %v761_v26 = vld [vmem:[#allocation5 + $0x1e0] sm:$0xff] }
 0x16f   : > { %1395 = vmatprep.subr.mxu1 %v1154_v34  ;;  %v698_v34 = vcombine.low %v693_v28, %v697_v29  ;;  %v744_v28 = vld [vmem:[#allocation5 + $0x158] sm:$0xff]  ;;  %v741_v29 = vld [vmem:[#allocation5 + $0x140] sm:$0xff] }
 0x170   : > { %1396 = vmatpush2.msra.mxu1 %v1153_v36 }
 0x171   : > { %1397 = vmatprep.subr.mxu1 %v1136_v38  ;;  %v975_v38 = vld [vmem:[#allocation5 + $0x890] sm:$0xff] }
 0x172   : > { %1398 = vmatpush2.msra.mxu1 %v1135_v40  ;;  %v958_v40 = vld [vmem:[#allocation5 + $0x808] sm:$0xff] }
 0x173   : > { %1399 = vmatprep.subr.mxu1 %v1118_v43  ;;  %v959_v43 = vld [vmem:[#allocation5 + $0x810] sm:$0xff] }
 0x174   : > { %1400 = vmatpush2.msra.mxu1 %v1117_v45  ;;  %v942_v45 = vld [vmem:[#allocation5 + $0x788] sm:$0xff] }
 0x175   : > { %1401 = vmatprep.subr.mxu1 %v1100_v47  ;;  %v941_v47 = vld [vmem:[#allocation5 + $0x780] sm:$0xff] }
 0x176   : > { %1402 = vmatpush2.msra.mxu1 %v1099_v49  ;;  %v924_v49 = vld [vmem:[#allocation5 + $0x6f8] sm:$0xff] }
 0x177   : > { %1403 = vmatprep.subr.mxu1 %v1082_v51  ;;  %v923_v51 = vld [vmem:[#allocation5 + $0x6f0] sm:$0xff] }
 0x178   : > { %1404 = vmatpush2.msra.mxu1 %v1081_v52  ;;  %v906_v52 = vld [vmem:[#allocation5 + $0x668] sm:$0xff] }
 0x179   : > { %1405 = vmatprep.subr.mxu1 %v1064_v54  ;;  %v905_v54 = vld [vmem:[#allocation5 + $0x660] sm:$0xff] }
 0x17a   : > { %1406 = vmatpush2.msra.mxu1 %v1063_v56  ;;  %v888_v56 = vld [vmem:[#allocation5 + $0x5d8] sm:$0xff] }
 0x17b   : > { %1407 = vmatprep.subr.mxu1 %v1046_v58  ;;  %v887_v58 = vld [vmem:[#allocation5 + $0x5d0] sm:$0xff] }
 0x17c   : > { %1408 = vmatpush2.msra.mxu1 %v1045_v60  ;;  %v870_v60 = vld [vmem:[#allocation5 + $0x548] sm:$0xff] }
 0x17d   : > { %1409 = vmatprep.subr.mxu1 %v1028_v62  ;;  %v869_v62 = vld [vmem:[#allocation5 + $0x540] sm:$0xff] }
 0x17e   : > { %1410 = vmatpush2.msra.mxu1 %v1027_v0  ;;  %v852_v0 = vld [vmem:[#allocation5 + $0x4b8] sm:$0xff] }
 0x17f   : > { %1411 = vmatprep.subr.mxu1 %v1010_v2  ;;  %v851_v2 = vld [vmem:[#allocation5 + $0x4b0] sm:$0xff] }
 0x180   : > { %1412 = vmatpush2.msra.mxu1 %v1009_v4  ;;  %v834_v4 = vld [vmem:[#allocation5 + $0x428] sm:$0xff] }
 0x181   : > { %1413 = vmatprep.subr.mxu1 %v992_v6  ;;  %v833_v6 = vld [vmem:[#allocation5 + $0x420] sm:$0xff] }
 0x182   : > { %1414 = vmatpush2.msra.mxu1 %v991_v8  ;;  %v816_v8 = vld [vmem:[#allocation5 + $0x398] sm:$0xff] }
 0x183   : > { %1493 = vmatprep.subr.mxu1 %v978_v10  ;;  %v815_v10 = vld [vmem:[#allocation5 + $0x390] sm:$0xff] }
 0x203   : > { %v663_v14 = vpop.f32.mrf.mxu1 }
 0x204   : > { %v664_v15 = vadd.f32 1e-05, %v663_v14  ;;  %v795_v14 = vld [vmem:[#allocation5 + $0x2f0] sm:$0xff] }
 0x205   : > { %v665_v16 = vpop.f32.mrf.mxu1 }
 0x206   : > { %v666_v17 = vadd.f32 1e-05, %v665_v16  ;;  %4526 = vrsqrt.f32 %v664_v15  ;;  %v797_v15 = vld [vmem:[#allocation5 + $0x300] sm:$0xff]  ;;  %v778_v16 = vld [vmem:[#allocation5 + $0x268] sm:$0xff] }
 0x208   : > { %4528 = vrsqrt.f32 %v666_v17  ;;  %v780_v17 = vld [vmem:[#allocation5 + $0x278] sm:$0xff] }
 0x213   : > { %v4527_v27 = vpop.eup %4526 }
 0x215   : > { %v4529_v30 = vpop.eup %4528 }
 0x216   : > { %v672_v31 = vcombine.low %v4527_v27, %v4529_v30  ;;  %v742_v27 = vld [vmem:[#allocation5 + $0x148] sm:$0xff]  ;;  %v743_v30 = vld [vmem:[#allocation5 + $0x150] sm:$0xff] }
 0x218   : > { %v674_v33 = vmul.f32 %v672_v31, %v4978_v42  ;;  %v960_v42 = vld [vmem:[#allocation5 + $0x818] sm:$0xff] }
 0x219   : > { %v724_v31 = vld [vmem:[#allocation5 + $0xb8] sm:$0xff] }
 0x21a   : > { %v687_v35 = vmul.f32 %v685_v32, %v674_v33  ;;  %v726_v32 = vld [vmem:[#allocation5 + $0xc8] sm:$0xff]  ;;  %v723_v33 = vld [vmem:[#allocation5 + $0xb0] sm:$0xff] }
 0x21c   : > { %v4998_v36 = vadd.f32 %v698_v34, %v687_v35  ;;  %v725_v34 = vld [vmem:[#allocation5 + $0xc0] sm:$0xff]  ;;  %v706_v35 = vld [vmem:[#allocation5 + $0x28] sm:$0xff] }
 0x21e   : > { %v5002_v37 = vcombine.high %v4998_v36, %v4998_v36 }
 0x220   : > { %1344 = vmatprep.mubr.f32.mxu0 %v5002_v37  ;;  %1415 = vmatprep.mubr.f32.mxu1 %v5002_v37 }
 0x221   : > { %1345 = vmatmul.mubr.f32.vlgmr.msra.gmra.mxu0 %v4998_v36  ;;  %1416 = vmatmul.mubr.f32.vlgmr.msra.gmra.mxu1 %v4998_v36 }
 0x222   : > { %1423 = vmatpush1.msra.mxu0 %v975_v38  ;;  %1494 = vmatpush1.msra.mxu1 %v977_v39  ;;  %v708_v38 = vld [vmem:[#allocation5 + $0x38] sm:$0xff]  ;;  %v705_v39 = vld [vmem:[#allocation5 + $0x20] sm:$0xff] }
 0x223   : > { %1424 = vmatprep.subr.mxu0 %v958_v40  ;;  %1486 = vmatprep.mubr.f32.mxu0 %v5002_v37  ;;  %v707_v40 = vld [vmem:[#allocation5 + $0x30] sm:$0xff] }
 0x224   : > { %1495 = vmatprep.subr.mxu1 %v960_v42  ;;  %1557 = vmatprep.mubr.f32.mxu1 %v5002_v37  ;;  %v1264_v42 = vld [vmem:[#allocation5 + $0x1198] sm:$0xff] }
 0x225   : > { %1425 = vmatpush1.msra.mxu0 %v957_v41  ;;  %1496 = vmatpush1.msra.mxu1 %v959_v43  ;;  %v1266_v41 = vld [vmem:[#allocation5 + $0x11a8] sm:$0xff]  ;;  %v1263_v43 = vld [vmem:[#allocation5 + $0x1190] sm:$0xff] }
 0x226   : > { %1426 = vmatprep.subr.mxu0 %v940_v44  ;;  %1497 = vmatprep.subr.mxu1 %v942_v45  ;;  %v1265_v44 = vld [vmem:[#allocation5 + $0x11a0] sm:$0xff]  ;;  %v1246_v45 = vld [vmem:[#allocation5 + $0x1108] sm:$0xff] }
 0x227   : > { %1427 = vmatpush1.msra.mxu0 %v939_v46  ;;  %1498 = vmatpush1.msra.mxu1 %v941_v47  ;;  %v1248_v46 = vld [vmem:[#allocation5 + $0x1118] sm:$0xff]  ;;  %v1245_v47 = vld [vmem:[#allocation5 + $0x1100] sm:$0xff] }
 0x228   : > { %1428 = vmatprep.subr.mxu0 %v922_v48  ;;  %1499 = vmatprep.subr.mxu1 %v924_v49  ;;  %v1247_v48 = vld [vmem:[#allocation5 + $0x1110] sm:$0xff]  ;;  %v1228_v49 = vld [vmem:[#allocation5 + $0x1078] sm:$0xff] }
 0x229   : > { %1429 = vmatpush1.msra.mxu0 %v921_v50  ;;  %1500 = vmatpush1.msra.mxu1 %v923_v51  ;;  %v1230_v50 = vld [vmem:[#allocation5 + $0x1088] sm:$0xff]  ;;  %v1227_v51 = vld [vmem:[#allocation5 + $0x1070] sm:$0xff] }
 0x22a   : > { %1430 = vmatprep.subr.mxu0 %v904_v24  ;;  %1501 = vmatprep.subr.mxu1 %v906_v52  ;;  %v1229_v24 = vld [vmem:[#allocation5 + $0x1080] sm:$0xff]  ;;  %v1210_v52 = vld [vmem:[#allocation5 + $0xfe8] sm:$0xff] }
 0x22b   : > { %1431 = vmatpush1.msra.mxu0 %v903_v53  ;;  %1502 = vmatpush1.msra.mxu1 %v905_v54  ;;  %v1212_v53 = vld [vmem:[#allocation5 + $0xff8] sm:$0xff]  ;;  %v1209_v54 = vld [vmem:[#allocation5 + $0xfe0] sm:$0xff] }
 0x22c   : > { %1432 = vmatprep.subr.mxu0 %v886_v55  ;;  %1503 = vmatprep.subr.mxu1 %v888_v56  ;;  %v1211_v55 = vld [vmem:[#allocation5 + $0xff0] sm:$0xff]  ;;  %v1192_v56 = vld [vmem:[#allocation5 + $0xf58] sm:$0xff] }
 0x22d   : > { %1433 = vmatpush1.msra.mxu0 %v885_v57  ;;  %1504 = vmatpush1.msra.mxu1 %v887_v58  ;;  %v1194_v57 = vld [vmem:[#allocation5 + $0xf68] sm:$0xff]  ;;  %v1191_v58 = vld [vmem:[#allocation5 + $0xf50] sm:$0xff] }
 0x22e   : > { %1434 = vmatprep.subr.mxu0 %v868_v59  ;;  %1505 = vmatprep.subr.mxu1 %v870_v60  ;;  %v1193_v59 = vld [vmem:[#allocation5 + $0xf60] sm:$0xff]  ;;  %v1174_v60 = vld [vmem:[#allocation5 + $0xec8] sm:$0xff] }
 0x22f   : > { %1435 = vmatpush1.msra.mxu0 %v867_v61  ;;  %1506 = vmatpush1.msra.mxu1 %v869_v62  ;;  %v1176_v61 = vld [vmem:[#allocation5 + $0xed8] sm:$0xff]  ;;  %v1173_v62 = vld [vmem:[#allocation5 + $0xec0] sm:$0xff] }
 0x230   : > { %1436 = vmatprep.subr.mxu0 %v850_v63  ;;  %1507 = vmatprep.subr.mxu1 %v852_v0  ;;  %v1175_v63 = vld [vmem:[#allocation5 + $0xed0] sm:$0xff]  ;;  %v1156_v0 = vld [vmem:[#allocation5 + $0xe38] sm:$0xff] }
 0x231   : > { %1437 = vmatpush1.msra.mxu0 %v849_v1  ;;  %1508 = vmatpush1.msra.mxu1 %v851_v2  ;;  %v1158_v1 = vld [vmem:[#allocation5 + $0xe48] sm:$0xff]  ;;  %v1155_v2 = vld [vmem:[#allocation5 + $0xe30] sm:$0xff] }
 0x232   : > { %1438 = vmatprep.subr.mxu0 %v832_v3  ;;  %1509 = vmatprep.subr.mxu1 %v834_v4  ;;  %v1157_v3 = vld [vmem:[#allocation5 + $0xe40] sm:$0xff]  ;;  %v1138_v4 = vld [vmem:[#allocation5 + $0xda8] sm:$0xff] }
 0x233   : > { %1439 = vmatpush1.msra.mxu0 %v831_v5  ;;  %1510 = vmatpush1.msra.mxu1 %v833_v6  ;;  %v1140_v5 = vld [vmem:[#allocation5 + $0xdb8] sm:$0xff]  ;;  %v1137_v6 = vld [vmem:[#allocation5 + $0xda0] sm:$0xff] }
 0x234   : > { %1440 = vmatprep.subr.mxu0 %v814_v7  ;;  %1511 = vmatprep.subr.mxu1 %v816_v8  ;;  %v1139_v7 = vld [vmem:[#allocation5 + $0xdb0] sm:$0xff]  ;;  %v1120_v8 = vld [vmem:[#allocation5 + $0xd18] sm:$0xff] }
 0x235   : > { %1441 = vmatpush1.msra.mxu0 %v813_v9  ;;  %1512 = vmatpush1.msra.mxu1 %v815_v10  ;;  %v1122_v9 = vld [vmem:[#allocation5 + $0xd28] sm:$0xff]  ;;  %v1119_v10 = vld [vmem:[#allocation5 + $0xd10] sm:$0xff] }
 0x236   : > { %1442 = vmatprep.subr.mxu0 %v796_v12  ;;  %1513 = vmatprep.subr.mxu1 %v798_v13  ;;  %v1121_v12 = vld [vmem:[#allocation5 + $0xd20] sm:$0xff]  ;;  %v1102_v13 = vld [vmem:[#allocation5 + $0xc88] sm:$0xff] }
 0x237   : > { %1443 = vmatpush1.msra.mxu0 %v795_v14  ;;  %1514 = vmatpush1.msra.mxu1 %v797_v15  ;;  %v1104_v14 = vld [vmem:[#allocation5 + $0xc98] sm:$0xff]  ;;  %v1101_v15 = vld [vmem:[#allocation5 + $0xc80] sm:$0xff] }
 0x238   : > { %1444 = vmatprep.subr.mxu0 %v778_v16  ;;  %1515 = vmatprep.subr.mxu1 %v780_v17  ;;  %v1103_v16 = vld [vmem:[#allocation5 + $0xc90] sm:$0xff]  ;;  %v1084_v17 = vld [vmem:[#allocation5 + $0xbf8] sm:$0xff] }
 0x239   : > { %1445 = vmatpush1.msra.mxu0 %v777_v20  ;;  %1516 = vmatpush1.msra.mxu1 %v779_v21  ;;  %v1086_v20 = vld [vmem:[#allocation5 + $0xc08] sm:$0xff]  ;;  %v1083_v21 = vld [vmem:[#allocation5 + $0xbf0] sm:$0xff] }
 0x23a   : > { %1446 = vmatprep.subr.mxu0 %v760_v22  ;;  %1517 = vmatprep.subr.mxu1 %v762_v23  ;;  %v1085_v22 = vld [vmem:[#allocation5 + $0xc00] sm:$0xff]  ;;  %v1066_v23 = vld [vmem:[#allocation5 + $0xb68] sm:$0xff] }
 0x23b   : > { %1447 = vmatpush1.msra.mxu0 %v759_v25  ;;  %1518 = vmatpush1.msra.mxu1 %v761_v26  ;;  %v1068_v25 = vld [vmem:[#allocation5 + $0xb78] sm:$0xff]  ;;  %v1065_v26 = vld [vmem:[#allocation5 + $0xb60] sm:$0xff] }
 0x23c   : > { %1448 = vmatprep.subr.mxu0 %v742_v27  ;;  %1519 = vmatprep.subr.mxu1 %v744_v28  ;;  %v1067_v27 = vld [vmem:[#allocation5 + $0xb70] sm:$0xff]  ;;  %v1048_v28 = vld [vmem:[#allocation5 + $0xad8] sm:$0xff] }
 0x23d   : > { %1449 = vmatpush1.msra.mxu0 %v741_v29  ;;  %1520 = vmatpush1.msra.mxu1 %v743_v30  ;;  %v1050_v29 = vld [vmem:[#allocation5 + $0xae8] sm:$0xff]  ;;  %v1047_v30 = vld [vmem:[#allocation5 + $0xad0] sm:$0xff] }
 0x23e   : > { %1450 = vmatprep.subr.mxu0 %v724_v31  ;;  %1521 = vmatprep.subr.mxu1 %v726_v32  ;;  %v1049_v31 = vld [vmem:[#allocation5 + $0xae0] sm:$0xff]  ;;  %v1030_v32 = vld [vmem:[#allocation5 + $0xa48] sm:$0xff] }
 0x23f   : > { %1451 = vmatpush1.msra.mxu0 %v723_v33  ;;  %1522 = vmatpush1.msra.mxu1 %v725_v34  ;;  %v1032_v33 = vld [vmem:[#allocation5 + $0xa58] sm:$0xff]  ;;  %v1029_v34 = vld [vmem:[#allocation5 + $0xa40] sm:$0xff] }
 0x240   : > { %1452 = vmatprep.subr.mxu0 %v706_v35  ;;  %1523 = vmatprep.subr.mxu1 %v708_v38  ;;  %v1031_v35 = vld [vmem:[#allocation5 + $0xa50] sm:$0xff]  ;;  %v1012_v38 = vld [vmem:[#allocation5 + $0x9b8] sm:$0xff] }
 0x241   : > { %1453 = vmatpush1.msra.mxu0 %v705_v39  ;;  %1524 = vmatpush1.msra.mxu1 %v707_v40  ;;  %v1014_v39 = vld [vmem:[#allocation5 + $0x9c8] sm:$0xff]  ;;  %v1011_v40 = vld [vmem:[#allocation5 + $0x9b0] sm:$0xff] }
 0x242   : > { %1454 = vmatprep.subr.mxu0 %v1264_v42  ;;  %1525 = vmatprep.subr.mxu1 %v1266_v41  ;;  %v1013_v42 = vld [vmem:[#allocation5 + $0x9c0] sm:$0xff]  ;;  %v994_v41 = vld [vmem:[#allocation5 + $0x928] sm:$0xff] }
 0x243   : > { %1455 = vmatpush2.msra.mxu0 %v1263_v43  ;;  %1526 = vmatpush2.msra.mxu1 %v1265_v44  ;;  %v996_v43 = vld [vmem:[#allocation5 + $0x938] sm:$0xff]  ;;  %v993_v44 = vld [vmem:[#allocation5 + $0x920] sm:$0xff] }
 0x244   : > { %1456 = vmatprep.subr.mxu0 %v1246_v45  ;;  %1527 = vmatprep.subr.mxu1 %v1248_v46  ;;  %v995_v45 = vld [vmem:[#allocation5 + $0x930] sm:$0xff]  ;;  %v980_v46 = vld [vmem:[#allocation5 + $0x8b8] sm:$0xff] }
 0x245   : > { %1457 = vmatpush2.msra.mxu0 %v1245_v47  ;;  %1528 = vmatpush2.msra.mxu1 %v1247_v48  ;;  %v982_v47 = vld [vmem:[#allocation5 + $0x8c8] sm:$0xff]  ;;  %v979_v48 = vld [vmem:[#allocation5 + $0x8b0] sm:$0xff] }
 0x246   : > { %1458 = vmatprep.subr.mxu0 %v1228_v49  ;;  %1529 = vmatprep.subr.mxu1 %v1230_v50  ;;  %v981_v49 = vld [vmem:[#allocation5 + $0x8c0] sm:$0xff]  ;;  %v962_v50 = vld [vmem:[#allocation5 + $0x828] sm:$0xff] }
 0x247   : > { %1459 = vmatpush2.msra.mxu0 %v1227_v51  ;;  %1530 = vmatpush2.msra.mxu1 %v1229_v24  ;;  %v964_v51 = vld [vmem:[#allocation5 + $0x838] sm:$0xff]  ;;  %v961_v24 = vld [vmem:[#allocation5 + $0x820] sm:$0xff] }
 0x248   : > { %1460 = vmatprep.subr.mxu0 %v1210_v52  ;;  %1531 = vmatprep.subr.mxu1 %v1212_v53  ;;  %v963_v52 = vld [vmem:[#allocation5 + $0x830] sm:$0xff]  ;;  %v944_v53 = vld [vmem:[#allocation5 + $0x798] sm:$0xff] }
 0x249   : > { %1461 = vmatpush2.msra.mxu0 %v1209_v54  ;;  %1532 = vmatpush2.msra.mxu1 %v1211_v55  ;;  %v946_v54 = vld [vmem:[#allocation5 + $0x7a8] sm:$0xff]  ;;  %v943_v55 = vld [vmem:[#allocation5 + $0x790] sm:$0xff] }
 0x24a   : > { %1462 = vmatprep.subr.mxu0 %v1192_v56  ;;  %1533 = vmatprep.subr.mxu1 %v1194_v57  ;;  %v945_v56 = vld [vmem:[#allocation5 + $0x7a0] sm:$0xff]  ;;  %v926_v57 = vld [vmem:[#allocation5 + $0x708] sm:$0xff] }
 0x24b   : > { %1463 = vmatpush2.msra.mxu0 %v1191_v58  ;;  %1534 = vmatpush2.msra.mxu1 %v1193_v59  ;;  %v928_v58 = vld [vmem:[#allocation5 + $0x718] sm:$0xff]  ;;  %v925_v59 = vld [vmem:[#allocation5 + $0x700] sm:$0xff] }
 0x24c   : > { %1464 = vmatprep.subr.mxu0 %v1174_v60  ;;  %1535 = vmatprep.subr.mxu1 %v1176_v61  ;;  %v927_v60 = vld [vmem:[#allocation5 + $0x710] sm:$0xff]  ;;  %v908_v61 = vld [vmem:[#allocation5 + $0x678] sm:$0xff] }
 0x24d   : > { %1465 = vmatpush2.msra.mxu0 %v1173_v62  ;;  %1536 = vmatpush2.msra.mxu1 %v1175_v63  ;;  %v910_v62 = vld [vmem:[#allocation5 + $0x688] sm:$0xff]  ;;  %v907_v63 = vld [vmem:[#allocation5 + $0x670] sm:$0xff] }
 0x24e   : > { %1466 = vmatprep.subr.mxu0 %v1156_v0  ;;  %1537 = vmatprep.subr.mxu1 %v1158_v1  ;;  %v909_v0 = vld [vmem:[#allocation5 + $0x680] sm:$0xff]  ;;  %v890_v1 = vld [vmem:[#allocation5 + $0x5e8] sm:$0xff] }
 0x24f   : > { %1467 = vmatpush2.msra.mxu0 %v1155_v2  ;;  %1538 = vmatpush2.msra.mxu1 %v1157_v3  ;;  %v892_v2 = vld [vmem:[#allocation5 + $0x5f8] sm:$0xff]  ;;  %v889_v3 = vld [vmem:[#allocation5 + $0x5e0] sm:$0xff] }
 0x250   : > { %1468 = vmatprep.subr.mxu0 %v1138_v4  ;;  %1539 = vmatprep.subr.mxu1 %v1140_v5  ;;  %v891_v4 = vld [vmem:[#allocation5 + $0x5f0] sm:$0xff]  ;;  %v872_v5 = vld [vmem:[#allocation5 + $0x558] sm:$0xff] }
 0x251   : > { %1469 = vmatpush2.msra.mxu0 %v1137_v6  ;;  %1540 = vmatpush2.msra.mxu1 %v1139_v7  ;;  %v874_v6 = vld [vmem:[#allocation5 + $0x568] sm:$0xff]  ;;  %v871_v7 = vld [vmem:[#allocation5 + $0x550] sm:$0xff] }
 0x252   : > { %1470 = vmatprep.subr.mxu0 %v1120_v8  ;;  %1541 = vmatprep.subr.mxu1 %v1122_v9  ;;  %v873_v8 = vld [vmem:[#allocation5 + $0x560] sm:$0xff]  ;;  %v854_v9 = vld [vmem:[#allocation5 + $0x4c8] sm:$0xff] }
 0x253   : > { %1471 = vmatpush2.msra.mxu0 %v1119_v10  ;;  %1542 = vmatpush2.msra.mxu1 %v1121_v12  ;;  %v856_v10 = vld [vmem:[#allocation5 + $0x4d8] sm:$0xff]  ;;  %v853_v12 = vld [vmem:[#allocation5 + $0x4c0] sm:$0xff] }
 0x254   : > { %1472 = vmatprep.subr.mxu0 %v1102_v13  ;;  %1543 = vmatprep.subr.mxu1 %v1104_v14  ;;  %v855_v13 = vld [vmem:[#allocation5 + $0x4d0] sm:$0xff]  ;;  %v836_v14 = vld [vmem:[#allocation5 + $0x438] sm:$0xff] }
 0x255   : > { %1473 = vmatpush2.msra.mxu0 %v1101_v15  ;;  %1544 = vmatpush2.msra.mxu1 %v1103_v16  ;;  %v838_v15 = vld [vmem:[#allocation5 + $0x448] sm:$0xff]  ;;  %v835_v16 = vld [vmem:[#allocation5 + $0x430] sm:$0xff] }
 0x256   : > { %1474 = vmatprep.subr.mxu0 %v1084_v17  ;;  %1545 = vmatprep.subr.mxu1 %v1086_v20  ;;  %v837_v17 = vld [vmem:[#allocation5 + $0x440] sm:$0xff]  ;;  %v818_v20 = vld [vmem:[#allocation5 + $0x3a8] sm:$0xff] }
 0x257   : > { %1475 = vmatpush2.msra.mxu0 %v1083_v21  ;;  %1546 = vmatpush2.msra.mxu1 %v1085_v22  ;;  %v820_v21 = vld [vmem:[#allocation5 + $0x3b8] sm:$0xff]  ;;  %v817_v22 = vld [vmem:[#allocation5 + $0x3a0] sm:$0xff] }
 0x258   : > { %1476 = vmatprep.subr.mxu0 %v1066_v23  ;;  %1547 = vmatprep.subr.mxu1 %v1068_v25  ;;  %v819_v23 = vld [vmem:[#allocation5 + $0x3b0] sm:$0xff]  ;;  %v800_v25 = vld [vmem:[#allocation5 + $0x318] sm:$0xff] }
 0x259   : > { %1477 = vmatpush2.msra.mxu0 %v1065_v26  ;;  %1548 = vmatpush2.msra.mxu1 %v1067_v27  ;;  %v802_v26 = vld [vmem:[#allocation5 + $0x328] sm:$0xff]  ;;  %v799_v27 = vld [vmem:[#allocation5 + $0x310] sm:$0xff] }
 0x25a   : > { %1478 = vmatprep.subr.mxu0 %v1048_v28  ;;  %1549 = vmatprep.subr.mxu1 %v1050_v29  ;;  %v801_v28 = vld [vmem:[#allocation5 + $0x320] sm:$0xff]  ;;  %v782_v29 = vld [vmem:[#allocation5 + $0x288] sm:$0xff] }
 0x25b   : > { %1479 = vmatpush2.msra.mxu0 %v1047_v30  ;;  %1550 = vmatpush2.msra.mxu1 %v1049_v31  ;;  %v784_v30 = vld [vmem:[#allocation5 + $0x298] sm:$0xff]  ;;  %v781_v31 = vld [vmem:[#allocation5 + $0x280] sm:$0xff] }
 0x25c   : > { %1480 = vmatprep.subr.mxu0 %v1030_v32  ;;  %1551 = vmatprep.subr.mxu1 %v1032_v33  ;;  %v783_v32 = vld [vmem:[#allocation5 + $0x290] sm:$0xff]  ;;  %v764_v33 = vld [vmem:[#allocation5 + $0x1f8] sm:$0xff] }
 0x25d   : > { %1481 = vmatpush2.msra.mxu0 %v1029_v34  ;;  %1552 = vmatpush2.msra.mxu1 %v1031_v35  ;;  %v766_v34 = vld [vmem:[#allocation5 + $0x208] sm:$0xff]  ;;  %v763_v35 = vld [vmem:[#allocation5 + $0x1f0] sm:$0xff] }
 0x25e   : > { %1482 = vmatprep.subr.mxu0 %v1012_v38  ;;  %1553 = vmatprep.subr.mxu1 %v1014_v39  ;;  %v765_v38 = vld [vmem:[#allocation5 + $0x200] sm:$0xff]  ;;  %v746_v39 = vld [vmem:[#allocation5 + $0x168] sm:$0xff] }
 0x25f   : > { %1483 = vmatpush2.msra.mxu0 %v1011_v40  ;;  %1554 = vmatpush2.msra.mxu1 %v1013_v42  ;;  %v748_v40 = vld [vmem:[#allocation5 + $0x178] sm:$0xff]  ;;  %v745_v42 = vld [vmem:[#allocation5 + $0x160] sm:$0xff] }
 0x260   : > { %1484 = vmatprep.subr.mxu0 %v994_v41  ;;  %1555 = vmatprep.subr.mxu1 %v996_v43  ;;  %v747_v41 = vld [vmem:[#allocation5 + $0x170] sm:$0xff]  ;;  %v728_v43 = vld [vmem:[#allocation5 + $0xd8] sm:$0xff] }
 0x261   : > { %1485 = vmatpush2.msra.mxu0 %v993_v44  ;;  %1556 = vmatpush2.msra.mxu1 %v995_v45  ;;  %v730_v44 = vld [vmem:[#allocation5 + $0xe8] sm:$0xff]  ;;  %v727_v45 = vld [vmem:[#allocation5 + $0xd0] sm:$0xff] }
 0x262   : > { %1487 = vmatmul.mubr.f32.vlgmr.msra.gmra.mxu0 %v4998_v36  ;;  %1558 = vmatmul.mubr.f32.vlgmr.msra.gmra.mxu1 %v4998_v36 }
 0x263   : > { %1564 = vmatprep.subr.mxu0 %v980_v46  ;;  %1635 = vmatprep.subr.mxu1 %v982_v47  ;;  %v729_v46 = vld [vmem:[#allocation5 + $0xe0] sm:$0xff]  ;;  %v710_v47 = vld [vmem:[#allocation5 + $0x48] sm:$0xff] }
 0x264   : > { %1565 = vmatpush1.msra.mxu0 %v979_v48  ;;  %1628 = vmatprep.mubr.f32.mxu0 %v5002_v37  ;;  %v712_v48 = vld [vmem:[#allocation5 + $0x58] sm:$0xff] }
 0x265   : > { %1636 = vmatpush1.msra.mxu1 %v981_v49  ;;  %1699 = vmatprep.mubr.f32.mxu1 %v5002_v37  ;;  %v709_v49 = vld [vmem:[#allocation5 + $0x40] sm:$0xff] }
 0x266   : > { %1566 = vmatprep.subr.mxu0 %v962_v50  ;;  %1637 = vmatprep.subr.mxu1 %v964_v51  ;;  %v711_v50 = vld [vmem:[#allocation5 + $0x50] sm:$0xff]  ;;  %v1268_v51 = vld [vmem:[#allocation5 + $0x11b8] sm:$0xff] }
 0x267   : > { %1567 = vmatpush1.msra.mxu0 %v961_v24  ;;  %1638 = vmatpush1.msra.mxu1 %v963_v52  ;;  %v1270_v24 = vld [vmem:[#allocation5 + $0x11c8] sm:$0xff]  ;;  %v1267_v52 = vld [vmem:[#allocation5 + $0x11b0] sm:$0xff] }
 0x268   : > { %1568 = vmatprep.subr.mxu0 %v944_v53  ;;  %1639 = vmatprep.subr.mxu1 %v946_v54  ;;  %v1269_v53 = vld [vmem:[#allocation5 + $0x11c0] sm:$0xff]  ;;  %v1250_v54 = vld [vmem:[#allocation5 + $0x1128] sm:$0xff] }
 0x269   : > { %1569 = vmatpush1.msra.mxu0 %v943_v55  ;;  %1640 = vmatpush1.msra.mxu1 %v945_v56  ;;  %v1252_v55 = vld [vmem:[#allocation5 + $0x1138] sm:$0xff]  ;;  %v1249_v56 = vld [vmem:[#allocation5 + $0x1120] sm:$0xff] }
 0x26a   : > { %1570 = vmatprep.subr.mxu0 %v926_v57  ;;  %1641 = vmatprep.subr.mxu1 %v928_v58  ;;  %v1251_v57 = vld [vmem:[#allocation5 + $0x1130] sm:$0xff]  ;;  %v1232_v58 = vld [vmem:[#allocation5 + $0x1098] sm:$0xff] }
 0x26b   : > { %1571 = vmatpush1.msra.mxu0 %v925_v59  ;;  %1642 = vmatpush1.msra.mxu1 %v927_v60  ;;  %v1234_v59 = vld [vmem:[#allocation5 + $0x10a8] sm:$0xff]  ;;  %v1231_v60 = vld [vmem:[#allocation5 + $0x1090] sm:$0xff] }
 0x26c   : > { %1572 = vmatprep.subr.mxu0 %v908_v61  ;;  %1643 = vmatprep.subr.mxu1 %v910_v62  ;;  %v1233_v61 = vld [vmem:[#allocation5 + $0x10a0] sm:$0xff]  ;;  %v1214_v62 = vld [vmem:[#allocation5 + $0x1008] sm:$0xff] }
 0x26d   : > { %1573 = vmatpush1.msra.mxu0 %v907_v63  ;;  %1644 = vmatpush1.msra.mxu1 %v909_v0  ;;  %v1216_v63 = vld [vmem:[#allocation5 + $0x1018] sm:$0xff]  ;;  %v1213_v0 = vld [vmem:[#allocation5 + $0x1000] sm:$0xff] }
 0x26e   : > { %1574 = vmatprep.subr.mxu0 %v890_v1  ;;  %1645 = vmatprep.subr.mxu1 %v892_v2  ;;  %v1215_v1 = vld [vmem:[#allocation5 + $0x1010] sm:$0xff]  ;;  %v1196_v2 = vld [vmem:[#allocation5 + $0xf78] sm:$0xff] }
 0x26f   : > { %1575 = vmatpush1.msra.mxu0 %v889_v3  ;;  %1646 = vmatpush1.msra.mxu1 %v891_v4  ;;  %v1198_v3 = vld [vmem:[#allocation5 + $0xf88] sm:$0xff]  ;;  %v1195_v4 = vld [vmem:[#allocation5 + $0xf70] sm:$0xff] }
 0x270   : > { %1576 = vmatprep.subr.mxu0 %v872_v5  ;;  %1647 = vmatprep.subr.mxu1 %v874_v6  ;;  %v1197_v5 = vld [vmem:[#allocation5 + $0xf80] sm:$0xff]  ;;  %v1178_v6 = vld [vmem:[#allocation5 + $0xee8] sm:$0xff] }
 0x271   : > { %1577 = vmatpush1.msra.mxu0 %v871_v7  ;;  %1648 = vmatpush1.msra.mxu1 %v873_v8  ;;  %v1180_v7 = vld [vmem:[#allocation5 + $0xef8] sm:$0xff]  ;;  %v1177_v8 = vld [vmem:[#allocation5 + $0xee0] sm:$0xff] }
 0x272   : > { %1578 = vmatprep.subr.mxu0 %v854_v9  ;;  %1649 = vmatprep.subr.mxu1 %v856_v10  ;;  %v1179_v9 = vld [vmem:[#allocation5 + $0xef0] sm:$0xff]  ;;  %v1160_v10 = vld [vmem:[#allocation5 + $0xe58] sm:$0xff] }
 0x273   : > { %1579 = vmatpush1.msra.mxu0 %v853_v12  ;;  %1650 = vmatpush1.msra.mxu1 %v855_v13  ;;  %v1162_v12 = vld [vmem:[#allocation5 + $0xe68] sm:$0xff]  ;;  %v1159_v13 = vld [vmem:[#allocation5 + $0xe50] sm:$0xff] }
 0x274   : > { %1580 = vmatprep.subr.mxu0 %v836_v14  ;;  %1651 = vmatprep.subr.mxu1 %v838_v15  ;;  %v1161_v14 = vld [vmem:[#allocation5 + $0xe60] sm:$0xff]  ;;  %v1142_v15 = vld [vmem:[#allocation5 + $0xdc8] sm:$0xff] }
 0x275   : > { %1581 = vmatpush1.msra.mxu0 %v835_v16  ;;  %1652 = vmatpush1.msra.mxu1 %v837_v17  ;;  %v1144_v16 = vld [vmem:[#allocation5 + $0xdd8] sm:$0xff]  ;;  %v1141_v17 = vld [vmem:[#allocation5 + $0xdc0] sm:$0xff] }
 0x276   : > { %1582 = vmatprep.subr.mxu0 %v818_v20  ;;  %1653 = vmatprep.subr.mxu1 %v820_v21  ;;  %v1143_v20 = vld [vmem:[#allocation5 + $0xdd0] sm:$0xff]  ;;  %v1124_v21 = vld [vmem:[#allocation5 + $0xd38] sm:$0xff] }
 0x277   : > { %1583 = vmatpush1.msra.mxu0 %v817_v22  ;;  %1654 = vmatpush1.msra.mxu1 %v819_v23  ;;  %v1126_v22 = vld [vmem:[#allocation5 + $0xd48] sm:$0xff]  ;;  %v1123_v23 = vld [vmem:[#allocation5 + $0xd30] sm:$0xff] }
 0x278   : > { %1584 = vmatprep.subr.mxu0 %v800_v25  ;;  %1655 = vmatprep.subr.mxu1 %v802_v26  ;;  %v1125_v25 = vld [vmem:[#allocation5 + $0xd40] sm:$0xff]  ;;  %v1106_v26 = vld [vmem:[#allocation5 + $0xca8] sm:$0xff] }
 0x279   : > { %1585 = vmatpush1.msra.mxu0 %v799_v27  ;;  %1656 = vmatpush1.msra.mxu1 %v801_v28  ;;  %v1108_v27 = vld [vmem:[#allocation5 + $0xcb8] sm:$0xff]  ;;  %v1105_v28 = vld [vmem:[#allocation5 + $0xca0] sm:$0xff] }
 0x27a   : > { %1586 = vmatprep.subr.mxu0 %v782_v29  ;;  %1657 = vmatprep.subr.mxu1 %v784_v30  ;;  %v1107_v29 = vld [vmem:[#allocation5 + $0xcb0] sm:$0xff]  ;;  %v1088_v30 = vld [vmem:[#allocation5 + $0xc18] sm:$0xff] }
 0x27b   : > { %1587 = vmatpush1.msra.mxu0 %v781_v31  ;;  %1658 = vmatpush1.msra.mxu1 %v783_v32  ;;  %v1090_v31 = vld [vmem:[#allocation5 + $0xc28] sm:$0xff]  ;;  %v1087_v32 = vld [vmem:[#allocation5 + $0xc10] sm:$0xff] }
 0x27c   : > { %1588 = vmatprep.subr.mxu0 %v764_v33  ;;  %1659 = vmatprep.subr.mxu1 %v766_v34  ;;  %v1089_v33 = vld [vmem:[#allocation5 + $0xc20] sm:$0xff]  ;;  %v1070_v34 = vld [vmem:[#allocation5 + $0xb88] sm:$0xff] }
 0x27d   : > { %1589 = vmatpush1.msra.mxu0 %v763_v35  ;;  %1660 = vmatpush1.msra.mxu1 %v765_v38  ;;  %v1072_v35 = vld [vmem:[#allocation5 + $0xb98] sm:$0xff]  ;;  %v1069_v38 = vld [vmem:[#allocation5 + $0xb80] sm:$0xff] }
 0x27e   : > { %1590 = vmatprep.subr.mxu0 %v746_v39  ;;  %1661 = vmatprep.subr.mxu1 %v748_v40  ;;  %v1071_v39 = vld [vmem:[#allocation5 + $0xb90] sm:$0xff]  ;;  %v1052_v40 = vld [vmem:[#allocation5 + $0xaf8] sm:$0xff] }
 0x27f   : > { %1591 = vmatpush1.msra.mxu0 %v745_v42  ;;  %1662 = vmatpush1.msra.mxu1 %v747_v41  ;;  %v1054_v42 = vld [vmem:[#allocation5 + $0xb08] sm:$0xff]  ;;  %v1051_v41 = vld [vmem:[#allocation5 + $0xaf0] sm:$0xff] }
 0x280   : > { %1592 = vmatprep.subr.mxu0 %v728_v43  ;;  %1663 = vmatprep.subr.mxu1 %v730_v44  ;;  %v1053_v43 = vld [vmem:[#allocation5 + $0xb00] sm:$0xff]  ;;  %v1034_v44 = vld [vmem:[#allocation5 + $0xa68] sm:$0xff] }
 0x281   : > { %1593 = vmatpush1.msra.mxu0 %v727_v45  ;;  %1664 = vmatpush1.msra.mxu1 %v729_v46  ;;  %v1036_v45 = vld [vmem:[#allocation5 + $0xa78] sm:$0xff]  ;;  %v1033_v46 = vld [vmem:[#allocation5 + $0xa60] sm:$0xff] }
 0x282   : > { %1594 = vmatprep.subr.mxu0 %v710_v47  ;;  %1665 = vmatprep.subr.mxu1 %v712_v48  ;;  %v1035_v47 = vld [vmem:[#allocation5 + $0xa70] sm:$0xff]  ;;  %v1016_v48 = vld [vmem:[#allocation5 + $0x9d8] sm:$0xff] }
 0x283   : > { %1595 = vmatpush1.msra.mxu0 %v709_v49  ;;  %1666 = vmatpush1.msra.mxu1 %v711_v50  ;;  %v1018_v49 = vld [vmem:[#allocation5 + $0x9e8] sm:$0xff]  ;;  %v1015_v50 = vld [vmem:[#allocation5 + $0x9d0] sm:$0xff] }
 0x284   : > { %1596 = vmatprep.subr.mxu0 %v1268_v51  ;;  %1667 = vmatprep.subr.mxu1 %v1270_v24  ;;  %v1017_v51 = vld [vmem:[#allocation5 + $0x9e0] sm:$0xff]  ;;  %v998_v24 = vld [vmem:[#allocation5 + $0x948] sm:$0xff] }
 0x285   : > { %1597 = vmatpush2.msra.mxu0 %v1267_v52  ;;  %1668 = vmatpush2.msra.mxu1 %v1269_v53  ;;  %v1000_v52 = vld [vmem:[#allocation5 + $0x958] sm:$0xff]  ;;  %v997_v53 = vld [vmem:[#allocation5 + $0x940] sm:$0xff] }
 0x286   : > { %1598 = vmatprep.subr.mxu0 %v1250_v54  ;;  %1669 = vmatprep.subr.mxu1 %v1252_v55  ;;  %v999_v54 = vld [vmem:[#allocation5 + $0x950] sm:$0xff]  ;;  %v4826_v55 = vmov 2  }
 0x287   : > { %1599 = vmatpush2.msra.mxu0 %v1249_v56  ;;  %1670 = vmatpush2.msra.mxu1 %v1251_v57  ;;  %v984_v56 = vld [vmem:[#allocation5 + $0x8d8] sm:$0xff]  ;;  %v986_v57 = vld [vmem:[#allocation5 + $0x8e8] sm:$0xff] }
 0x288   : > { %1600 = vmatprep.subr.mxu0 %v1232_v58  ;;  %1671 = vmatprep.subr.mxu1 %v1234_v59  ;;  %v5017_v58 = vld [vmem:[%s5961_s6] sm:$0xf]  ;;  %v983_v59 = vld [vmem:[#allocation5 + $0x8d0] sm:$0xff] }
 0x289   : > { %1601 = vmatpush2.msra.mxu0 %v1231_v60  ;;  %1672 = vmatpush2.msra.mxu1 %v1233_v61  ;;  %v985_v60 = vld [vmem:[#allocation5 + $0x8e0] sm:$0xff]  ;;  %v966_v61 = vld [vmem:[#allocation5 + $0x848] sm:$0xff] }
 0x28a   : > { %1602 = vmatprep.subr.mxu0 %v1214_v62  ;;  %1673 = vmatprep.subr.mxu1 %v1216_v63  ;;  %v968_v62 = vld [vmem:[#allocation5 + $0x858] sm:$0xff]  ;;  %v965_v63 = vld [vmem:[#allocation5 + $0x840] sm:$0xff] }
 0x28b   : > { %1603 = vmatpush2.msra.mxu0 %v1213_v0  ;;  %1674 = vmatpush2.msra.mxu1 %v1215_v1  ;;  %v967_v0 = vld [vmem:[#allocation5 + $0x850] sm:$0xff]  ;;  %v948_v1 = vld [vmem:[#allocation5 + $0x7b8] sm:$0xff] }
 0x28c   : > { %1604 = vmatprep.subr.mxu0 %v1196_v2  ;;  %1675 = vmatprep.subr.mxu1 %v1198_v3  ;;  %v950_v2 = vld [vmem:[#allocation5 + $0x7c8] sm:$0xff]  ;;  %v947_v3 = vld [vmem:[#allocation5 + $0x7b0] sm:$0xff] }
 0x28d   : > { %1605 = vmatpush2.msra.mxu0 %v1195_v4  ;;  %1676 = vmatpush2.msra.mxu1 %v1197_v5  ;;  %v949_v4 = vld [vmem:[#allocation5 + $0x7c0] sm:$0xff]  ;;  %v4827_v5 = vmov 3  }
 0x28e   : > { %1606 = vmatprep.subr.mxu0 %v1178_v6  ;;  %1677 = vmatprep.subr.mxu1 %v1180_v7  ;;  %v930_v6 = vld [vmem:[#allocation5 + $0x728] sm:$0xff]  ;;  %v932_v7 = vld [vmem:[#allocation5 + $0x738] sm:$0xff] }
 0x28f   : > { %1607 = vmatpush2.msra.mxu0 %v1177_v8  ;;  %1678 = vmatpush2.msra.mxu1 %v1179_v9  ;;  %v929_v8 = vld [vmem:[#allocation5 + $0x720] sm:$0xff]  ;;  %v931_v9 = vld [vmem:[#allocation5 + $0x730] sm:$0xff] }
 0x290   : > { %1608 = vmatprep.subr.mxu0 %v1160_v10  ;;  %1679 = vmatprep.subr.mxu1 %v1162_v12  ;;  %v912_v10 = vld [vmem:[#allocation5 + $0x698] sm:$0xff]  ;;  %v914_v12 = vld [vmem:[#allocation5 + $0x6a8] sm:$0xff] }
 0x291   : > { %1609 = vmatpush2.msra.mxu0 %v1159_v13  ;;  %1680 = vmatpush2.msra.mxu1 %v1161_v14  ;;  %v911_v13 = vld [vmem:[#allocation5 + $0x690] sm:$0xff]  ;;  %v913_v14 = vld [vmem:[#allocation5 + $0x6a0] sm:$0xff] }
 0x292   : > { %1610 = vmatprep.subr.mxu0 %v1142_v15  ;;  %1681 = vmatprep.subr.mxu1 %v1144_v16  ;;  %v894_v15 = vld [vmem:[#allocation5 + $0x608] sm:$0xff]  ;;  %v896_v16 = vld [vmem:[#allocation5 + $0x618] sm:$0xff] }
 0x293   : > { %1611 = vmatpush2.msra.mxu0 %v1141_v17  ;;  %1682 = vmatpush2.msra.mxu1 %v1143_v20  ;;  %v893_v17 = vld [vmem:[#allocation5 + $0x600] sm:$0xff]  ;;  %v895_v20 = vld [vmem:[#allocation5 + $0x610] sm:$0xff] }
 0x294   : > { %1612 = vmatprep.subr.mxu0 %v1124_v21  ;;  %1683 = vmatprep.subr.mxu1 %v1126_v22  ;;  %v876_v21 = vld [vmem:[#allocation5 + $0x578] sm:$0xff]  ;;  %v878_v22 = vld [vmem:[#allocation5 + $0x588] sm:$0xff] }
 0x295   : > { %1613 = vmatpush2.msra.mxu0 %v1123_v23  ;;  %1684 = vmatpush2.msra.mxu1 %v1125_v25  ;;  %v875_v23 = vld [vmem:[#allocation5 + $0x570] sm:$0xff]  ;;  %v877_v25 = vld [vmem:[#allocation5 + $0x580] sm:$0xff] }
 0x296   : > { %1614 = vmatprep.subr.mxu0 %v1106_v26  ;;  %1685 = vmatprep.subr.mxu1 %v1108_v27  ;;  %v858_v26 = vld [vmem:[#allocation5 + $0x4e8] sm:$0xff]  ;;  %v860_v27 = vld [vmem:[#allocation5 + $0x4f8] sm:$0xff] }
 0x297   : > { %1615 = vmatpush2.msra.mxu0 %v1105_v28  ;;  %1686 = vmatpush2.msra.mxu1 %v1107_v29  ;;  %v857_v28 = vld [vmem:[#allocation5 + $0x4e0] sm:$0xff]  ;;  %v859_v29 = vld [vmem:[#allocation5 + $0x4f0] sm:$0xff] }
 0x298   : > { %1616 = vmatprep.subr.mxu0 %v1088_v30  ;;  %1687 = vmatprep.subr.mxu1 %v1090_v31  ;;  %v840_v30 = vld [vmem:[#allocation5 + $0x458] sm:$0xff]  ;;  %v842_v31 = vld [vmem:[#allocation5 + $0x468] sm:$0xff] }
 0x299   : > { %1617 = vmatpush2.msra.mxu0 %v1087_v32  ;;  %1688 = vmatpush2.msra.mxu1 %v1089_v33  ;;  %v839_v32 = vld [vmem:[#allocation5 + $0x450] sm:$0xff]  ;;  %v841_v33 = vld [vmem:[#allocation5 + $0x460] sm:$0xff] }
 0x29a   : > { %1618 = vmatprep.subr.mxu0 %v1070_v34  ;;  %1689 = vmatprep.subr.mxu1 %v1072_v35  ;;  %v822_v34 = vld [vmem:[#allocation5 + $0x3c8] sm:$0xff]  ;;  %v824_v35 = vld [vmem:[#allocation5 + $0x3d8] sm:$0xff] }
 0x29b   : > { %1619 = vmatpush2.msra.mxu0 %v1069_v38  ;;  %1690 = vmatpush2.msra.mxu1 %v1071_v39  ;;  %v821_v38 = vld [vmem:[#allocation5 + $0x3c0] sm:$0xff]  ;;  %v823_v39 = vld [vmem:[#allocation5 + $0x3d0] sm:$0xff] }
 0x29c   : > { %1620 = vmatprep.subr.mxu0 %v1052_v40  ;;  %1691 = vmatprep.subr.mxu1 %v1054_v42  ;;  %v804_v40 = vld [vmem:[#allocation5 + $0x338] sm:$0xff]  ;;  %v806_v42 = vld [vmem:[#allocation5 + $0x348] sm:$0xff] }
 0x29d   : > { %1621 = vmatpush2.msra.mxu0 %v1051_v41  ;;  %1692 = vmatpush2.msra.mxu1 %v1053_v43  ;;  %v803_v41 = vld [vmem:[#allocation5 + $0x330] sm:$0xff]  ;;  %v805_v43 = vld [vmem:[#allocation5 + $0x340] sm:$0xff] }
 0x29e   : > { %1622 = vmatprep.subr.mxu0 %v1034_v44  ;;  %1693 = vmatprep.subr.mxu1 %v1036_v45  ;;  %v786_v44 = vld [vmem:[#allocation5 + $0x2a8] sm:$0xff]  ;;  %v788_v45 = vld [vmem:[#allocation5 + $0x2b8] sm:$0xff] }
 0x29f   : > { %1623 = vmatpush2.msra.mxu0 %v1033_v46  ;;  %1694 = vmatpush2.msra.mxu1 %v1035_v47  ;;  %v785_v46 = vld [vmem:[#allocation5 + $0x2a0] sm:$0xff]  ;;  %v787_v47 = vld [vmem:[#allocation5 + $0x2b0] sm:$0xff] }
 0x2a0   : > { %1624 = vmatprep.subr.mxu0 %v1016_v48  ;;  %1695 = vmatprep.subr.mxu1 %v1018_v49  ;;  %v768_v48 = vld [vmem:[#allocation5 + $0x218] sm:$0xff]  ;;  %v770_v49 = vld [vmem:[#allocation5 + $0x228] sm:$0xff] }
 0x2a1   : > { %1625 = vmatpush2.msra.mxu0 %v1015_v50  ;;  %1696 = vmatpush2.msra.mxu1 %v1017_v51  ;;  %v767_v50 = vld [vmem:[#allocation5 + $0x210] sm:$0xff]  ;;  %v769_v51 = vld [vmem:[#allocation5 + $0x220] sm:$0xff] }
 0x2a2   : > { %1626 = vmatprep.subr.mxu0 %v998_v24  ;;  %1697 = vmatprep.subr.mxu1 %v1000_v52  ;;  %v750_v24 = vld [vmem:[#allocation5 + $0x188] sm:$0xff]  ;;  %v752_v52 = vld [vmem:[#allocation5 + $0x198] sm:$0xff] }
 0x2a3   : > { %4516 = vset.pattern.permute.xlu1 %v4826_v55  ;;  %1627 = vmatpush2.msra.mxu0 %v997_v53  ;;  %v749_v53 = vld [vmem:[#allocation5 + $0x180] sm:$0xff]  ;;  %v732_v55 = vld [vmem:[#allocation5 + $0xf8] sm:$0xff] }
 0x2a4   : > { %1698 = vmatpush2.msra.mxu1 %v999_v54  ;;  %1938 = vperm.xlu1 %4516, %v5017_v58   ;;  %v751_v54 = vld [vmem:[#allocation5 + $0x190] sm:$0xff] }
 0x2a5   : > { %1629 = vmatmul.mubr.f32.vlgmr.msra.gmra.mxu0 %v4998_v36  ;;  %1700 = vmatmul.mubr.f32.vlgmr.msra.gmra.mxu1 %v4998_v36 }
 0x2a6   : > { %1706 = vmatprep.subr.mxu0 %v984_v56  ;;  %1777 = vmatprep.subr.mxu1 %v986_v57  ;;  %v734_v56 = vld [vmem:[#allocation5 + $0x108] sm:$0xff]  ;;  %v731_v57 = vld [vmem:[#allocation5 + $0xf0] sm:$0xff] }
 0x2a7   : > { %1707 = vmatpush1.msra.mxu0 %v983_v59  ;;  %1770 = vmatprep.mubr.f32.mxu0 %v5002_v37  ;;  %v733_v59 = vld [vmem:[#allocation5 + $0x100] sm:$0xff] }
 0x2a8   : > { %1778 = vmatpush1.msra.mxu1 %v985_v60  ;;  %1841 = vmatprep.mubr.f32.mxu1 %v5002_v37  ;;  %v714_v60 = vld [vmem:[#allocation5 + $0x68] sm:$0xff] }
 0x2a9   : > { %1708 = vmatprep.subr.mxu0 %v966_v61  ;;  %1779 = vmatprep.subr.mxu1 %v968_v62  ;;  %v716_v61 = vld [vmem:[#allocation5 + $0x78] sm:$0xff]  ;;  %v713_v62 = vld [vmem:[#allocation5 + $0x60] sm:$0xff] }
 0x2aa   : > { %1709 = vmatpush1.msra.mxu0 %v965_v63  ;;  %1780 = vmatpush1.msra.mxu1 %v967_v0  ;;  %v715_v63 = vld [vmem:[#allocation5 + $0x70] sm:$0xff]  ;;  %v1272_v0 = vld [vmem:[#allocation5 + $0x11d8] sm:$0xff] }
 0x2ab   : > { %4517 = vset.pattern.permute.xlu1 %v4827_v5  ;;  %1710 = vmatprep.subr.mxu0 %v948_v1  ;;  %v1274_v1 = vld [vmem:[#allocation5 + $0x11e8] sm:$0xff]  ;;  %v1256_v5 = vld [vmem:[#allocation5 + $0x1158] sm:$0xff] }
 0x2ac   : > { %1781 = vmatprep.subr.mxu1 %v950_v2  ;;  %1946 = vperm.xlu1 %4517, %v5017_v58   ;;  %v1271_v2 = vld [vmem:[#allocation5 + $0x11d0] sm:$0xff] }
 0x2ad   : > { %1711 = vmatpush1.msra.mxu0 %v947_v3  ;;  %1782 = vmatpush1.msra.mxu1 %v949_v4  ;;  %v1273_v3 = vld [vmem:[#allocation5 + $0x11e0] sm:$0xff]  ;;  %v1254_v4 = vld [vmem:[#allocation5 + $0x1148] sm:$0xff] }
 0x2ae   : > { %1712 = vmatprep.subr.mxu0 %v930_v6  ;;  %1783 = vmatprep.subr.mxu1 %v932_v7  ;;  %v1253_v6 = vld [vmem:[#allocation5 + $0x1140] sm:$0xff]  ;;  %v1255_v7 = vld [vmem:[#allocation5 + $0x1150] sm:$0xff] }
 0x2af   : > { %1713 = vmatpush1.msra.mxu0 %v929_v8  ;;  %1784 = vmatpush1.msra.mxu1 %v931_v9  ;;  %v1236_v8 = vld [vmem:[#allocation5 + $0x10b8] sm:$0xff]  ;;  %v1238_v9 = vld [vmem:[#allocation5 + $0x10c8] sm:$0xff] }
 0x2b0   : > { %1714 = vmatprep.subr.mxu0 %v912_v10  ;;  %1785 = vmatprep.subr.mxu1 %v914_v12  ;;  %v1235_v10 = vld [vmem:[#allocation5 + $0x10b0] sm:$0xff]  ;;  %v1237_v12 = vld [vmem:[#allocation5 + $0x10c0] sm:$0xff] }
 0x2b1   : > { %1715 = vmatpush1.msra.mxu0 %v911_v13  ;;  %1786 = vmatpush1.msra.mxu1 %v913_v14  ;;  %v1218_v13 = vld [vmem:[#allocation5 + $0x1028] sm:$0xff]  ;;  %v1220_v14 = vld [vmem:[#allocation5 + $0x1038] sm:$0xff] }
 0x2b2   : > { %1716 = vmatprep.subr.mxu0 %v894_v15  ;;  %1787 = vmatprep.subr.mxu1 %v896_v16  ;;  %v1217_v15 = vld [vmem:[#allocation5 + $0x1020] sm:$0xff]  ;;  %v1219_v16 = vld [vmem:[#allocation5 + $0x1030] sm:$0xff] }
 0x2b3   : > { %1717 = vmatpush1.msra.mxu0 %v893_v17  ;;  %1788 = vmatpush1.msra.mxu1 %v895_v20  ;;  %v1200_v17 = vld [vmem:[#allocation5 + $0xf98] sm:$0xff]  ;;  %v1202_v20 = vld [vmem:[#allocation5 + $0xfa8] sm:$0xff] }
 0x2b4   : > { %1718 = vmatprep.subr.mxu0 %v876_v21  ;;  %1789 = vmatprep.subr.mxu1 %v878_v22  ;;  %v1199_v21 = vld [vmem:[#allocation5 + $0xf90] sm:$0xff]  ;;  %v1201_v22 = vld [vmem:[#allocation5 + $0xfa0] sm:$0xff] }
 0x2b5   : > { %1719 = vmatpush1.msra.mxu0 %v875_v23  ;;  %1790 = vmatpush1.msra.mxu1 %v877_v25  ;;  %v1182_v23 = vld [vmem:[#allocation5 + $0xf08] sm:$0xff]  ;;  %v1184_v25 = vld [vmem:[#allocation5 + $0xf18] sm:$0xff] }
 0x2b6   : > { %1720 = vmatprep.subr.mxu0 %v858_v26  ;;  %1791 = vmatprep.subr.mxu1 %v860_v27  ;;  %v1181_v26 = vld [vmem:[#allocation5 + $0xf00] sm:$0xff]  ;;  %v1183_v27 = vld [vmem:[#allocation5 + $0xf10] sm:$0xff] }
 0x2b7   : > { %1721 = vmatpush1.msra.mxu0 %v857_v28  ;;  %1792 = vmatpush1.msra.mxu1 %v859_v29  ;;  %v1164_v28 = vld [vmem:[#allocation5 + $0xe78] sm:$0xff]  ;;  %v1166_v29 = vld [vmem:[#allocation5 + $0xe88] sm:$0xff] }
 0x2b8   : > { %1722 = vmatprep.subr.mxu0 %v840_v30  ;;  %1793 = vmatprep.subr.mxu1 %v842_v31  ;;  %v1163_v30 = vld [vmem:[#allocation5 + $0xe70] sm:$0xff]  ;;  %v1165_v31 = vld [vmem:[#allocation5 + $0xe80] sm:$0xff] }
 0x2b9   : > { %1723 = vmatpush1.msra.mxu0 %v839_v32  ;;  %1794 = vmatpush1.msra.mxu1 %v841_v33  ;;  %v1146_v32 = vld [vmem:[#allocation5 + $0xde8] sm:$0xff]  ;;  %v1148_v33 = vld [vmem:[#allocation5 + $0xdf8] sm:$0xff] }
 0x2ba   : > { %1724 = vmatprep.subr.mxu0 %v822_v34  ;;  %1795 = vmatprep.subr.mxu1 %v824_v35  ;;  %v1145_v34 = vld [vmem:[#allocation5 + $0xde0] sm:$0xff]  ;;  %v1147_v35 = vld [vmem:[#allocation5 + $0xdf0] sm:$0xff] }
 0x2bb   : > { %1725 = vmatpush1.msra.mxu0 %v821_v38  ;;  %1796 = vmatpush1.msra.mxu1 %v823_v39  ;;  %v1128_v38 = vld [vmem:[#allocation5 + $0xd58] sm:$0xff]  ;;  %v1130_v39 = vld [vmem:[#allocation5 + $0xd68] sm:$0xff] }
 0x2bc   : > { %1726 = vmatprep.subr.mxu0 %v804_v40  ;;  %1797 = vmatprep.subr.mxu1 %v806_v42  ;;  %v1127_v40 = vld [vmem:[#allocation5 + $0xd50] sm:$0xff]  ;;  %v1129_v42 = vld [vmem:[#allocation5 + $0xd60] sm:$0xff] }
 0x2bd   : > { %1727 = vmatpush1.msra.mxu0 %v803_v41  ;;  %1798 = vmatpush1.msra.mxu1 %v805_v43  ;;  %v1110_v41 = vld [vmem:[#allocation5 + $0xcc8] sm:$0xff]  ;;  %v1112_v43 = vld [vmem:[#allocation5 + $0xcd8] sm:$0xff] }
 0x2be   : > { %1728 = vmatprep.subr.mxu0 %v786_v44  ;;  %1799 = vmatprep.subr.mxu1 %v788_v45  ;;  %v1109_v44 = vld [vmem:[#allocation5 + $0xcc0] sm:$0xff]  ;;  %v1111_v45 = vld [vmem:[#allocation5 + $0xcd0] sm:$0xff] }
 0x2bf   : > { %1729 = vmatpush1.msra.mxu0 %v785_v46  ;;  %1800 = vmatpush1.msra.mxu1 %v787_v47  ;;  %v1092_v46 = vld [vmem:[#allocation5 + $0xc38] sm:$0xff]  ;;  %v1094_v47 = vld [vmem:[#allocation5 + $0xc48] sm:$0xff] }
 0x2c0   : > { %1730 = vmatprep.subr.mxu0 %v768_v48  ;;  %1801 = vmatprep.subr.mxu1 %v770_v49  ;;  %v1091_v48 = vld [vmem:[#allocation5 + $0xc30] sm:$0xff]  ;;  %v1093_v49 = vld [vmem:[#allocation5 + $0xc40] sm:$0xff] }
 0x2c1   : > { %1731 = vmatpush1.msra.mxu0 %v767_v50  ;;  %1802 = vmatpush1.msra.mxu1 %v769_v51  ;;  %v1074_v50 = vld [vmem:[#allocation5 + $0xba8] sm:$0xff]  ;;  %v1076_v51 = vld [vmem:[#allocation5 + $0xbb8] sm:$0xff] }
 0x2c2   : > { %1732 = vmatprep.subr.mxu0 %v750_v24  ;;  %1803 = vmatprep.subr.mxu1 %v752_v52  ;;  %v1073_v24 = vld [vmem:[#allocation5 + $0xba0] sm:$0xff]  ;;  %v1075_v52 = vld [vmem:[#allocation5 + $0xbb0] sm:$0xff] }
 0x2c3   : > { %1733 = vmatpush1.msra.mxu0 %v749_v53  ;;  %1804 = vmatpush1.msra.mxu1 %v751_v54  ;;  %v1056_v53 = vld [vmem:[#allocation5 + $0xb18] sm:$0xff]  ;;  %v1058_v54 = vld [vmem:[#allocation5 + $0xb28] sm:$0xff] }
 0x2c4   : > { %1734 = vmatprep.subr.mxu0 %v732_v55  ;;  %1805 = vmatprep.subr.mxu1 %v734_v56  ;;  %v1055_v55 = vld [vmem:[#allocation5 + $0xb10] sm:$0xff]  ;;  %v1057_v56 = vld [vmem:[#allocation5 + $0xb20] sm:$0xff] }
 0x2c5   : > { %1735 = vmatpush1.msra.mxu0 %v731_v57  ;;  %1806 = vmatpush1.msra.mxu1 %v733_v59  ;;  %v1038_v57 = vld [vmem:[#allocation5 + $0xa88] sm:$0xff]  ;;  %v1040_v59 = vld [vmem:[#allocation5 + $0xa98] sm:$0xff] }
 0x2c6   : > { %1736 = vmatprep.subr.mxu0 %v714_v60  ;;  %1807 = vmatprep.subr.mxu1 %v716_v61  ;;  %v1037_v60 = vld [vmem:[#allocation5 + $0xa80] sm:$0xff]  ;;  %v1039_v61 = vld [vmem:[#allocation5 + $0xa90] sm:$0xff] }
 0x2c7   : > { %1737 = vmatpush1.msra.mxu0 %v713_v62  ;;  %1808 = vmatpush1.msra.mxu1 %v715_v63  ;;  %v1020_v62 = vld [vmem:[#allocation5 + $0x9f8] sm:$0xff]  ;;  %v1022_v63 = vld [vmem:[#allocation5 + $0xa08] sm:$0xff] }
 0x2c8   : > { %1738 = vmatprep.subr.mxu0 %v1272_v0  ;;  %1809 = vmatprep.subr.mxu1 %v1274_v1  ;;  %v1019_v0 = vld [vmem:[#allocation5 + $0x9f0] sm:$0xff]  ;;  %v1021_v1 = vld [vmem:[#allocation5 + $0xa00] sm:$0xff] }
 0x2c9   : > { %1739 = vmatpush2.msra.mxu0 %v1271_v2  ;;  %1810 = vmatpush2.msra.mxu1 %v1273_v3  ;;  %v1002_v2 = vld [vmem:[#allocation5 + $0x968] sm:$0xff]  ;;  %v1004_v3 = vld [vmem:[#allocation5 + $0x978] sm:$0xff] }
 0x2ca   : > { %1740 = vmatprep.subr.mxu0 %v1254_v4  ;;  %1811 = vmatprep.subr.mxu1 %v1256_v5  ;;  %v1001_v4 = vld [vmem:[#allocation5 + $0x960] sm:$0xff]  ;;  %v1003_v5 = vld [vmem:[#allocation5 + $0x970] sm:$0xff] }
 0x2cb   : > { %1741 = vmatpush2.msra.mxu0 %v1253_v6  ;;  %1812 = vmatpush2.msra.mxu1 %v1255_v7  ;;  %v988_v6 = vld [vmem:[#allocation5 + $0x8f8] sm:$0xff]  ;;  %v987_v7 = vld [vmem:[#allocation5 + $0x8f0] sm:$0xff] }
 0x2cc   : > { %1742 = vmatprep.subr.mxu0 %v1236_v8  ;;  %1813 = vmatprep.subr.mxu1 %v1238_v9  ;;  %v970_v8 = vld [vmem:[#allocation5 + $0x868] sm:$0xff]  ;;  %v969_v9 = vld [vmem:[#allocation5 + $0x860] sm:$0xff] }
 0x2cd   : > { %1743 = vmatpush2.msra.mxu0 %v1235_v10  ;;  %1814 = vmatpush2.msra.mxu1 %v1237_v12  ;;  %v4828_v10 = vmov 4   ;;  %v952_v12 = vld [vmem:[#allocation5 + $0x7d8] sm:$0xff] }
 0x2ce   : > { %1744 = vmatprep.subr.mxu0 %v1218_v13  ;;  %1815 = vmatprep.subr.mxu1 %v1220_v14  ;;  %v4829_v13 = vmov 5   ;;  %v951_v14 = vld [vmem:[#allocation5 + $0x7d0] sm:$0xff] }
 0x2cf   : > { %1745 = vmatpush2.msra.mxu0 %v1217_v15  ;;  %1816 = vmatpush2.msra.mxu1 %v1219_v16  ;;  %v934_v15 = vld [vmem:[#allocation5 + $0x748] sm:$0xff]  ;;  %v933_v16 = vld [vmem:[#allocation5 + $0x740] sm:$0xff] }
 0x2d0   : > { %1746 = vmatprep.subr.mxu0 %v1200_v17  ;;  %1817 = vmatprep.subr.mxu1 %v1202_v20  ;;  %v916_v17 = vld [vmem:[#allocation5 + $0x6b8] sm:$0xff]  ;;  %v898_v20 = vld [vmem:[#allocation5 + $0x628] sm:$0xff] }
 0x2d1   : > { %1747 = vmatpush2.msra.mxu0 %v1199_v21  ;;  %1818 = vmatpush2.msra.mxu1 %v1201_v22  ;;  %v4830_v21 = vmov 6   ;;  %v897_v22 = vld [vmem:[#allocation5 + $0x620] sm:$0xff] }
 0x2d2   : > { %1748 = vmatprep.subr.mxu0 %v1182_v23  ;;  %1819 = vmatprep.subr.mxu1 %v1184_v25  ;;  %v880_v23 = vld [vmem:[#allocation5 + $0x598] sm:$0xff]  ;;  %v4831_v25 = vmov 8  }
 0x2d3   : > { %1749 = vmatpush2.msra.mxu0 %v1181_v26  ;;  %1820 = vmatpush2.msra.mxu1 %v1183_v27  ;;  %v879_v26 = vld [vmem:[#allocation5 + $0x590] sm:$0xff]  ;;  %v862_v27 = vld [vmem:[#allocation5 + $0x508] sm:$0xff] }
 0x2d4   : > { %1750 = vmatprep.subr.mxu0 %v1164_v28  ;;  %1821 = vmatprep.subr.mxu1 %v1166_v29  ;;  %v861_v28 = vld [vmem:[#allocation5 + $0x500] sm:$0xff]  ;;  %v4832_v29 = vmov 7  }
 0x2d5   : > { %1751 = vmatpush2.msra.mxu0 %v1163_v30  ;;  %1822 = vmatpush2.msra.mxu1 %v1165_v31  ;;  %v844_v30 = vld [vmem:[#allocation5 + $0x478] sm:$0xff]  ;;  %v843_v31 = vld [vmem:[#allocation5 + $0x470] sm:$0xff] }
 0x2d6   : > { %1752 = vmatprep.subr.mxu0 %v1146_v32  ;;  %1823 = vmatprep.subr.mxu1 %v1148_v33  ;;  %v826_v32 = vld [vmem:[#allocation5 + $0x3e8] sm:$0xff]  ;;  %v825_v33 = vld [vmem:[#allocation5 + $0x3e0] sm:$0xff] }
 0x2d7   : > { %1753 = vmatpush2.msra.mxu0 %v1145_v34  ;;  %1824 = vmatpush2.msra.mxu1 %v1147_v35  ;;  %v808_v34 = vld [vmem:[#allocation5 + $0x358] sm:$0xff]  ;;  %v807_v35 = vld [vmem:[#allocation5 + $0x350] sm:$0xff] }
 0x2d8   : > { %1754 = vmatprep.subr.mxu0 %v1128_v38  ;;  %1825 = vmatprep.subr.mxu1 %v1130_v39  ;;  %v790_v38 = vld [vmem:[#allocation5 + $0x2c8] sm:$0xff]  ;;  %v789_v39 = vld [vmem:[#allocation5 + $0x2c0] sm:$0xff] }
 0x2d9   : > { %1755 = vmatpush2.msra.mxu0 %v1127_v40  ;;  %1826 = vmatpush2.msra.mxu1 %v1129_v42  ;;  %v771_v40 = vld [vmem:[#allocation5 + $0x230] sm:$0xff]  ;;  %v754_v42 = vld [vmem:[#allocation5 + $0x1a8] sm:$0xff] }
 0x2da   : > { %1756 = vmatprep.subr.mxu0 %v1110_v41  ;;  %1827 = vmatprep.subr.mxu1 %v1112_v43  ;;  %v753_v41 = vld [vmem:[#allocation5 + $0x1a0] sm:$0xff]  ;;  %v736_v43 = vld [vmem:[#allocation5 + $0x118] sm:$0xff] }
 0x2db   : > { %1757 = vmatpush2.msra.mxu0 %v1109_v44  ;;  %1828 = vmatpush2.msra.mxu1 %v1111_v45  ;;  %v735_v44 = vld [vmem:[#allocation5 + $0x110] sm:$0xff]  ;;  %v717_v45 = vld [vmem:[#allocation5 + $0x80] sm:$0xff] }
 0x2dc   : > { %1758 = vmatprep.subr.mxu0 %v1092_v46  ;;  %1829 = vmatprep.subr.mxu1 %v1094_v47  ;;  %v1276_v46 = vld [vmem:[#allocation5 + $0x11f8] sm:$0xff]  ;;  %v1275_v47 = vld [vmem:[#allocation5 + $0x11f0] sm:$0xff] }
 0x2dd   : > { %1759 = vmatpush2.msra.mxu0 %v1091_v48  ;;  %1830 = vmatpush2.msra.mxu1 %v1093_v49  ;;  %v1258_v48 = vld [vmem:[#allocation5 + $0x1168] sm:$0xff]  ;;  %v1257_v49 = vld [vmem:[#allocation5 + $0x1160] sm:$0xff] }
 0x2de   : > { %1760 = vmatprep.subr.mxu0 %v1074_v50  ;;  %1831 = vmatprep.subr.mxu1 %v1076_v51  ;;  %v1240_v50 = vld [vmem:[#allocation5 + $0x10d8] sm:$0xff]  ;;  %v1239_v51 = vld [vmem:[#allocation5 + $0x10d0] sm:$0xff] }
 0x2df   : > { %1761 = vmatpush2.msra.mxu0 %v1073_v24  ;;  %1832 = vmatpush2.msra.mxu1 %v1075_v52  ;;  %v1222_v24 = vld [vmem:[#allocation5 + $0x1048] sm:$0xff]  ;;  %v1221_v52 = vld [vmem:[#allocation5 + $0x1040] sm:$0xff] }
 0x2e0   : > { %1762 = vmatprep.subr.mxu0 %v1056_v53  ;;  %1833 = vmatprep.subr.mxu1 %v1058_v54  ;;  %v1204_v53 = vld [vmem:[#allocation5 + $0xfb8] sm:$0xff]  ;;  %v1203_v54 = vld [vmem:[#allocation5 + $0xfb0] sm:$0xff] }
 0x2e1   : > { %1763 = vmatpush2.msra.mxu0 %v1055_v55  ;;  %1834 = vmatpush2.msra.mxu1 %v1057_v56  ;;  %v1186_v55 = vld [vmem:[#allocation5 + $0xf28] sm:$0xff]  ;;  %v1185_v56 = vld [vmem:[#allocation5 + $0xf20] sm:$0xff] }
 0x2e2   : > { %1764 = vmatprep.subr.mxu0 %v1038_v57  ;;  %1835 = vmatprep.subr.mxu1 %v1040_v59  ;;  %v1168_v57 = vld [vmem:[#allocation5 + $0xe98] sm:$0xff]  ;;  %v1167_v59 = vld [vmem:[#allocation5 + $0xe90] sm:$0xff] }
 0x2e3   : > { %1765 = vmatpush2.msra.mxu0 %v1037_v60  ;;  %1836 = vmatpush2.msra.mxu1 %v1039_v61  ;;  %v1150_v60 = vld [vmem:[#allocation5 + $0xe08] sm:$0xff]  ;;  %v1149_v61 = vld [vmem:[#allocation5 + $0xe00] sm:$0xff] }
 0x2e4   : > { %1766 = vmatprep.subr.mxu0 %v1020_v62  ;;  %1837 = vmatprep.subr.mxu1 %v1022_v63  ;;  %v1132_v62 = vld [vmem:[#allocation5 + $0xd78] sm:$0xff]  ;;  %v1131_v63 = vld [vmem:[#allocation5 + $0xd70] sm:$0xff] }
 0x2e5   : > { %1767 = vmatpush2.msra.mxu0 %v1019_v0  ;;  %1838 = vmatpush2.msra.mxu1 %v1021_v1  ;;  %v1114_v0 = vld [vmem:[#allocation5 + $0xce8] sm:$0xff]  ;;  %v1113_v1 = vld [vmem:[#allocation5 + $0xce0] sm:$0xff] }
 0x2e6   : > { %1768 = vmatprep.subr.mxu0 %v1002_v2  ;;  %1839 = vmatprep.subr.mxu1 %v1004_v3  ;;  %v1096_v2 = vld [vmem:[#allocation5 + $0xc58] sm:$0xff]  ;;  %v1095_v3 = vld [vmem:[#allocation5 + $0xc50] sm:$0xff] }
 0x2e7   : > { %1769 = vmatpush2.msra.mxu0 %v1001_v4  ;;  %1840 = vmatpush2.msra.mxu1 %v1003_v5  ;;  %v1078_v4 = vld [vmem:[#allocation5 + $0xbc8] sm:$0xff]  ;;  %v1077_v5 = vld [vmem:[#allocation5 + $0xbc0] sm:$0xff] }
 0x2e8   : > { %1771 = vmatmul.mubr.f32.vlgmr.msra.gmra.mxu0 %v4998_v36  ;;  %1842 = vmatmul.mubr.f32.vlgmr.msra.gmra.mxu1 %v4998_v36 }
 0x2e9   : > { %1848 = vmatprep.subr.mxu0 %v988_v6  ;;  %1912 = vmatprep.mubr.f32.mxu0 %v5002_v37  ;;  %v915_v37 = vld [vmem:[#allocation5 + $0x6b0] sm:$0xff]  ;;  %v1060_v6 = vld [vmem:[#allocation5 + $0xb38] sm:$0xff] }
 0x2ea   : > { %1849 = vmatpush1.msra.mxu0 %v987_v7  ;;  %4518 = vset.pattern.permute.xlu1 %v4828_v10  ;;  %v1059_v7 = vld [vmem:[#allocation5 + $0xb30] sm:$0xff]  ;;  %v1024_v10 = vld [vmem:[#allocation5 + $0xa18] sm:$0xff] }
 0x2eb   : > { %1850 = vmatprep.subr.mxu0 %v970_v8  ;;  %4519 = vset.pattern.permute.xlu0 %v4829_v13  ;;  %v1042_v8 = vld [vmem:[#allocation5 + $0xaa8] sm:$0xff] }
 0x2ec   : > { %1851 = vmatpush1.msra.mxu0 %v969_v9  ;;  %1954 = vperm.xlu1 %4518, %v5017_v58   ;;  %v1041_v9 = vld [vmem:[#allocation5 + $0xaa0] sm:$0xff]  ;;  %v1006_v13 = vld [vmem:[#allocation5 + $0x988] sm:$0xff] }
 0x2ed   : > { %1852 = vmatprep.subr.mxu0 %v952_v12  ;;  %1962 = vperm.xlu0 %4519, %v5017_v58   ;;  %v1023_v12 = vld [vmem:[#allocation5 + $0xa10] sm:$0xff] }
 0x2ee   : > { %1853 = vmatpush1.msra.mxu0 %v951_v14  ;;  %v1005_v14 = vld [vmem:[#allocation5 + $0x980] sm:$0xff] }
 0x2ef   : > { %1854 = vmatprep.subr.mxu0 %v934_v15  ;;  %v4833_v15 = vmov 0.0  }
 0x2f0   : > { %1855 = vmatpush1.msra.mxu0 %v933_v16  ;;  %4520 = vset.pattern.permute.xlu1 %v4830_v21  ;;  %v1995_v16 = vld [vmem:[%s5963_s8] sm:$0xff] }
 0x2f1   : > { %1856 = vmatprep.subr.mxu0 %v916_v17  ;;  %1970 = vperm.xlu1 %4520, %v5017_v58   ;;  %v1346_v17 = vpop.f32.mrf.mxu0 }
 0x2f2   : > { %1857 = vmatpush1.msra.mxu0 %v915_v37  ;;  %4522 = vset.pattern.permute.xlu0 %v4831_v25  ;;  %v1923_v37 = vpop.permute.xlu0 %1922 }
 0x2f3   : > { %1858 = vmatprep.subr.mxu0 %v898_v20  ;;  %1986 = vperm.xlu0 %4522, %v5017_v58   ;;  %v1417_v20 = vpop.f32.mrf.mxu1  ;;  %v1348_v21 = vpop.f32.mrf.mxu0 }
 0x2f4   : > { %1859 = vmatpush1.msra.mxu0 %v897_v22  ;;  %2091 = vmatprep.mubr.f32.mxu1 %v4833_v15 }
 0x2f5   : > { %1860 = vmatprep.subr.mxu0 %v880_v23  ;;  %4521 = vset.pattern.permute.xlu1 %v4832_v29  ;;  %v1419_v25 = vpop.f32.mrf.mxu1  ;;  %v1925_v29 = vmul.f32 %v1923_v37, %v1346_v17  ;;  %v1993_v17 = vld [vmem:[%s5962_s7] sm:$0xff] }
 0x2f6   : > { %1861 = vmatpush1.msra.mxu0 %v879_v26  ;;  %1978 = vperm.xlu1 %4521, %v5017_v58   ;;  %v772_v58 = vld [vmem:[#allocation5 + $0x238] sm:$0xff]  ;;  %v1931_v26 = vpop.permute.xlu0 %1930 }
 0x2f7   : > { %1862 = vmatprep.subr.mxu0 %v862_v27  ;;  %4524 = vset.pattern.permute.xlu0 %v4824_v11 }
 0x2f8   : > { %1863 = vmatpush1.msra.mxu0 %v861_v28  ;;  %v1934_v28 = vmul.f32 %v1931_v26, %v1419_v25 }
 0x2f9   : > { %1864 = vmatprep.subr.mxu0 %v844_v30  ;;  %v1933_v30 = vmul.f32 %v1931_v26, %v1417_v20  ;;  %v5056_v26 = vand.u32 127, %v677_v18  ;;  %v2111_v18 = vadd.s32 16, %v4987_v19 }
 0x2fa   : > { %1865 = vmatpush1.msra.mxu0 %v843_v31  ;;  %4523 = vset.pattern.permute.xlu1 %v4824_v11  ;;  %v718_v11 = vld [vmem:[#allocation5 + $0x88] sm:$0xff] }
 0x2fb   : > { %1866 = vmatprep.subr.mxu0 %v826_v32  ;;  %1999 = vperm.xlu1 %4523, %v1995_v16   ;;  %vm2144_vm2 = vcmp.eq.s32.totalorder %v4987_v19, %v5056_v26  ;;  %vm2148_vm4 = vcmp.eq.s32.totalorder %v2111_v18, %v5056_v26 }
 0x2fc   : > { %1867 = vmatpush1.msra.mxu0 %v825_v33 }
 0x2fd   : > { %1868 = vmatprep.subr.mxu0 %v808_v34 }
 0x2fe   : > { %1869 = vmatpush1.msra.mxu0 %v807_v35 }
 0x2ff   : > { %1870 = vmatprep.subr.mxu0 %v790_v38 }
 0x300   : > { %1871 = vmatpush1.msra.mxu0 %v789_v39  ;;  %v1935_v39 = vadd.f32 %v1933_v30, %v1925_v29 }
 0x301   : > { %1872 = vmatprep.subr.mxu0 %v772_v58 }
 0x302   : > { %1873 = vmatpush1.msra.mxu0 %v771_v40 }
 0x303   : > { %1874 = vmatprep.subr.mxu0 %v754_v42 }
 0x304   : > { %1875 = vmatpush1.msra.mxu0 %v753_v41 }
 0x305   : > { %1876 = vmatprep.subr.mxu0 %v736_v43 }
 0x306   : > { %1877 = vmatpush1.msra.mxu0 %v735_v44 }
 0x307   : > { %1878 = vmatprep.subr.mxu0 %v718_v11 }
 0x308   : > { %1879 = vmatpush1.msra.mxu0 %v717_v45 }
 0x309   : > { %1880 = vmatprep.subr.mxu0 %v1276_v46 }
 0x30a   : > { %1881 = vmatpush2.msra.mxu0 %v1275_v47 }
 0x30b   : > { %1882 = vmatprep.subr.mxu0 %v1258_v48 }
 0x30c   : > { %1883 = vmatpush2.msra.mxu0 %v1257_v49 }
 0x30d   : > { %1884 = vmatprep.subr.mxu0 %v1240_v50 }
 0x30e   : > { %1885 = vmatpush2.msra.mxu0 %v1239_v51 }
 0x30f   : > { %1886 = vmatprep.subr.mxu0 %v1222_v24 }
 0x310   : > { %1887 = vmatpush2.msra.mxu0 %v1221_v52 }
 0x311   : > { %1888 = vmatprep.subr.mxu0 %v1204_v53 }
 0x312   : > { %1889 = vmatpush2.msra.mxu0 %v1203_v54 }
 0x313   : > { %1890 = vmatprep.subr.mxu0 %v1186_v55 }
 0x314   : > { %1891 = vmatpush2.msra.mxu0 %v1185_v56 }
 0x315   : > { %1892 = vmatprep.subr.mxu0 %v1168_v57 }
 0x316   : > { %1893 = vmatpush2.msra.mxu0 %v1167_v59 }
 0x317   : > { %1894 = vmatprep.subr.mxu0 %v1150_v60 }
 0x318   : > { %1895 = vmatpush2.msra.mxu0 %v1149_v61 }
 0x319   : > { %1896 = vmatprep.subr.mxu0 %v1132_v62 }
 0x31a   : > { %1897 = vmatpush2.msra.mxu0 %v1131_v63 }
 0x31b   : > { %1898 = vmatprep.subr.mxu0 %v1114_v0 }
 0x31c   : > { %1899 = vmatpush2.msra.mxu0 %v1113_v1 }
 0x31d   : > { %1900 = vmatprep.subr.mxu0 %v1096_v2 }
 0x31e   : > { %1901 = vmatpush2.msra.mxu0 %v1095_v3 }
 0x31f   : > { %1902 = vmatprep.subr.mxu0 %v1078_v4  ;;  %v1939_v23 = vpop.permute.xlu1 %1938 }
 0x320   : > { %1903 = vmatpush2.msra.mxu0 %v1077_v5 }
 0x321   : > { %1904 = vmatprep.subr.mxu0 %v1060_v6 }
 0x322   : > { %1905 = vmatpush2.msra.mxu0 %v1059_v7  ;;  %v1488_v22 = vpop.f32.mrf.mxu0  ;;  %v1559_v31 = vpop.f32.mrf.mxu1 }
 0x323   : > { %1906 = vmatprep.subr.mxu0 %v1042_v8  ;;  %v1941_v35 = vmul.f32 %v1939_v23, %v1488_v22 }
 0x324   : > { %1907 = vmatpush2.msra.mxu0 %v1041_v9  ;;  %v1490_v27 = vpop.f32.mrf.mxu0  ;;  %v1561_v58 = vpop.f32.mrf.mxu1 }
 0x325   : > { %1908 = vmatprep.subr.mxu0 %v1024_v10  ;;  %v1942_v34 = vmul.f32 %v1939_v23, %v1490_v27  ;;  %v1943_v43 = vadd.f32 %v1941_v35, %v1935_v39  ;;  %v2113_v35 = vadd.s32 32, %v4987_v19  ;;  %v2115_v39 = vadd.s32 48, %v4987_v19 }
 0x326   : > { %1909 = vmatpush2.msra.mxu0 %v1023_v12 }
 0x327   : > { %1910 = vmatprep.subr.mxu0 %v1006_v13  ;;  %v1947_v33 = vpop.permute.xlu1 %1946  ;;  %vm2152_vm6 = vcmp.eq.s32.totalorder %v2113_v35, %v5056_v26  ;;  %vm2156_vm8 = vcmp.eq.s32.totalorder %v2115_v39, %v5056_v26 }
 0x328   : > { %1911 = vmatpush2.msra.mxu0 %v1005_v14  ;;  %v1950_v45 = vmul.f32 %v1947_v33, %v1561_v58  ;;  %v1949_v47 = vmul.f32 %v1947_v33, %v1559_v31  ;;  %v4834_v33 = vmov 1.0   ;;  %v2116_v58 = vadd.s32 56, %v4987_v19 }
 0x329   : > { %1913 = vmatmul.mubr.f32.vlgmr.msra.gmra.mxu0 %v4998_v36  ;;  %v1926_v36 = vmul.f32 %v1923_v37, %v1348_v21  ;;  %v1994_v37 = vld [vmem:[%s5962_s7 + $0x8] sm:$0xf] }
 0x32a   : > { %2085 = vmatprep.mubr.f32.mxu0 %v4833_v15  ;;  %v1951_v50 = vadd.f32 %v1949_v47, %v1943_v43  ;;  %vm2158_vm9 = vcmp.eq.s32.totalorder %v2116_v58, %v5056_v26  ;;  %v2120_v43 = vadd.s32 88, %v4987_v19  ;;  %v2125_v47 = vadd.s32 128, %v4987_v19 }
 0x32b   : > { %v1936_v38 = vadd.f32 %v1934_v28, %v1926_v36 }
 0x32c   : > { %vm2166_vm13 = vcmp.eq.s32.totalorder %v2120_v43, %v5056_v26 }
 0x32d   : > { %v1944_v42 = vadd.f32 %v1942_v34, %v1936_v38  ;;  %v2112_v34 = vadd.s32 24, %v4987_v19  ;;  %v2114_v38 = vadd.s32 40, %v4987_v19 }
 0x32f   : > { %v1952_v49 = vadd.f32 %v1950_v45, %v1944_v42  ;;  %vm2150_vm5 = vcmp.eq.s32.totalorder %v2112_v34, %v5056_v26  ;;  %vm2154_vm7 = vcmp.eq.s32.totalorder %v2114_v38, %v5056_v26  ;;  %v2118_v42 = vadd.s32 72, %v4987_v19 }
 0x330   : > { %v2123_v45 = vadd.s32 112, %v4987_v19 }
 0x331   : > { %vm2162_vm11 = vcmp.eq.s32.totalorder %v2118_v42, %v5056_v26 }
 0x365   : > { %v1630_v32 = vpop.f32.mrf.mxu0  ;;  %v1701_v44 = vpop.f32.mrf.mxu1 }
 0x367   : > { %v1632_v40 = vpop.f32.mrf.mxu0  ;;  %v1955_v41 = vpop.permute.xlu1 %1954 }
 0x368   : > { %v1958_v46 = vmul.f32 %v1955_v41, %v1632_v40  ;;  %v1957_v48 = vmul.f32 %v1955_v41, %v1630_v32  ;;  %v1703_v51 = vpop.f32.mrf.mxu1  ;;  %v1963_v52 = vpop.permute.xlu0 %1962  ;;  %v2110_v32 = vadd.s32 8, %v4987_v19  ;;  %v2117_v40 = vadd.s32 64, %v4987_v19 }
 0x369   : > { %v1966_v57 = vmul.f32 %v1963_v52, %v1703_v51  ;;  %v1965_v60 = vmul.f32 %v1963_v52, %v1701_v44  ;;  %v2119_v41 = vadd.s32 80, %v4987_v19  ;;  %v2121_v44 = vadd.s32 96, %v4987_v19 }
 0x36a   : > { %v1960_v53 = vadd.f32 %v1958_v46, %v1952_v49  ;;  %v1959_v55 = vadd.f32 %v1957_v48, %v1951_v50  ;;  %vm2146_vm3 = vcmp.eq.s32.totalorder %v2110_v32, %v5056_v26  ;;  %vm2160_vm10 = vcmp.eq.s32.totalorder %v2117_v40, %v5056_v26 }
 0x36b   : > { %vm2164_vm12 = vcmp.eq.s32.totalorder %v2119_v41, %v5056_v26  ;;  %vm2168_vm14 = vcmp.eq.s32.totalorder %v2121_v44, %v5056_v26  ;;  %v2124_v46 = vadd.s32 120, %v4987_v19  ;;  %v5121_v48 = vadd.s32 128, %v5056_v26 }
 0x36c   : > { %v1971_v54 = vpop.permute.xlu1 %1970  ;;  %v1968_v62 = vadd.f32 %v1966_v57, %v1960_v53  ;;  %v1967_v63 = vadd.f32 %v1965_v60, %v1959_v55  ;;  %v2126_v49 = vadd.s32 136, %v4987_v19  ;;  %v2127_v50 = vadd.s32 144, %v4987_v19 }
 0x36d   : > { %v2128_v51 = vadd.s32 152, %v4987_v19  ;;  %v2130_v52 = vadd.s32 168, %v4987_v19  ;;  %v2131_v53 = vadd.s32 176, %v4987_v19  ;;  %v2133_v55 = vadd.s32 192, %v4987_v19 }
 0x36e   : > { %v1987_v3 = vpop.permute.xlu0 %1986  ;;  %v2135_v57 = vadd.s32 208, %v4987_v19  ;;  %v2137_v60 = vadd.s32 224, %v4987_v19 }
 0x371   : > { %v1979_v1 = vpop.permute.xlu1 %1978 }
 0x376   : > { %v2000_v20 = vpop.permute.xlu1 %1999 }
 0x3a8   : > { %v1772_v11 = vpop.f32.mrf.mxu0  ;;  %v1843_v56 = vpop.f32.mrf.mxu1 }
 0x3a9   : > { %v1973_v61 = vmul.f32 %v1971_v54, %v1772_v11  ;;  %v1981_v7 = vmul.f32 %v1979_v1, %v1843_v56  ;;  %v2122_v11 = vadd.s32 104, %v4987_v19  ;;  %v2134_v56 = vadd.s32 200, %v4987_v19 }
 0x3aa   : > { %v1774_v24 = vpop.f32.mrf.mxu0  ;;  %v1845_v0 = vpop.f32.mrf.mxu1 }
 0x3ab   : > { %v1974_v59 = vmul.f32 %v1971_v54, %v1774_v24  ;;  %v1975_v4 = vadd.f32 %v1973_v61, %v1967_v63  ;;  %v1982_v6 = vmul.f32 %v1979_v1, %v1845_v0  ;;  %vm2170_vm15 = vcmp.eq.s32.totalorder %v2122_v11, %v5056_v26 }
 0x3ac   : > { %v2129_v24 = vadd.s32 160, %v4987_v19  ;;  %v2132_v54 = vadd.s32 184, %v4987_v19  ;;  %v2138_v61 = vadd.s32 232, %v4987_v19  ;;  %v2140_v63 = vadd.s32 248, %v4987_v19 }
 0x3ad   : > { %v1976_v2 = vadd.f32 %v1974_v59, %v1968_v62  ;;  %v1983_v13 = vadd.f32 %v1981_v7, %v1975_v4  ;;  %v2136_v59 = vadd.s32 216, %v4987_v19  ;;  %v2139_v62 = vadd.s32 240, %v4987_v19 }
 0x3af   : > { %v1984_v10 = vadd.f32 %v1982_v6, %v1976_v2 }
 0x3e9   : > { %v1914_v5 = vpop.f32.mrf.mxu0 }
 0x3ea   : > { %v1989_v8 = vmul.f32 %v1987_v3, %v1914_v5 }
 0x3eb   : > { %v1916_v9 = vpop.f32.mrf.mxu0 }
 0x3ec   : > { %v1990_v12 = vmul.f32 %v1987_v3, %v1916_v9  ;;  %v1991_v16 = vadd.f32 %v1989_v8, %v1983_v13 }
 0x3ee   : > { %v1992_v14 = vadd.f32 %v1990_v12, %v1984_v10 }
 0x3f0   : > { %4234 = vmatprep.subr.msk.mxu0 %vm2014_vm0, %v1992_v14  ;;  %4458 = vmatprep.subr.msk.mxu1 %vm2014_vm0, %v1992_v14 }
 0x3f1   : > { %4235 = vmatpush1.msk.msra.mxu0 %vm2014_vm0, %v1991_v16  ;;  %4459 = vmatpush1.msk.msra.mxu1 %vm2014_vm0, %v1991_v16 }
 0x3f2   : > { %4236 = vmatmul.mubr.msk.f32.vlgmr.msra.gmra.mxu0 %vm2007_vm1, %v1993_v17  ;;  %4237 = vmatmul.mubr.msk.f32.vlgmr.msra.gmra.mxu1 %vm2007_vm1, %v1994_v37 }
 0x3f3   : > { %2729 = vmatprep.mubr.f32.mxu0 %v4833_v15  ;;  %2400 = vmatprep.mubr.f32.mxu1 %v4833_v15 }
 0x4b2   : > { %v2087_v21 = vpop.f32.mrf.mxu0  ;;  %v5190_v0 = vpop.f32.mrf.mxu1 }
 0x4b3   : > { %v2088_v22 = vadd.f32 %v2087_v21, %v2000_v20  ;;  %5991 = vst [vmem:[#allocation10_spill] sm:$0xff] %v5190_v0 }
 0x4b4   : > { %v2089_v23 = vpop.f32.mrf.mxu0  ;;  %v5192_v1 = vpop.f32.mrf.mxu1 }
 0x4b5   : > { %2098 = vst [vmem:[#allocation2 + $0x10] sm:$0xff] %v2088_v22  ;;  %v2090_v25 = vadd.f32 %v2089_v23, %v2000_v20  ;;  %5992 = vst [vmem:[#allocation11_spill] sm:$0xff] %v5192_v1 }
 0x4b7   : > { %2099 = vst [vmem:[#allocation2] sm:$0xff] %v2090_v25 }
 0x4bc   : > { %v2104_v27 = vld [vmem:[#allocation2 + $0x10] sm:$0xf0]  ;;  %v2102_v29 = vld [vmem:[#allocation2 + $0x10] sm:$0xf] }
 0x4bd   : > { %v2563_v31 = vrot.slane %v2104_v27, 4 }
 0x4be   : > { %v2103_v36 = vld [vmem:[#allocation2] sm:$0xf]  ;;  %v2105_v28 = vld [vmem:[#allocation2] sm:$0xf0] }
 0x4bf   : > { %2366 = vmatprep.subr.mxu1 %v2103_v36  ;;  %v2564_v30 = vrot.slane %v2105_v28, 4 }
 0x4c0   : > { %2367 = vmatpush1.xpose.msra.mxu1 %v2102_v29 }
 0x4c1   : > { %4302 = vmatprep.subr.msk.mxu0 %vm2014_vm0, %v2564_v30 }
 0x4c2   : > { %4303 = vmatpush1.msk.msra.mxu0 %vm2014_vm0, %v2563_v31 }
 0x4c3   : > { %4270 = vmatmul.mubr.msk.f32.vlgmr.msra.gmra.mxu1 %vm2144_vm2, %v4834_v33  ;;  %vm2172_vm2 = vcmp.eq.s32.totalorder %v2123_v45, %v5056_v26 }
 0x4c4   : > { %2405 = vmatprep.mubr.f32.mxu1 %v4833_v15 }
 0x4c7   : > { %4271 = vmatmul.mubr.msk.f32.gmra.mxu1 %vm2146_vm3, %v4834_v33  ;;  %vm2174_vm3 = vcmp.eq.s32.totalorder %v2124_v46, %v5056_v26 }
 0x4c8   : > { %2410 = vmatprep.mubr.f32.mxu1 %v4833_v15 }
 0x4cb   : > { %4272 = vmatmul.mubr.msk.f32.gmra.mxu1 %vm2148_vm4, %v4834_v33  ;;  %vm2177_vm4 = vcmp.eq.s32.totalorder %v2125_v47, %v5121_v48 }
 0x4cc   : > { %2415 = vmatprep.mubr.f32.mxu1 %v4833_v15 }
 0x4cf   : > { %4273 = vmatmul.mubr.msk.f32.gmra.mxu1 %vm2150_vm5, %v4834_v33  ;;  %vm2179_vm5 = vcmp.eq.s32.totalorder %v2126_v49, %v5121_v48 }
 0x4d0   : > { %2420 = vmatprep.mubr.f32.mxu1 %v4833_v15 }
 0x4d3   : > { %4274 = vmatmul.mubr.msk.f32.gmra.mxu1 %vm2152_vm6, %v4834_v33  ;;  %vm2181_vm6 = vcmp.eq.s32.totalorder %v2127_v50, %v5121_v48 }
 0x4d4   : > { %2425 = vmatprep.mubr.f32.mxu1 %v4833_v15 }
 0x4d7   : > { %4275 = vmatmul.mubr.msk.f32.gmra.mxu1 %vm2154_vm7, %v4834_v33  ;;  %vm2183_vm7 = vcmp.eq.s32.totalorder %v2128_v51, %v5121_v48 }
 0x4d8   : > { %2430 = vmatprep.mubr.f32.mxu1 %v4833_v15 }
 0x4db   : > { %4276 = vmatmul.mubr.msk.f32.gmra.mxu1 %vm2156_vm8, %v4834_v33  ;;  %vm2185_vm8 = vcmp.eq.s32.totalorder %v2129_v24, %v5121_v48 }
 0x4dc   : > { %2435 = vmatprep.mubr.f32.mxu1 %v4833_v15 }
 0x4df   : > { %4277 = vmatmul.mubr.msk.f32.gmra.mxu1 %vm2158_vm9, %v4834_v33  ;;  %vm2187_vm9 = vcmp.eq.s32.totalorder %v2130_v52, %v5121_v48 }
 0x4e0   : > { %2440 = vmatprep.mubr.f32.mxu1 %v4833_v15 }
 0x4e3   : > { %4278 = vmatmul.mubr.msk.f32.gmra.mxu1 %vm2160_vm10, %v4834_v33  ;;  %vm2189_vm10 = vcmp.eq.s32.totalorder %v2131_v53, %v5121_v48 }
 0x4e4   : > { %2445 = vmatprep.mubr.f32.mxu1 %v4833_v15 }
 0x4e7   : > { %4279 = vmatmul.mubr.msk.f32.gmra.mxu1 %vm2162_vm11, %v4834_v33  ;;  %vm2191_vm11 = vcmp.eq.s32.totalorder %v2132_v54, %v5121_v48 }
 0x4e8   : > { %2450 = vmatprep.mubr.f32.mxu1 %v4833_v15 }
 0x4eb   : > { %4280 = vmatmul.mubr.msk.f32.gmra.mxu1 %vm2164_vm12, %v4834_v33  ;;  %vm2193_vm12 = vcmp.eq.s32.totalorder %v2133_v55, %v5121_v48 }
 0x4ec   : > { %2455 = vmatprep.mubr.f32.mxu1 %v4833_v15 }
 0x4ef   : > { %4281 = vmatmul.mubr.msk.f32.gmra.mxu1 %vm2166_vm13, %v4834_v33  ;;  %vm2195_vm13 = vcmp.eq.s32.totalorder %v2134_v56, %v5121_v48 }
 0x4f0   : > { %2460 = vmatprep.mubr.f32.mxu1 %v4833_v15 }
 0x4f3   : > { %4282 = vmatmul.mubr.msk.f32.gmra.mxu1 %vm2168_vm14, %v4834_v33  ;;  %vm2197_vm14 = vcmp.eq.s32.totalorder %v2135_v57, %v5121_v48 }
 0x4f4   : > { %2465 = vmatprep.mubr.f32.mxu1 %v4833_v15 }
 0x4f7   : > { %4283 = vmatmul.mubr.msk.f32.gmra.mxu1 %vm2170_vm15, %v4834_v33  ;;  %vm2199_vm15 = vcmp.eq.s32.totalorder %v2136_v59, %v5121_v48 }
 0x4f8   : > { %2470 = vmatprep.mubr.f32.mxu1 %v4833_v15 }
 0x4fb   : > { %4284 = vmatmul.mubr.msk.f32.gmra.mxu1 %vm2172_vm2, %v4834_v33  ;;  %vm2201_vm2 = vcmp.eq.s32.totalorder %v2137_v60, %v5121_v48 }
 0x4fc   : > { %2475 = vmatprep.mubr.f32.mxu1 %v4833_v15 }
 0x4ff   : > { %4285 = vmatmul.mubr.msk.f32.gmra.mxu1 %vm2174_vm3, %v4834_v33  ;;  %vm2203_vm3 = vcmp.eq.s32.totalorder %v2138_v61, %v5121_v48 }
 0x500   : > { %4286 = vmatprep.mubr.msk.f32.mxu1 %vm2177_vm4, %v4834_v33  ;;  %vm2205_vm4 = vcmp.eq.s32.totalorder %v2139_v62, %v5121_v48 }
 0x503   : > { %2481 = vmatmul.mubr.f32.gmra.mxu1 %v4833_v15 }
 0x504   : > { %4287 = vmatprep.mubr.msk.f32.mxu1 %vm2179_vm5, %v4834_v33  ;;  %vm2207_vm5 = vcmp.eq.s32.totalorder %v2140_v63, %v5121_v48 }
 0x507   : > { %2486 = vmatmul.mubr.f32.gmra.mxu1 %v4833_v15 }
 0x508   : > { %4288 = vmatprep.mubr.msk.f32.mxu1 %vm2181_vm6, %v4834_v33 }
 0x50b   : > { %2491 = vmatmul.mubr.f32.gmra.mxu1 %v4833_v15 }
 0x50c   : > { %4289 = vmatprep.mubr.msk.f32.mxu1 %vm2183_vm7, %v4834_v33 }
 0x50f   : > { %2496 = vmatmul.mubr.f32.gmra.mxu1 %v4833_v15 }
 0x510   : > { %4290 = vmatprep.mubr.msk.f32.mxu1 %vm2185_vm8, %v4834_v33 }
 0x513   : > { %2501 = vmatmul.mubr.f32.gmra.mxu1 %v4833_v15 }
 0x514   : > { %4291 = vmatprep.mubr.msk.f32.mxu1 %vm2187_vm9, %v4834_v33 }
 0x517   : > { %2506 = vmatmul.mubr.f32.gmra.mxu1 %v4833_v15 }
 0x518   : > { %4292 = vmatprep.mubr.msk.f32.mxu1 %vm2189_vm10, %v4834_v33 }
 0x51b   : > { %2511 = vmatmul.mubr.f32.gmra.mxu1 %v4833_v15 }
 0x51c   : > { %4293 = vmatprep.mubr.msk.f32.mxu1 %vm2191_vm11, %v4834_v33 }
 0x51f   : > { %2516 = vmatmul.mubr.f32.gmra.mxu1 %v4833_v15 }
 0x520   : > { %4294 = vmatprep.mubr.msk.f32.mxu1 %vm2193_vm12, %v4834_v33 }
 0x523   : > { %2521 = vmatmul.mubr.f32.gmra.mxu1 %v4833_v15 }
 0x524   : > { %4295 = vmatprep.mubr.msk.f32.mxu1 %vm2195_vm13, %v4834_v33 }
 0x527   : > { %2526 = vmatmul.mubr.f32.gmra.mxu1 %v4833_v15 }
 0x528   : > { %4296 = vmatprep.mubr.msk.f32.mxu1 %vm2197_vm14, %v4834_v33 }
 0x52b   : > { %2531 = vmatmul.mubr.f32.gmra.mxu1 %v4833_v15 }
 0x52c   : > { %4297 = vmatprep.mubr.msk.f32.mxu1 %vm2199_vm15, %v4834_v33 }
 0x52f   : > { %2536 = vmatmul.mubr.f32.gmra.mxu1 %v4833_v15 }
 0x530   : > { %4298 = vmatprep.mubr.msk.f32.mxu1 %vm2201_vm2, %v4834_v33 }
 0x533   : > { %2541 = vmatmul.mubr.f32.gmra.mxu1 %v4833_v15 }
 0x534   : > { %4299 = vmatprep.mubr.msk.f32.mxu1 %vm2203_vm3, %v4834_v33 }
 0x537   : > { %2546 = vmatmul.mubr.f32.gmra.mxu1 %v4833_v15 }
 0x538   : > { %4300 = vmatprep.mubr.msk.f32.mxu1 %vm2205_vm4, %v4834_v33 }
 0x53b   : > { %2551 = vmatmul.mubr.f32.gmra.mxu1 %v4833_v15 }
 0x53c   : > { %4301 = vmatprep.mubr.msk.f32.mxu1 %vm2207_vm5, %v4834_v33 }
 0x53f   : > { %2556 = vmatmul.mubr.f32.gmra.mxu1 %v4833_v15 }
 0x583   : > { %v2402_v2 = vpop.f32.mrf.mxu1 }
 0x584   : > { %4304 = vmatmul.mubr.msk.f32.vlgmr.msra.gmra.mxu0 %vm2007_vm1, %v2402_v2 }
 0x585   : > { %v2404_v19 = vpop.f32.mrf.mxu1  ;;  %2735 = vmatprep.mubr.f32.mxu0 %v4833_v15 }
 0x587   : > { %v2407_v3 = vpop.f32.mrf.mxu1 }
 0x588   : > { %4305 = vmatmul.mubr.msk.f32.gmra.mxu0 %vm2007_vm1, %v2407_v3 }
 0x589   : > { %v2409_v4 = vpop.f32.mrf.mxu1  ;;  %2741 = vmatprep.mubr.f32.mxu0 %v4833_v15 }
 0x58b   : > { %v2412_v5 = vpop.f32.mrf.mxu1 }
 0x58c   : > { %4306 = vmatmul.mubr.msk.f32.gmra.mxu0 %vm2007_vm1, %v2412_v5 }
 0x58d   : > { %v2414_v6 = vpop.f32.mrf.mxu1  ;;  %2747 = vmatprep.mubr.f32.mxu0 %v4833_v15 }
 0x58f   : > { %v2417_v7 = vpop.f32.mrf.mxu1 }
 0x590   : > { %4307 = vmatmul.mubr.msk.f32.gmra.mxu0 %vm2007_vm1, %v2417_v7 }
 0x591   : > { %v2419_v8 = vpop.f32.mrf.mxu1  ;;  %2753 = vmatprep.mubr.f32.mxu0 %v4833_v15 }
 0x593   : > { %v2422_v9 = vpop.f32.mrf.mxu1 }
 0x594   : > { %4308 = vmatmul.mubr.msk.f32.gmra.mxu0 %vm2007_vm1, %v2422_v9 }
 0x595   : > { %v2424_v10 = vpop.f32.mrf.mxu1  ;;  %2759 = vmatprep.mubr.f32.mxu0 %v4833_v15 }
 0x597   : > { %v2427_v12 = vpop.f32.mrf.mxu1 }
 0x598   : > { %4309 = vmatmul.mubr.msk.f32.gmra.mxu0 %vm2007_vm1, %v2427_v12 }
 0x599   : > { %v2429_v13 = vpop.f32.mrf.mxu1  ;;  %2765 = vmatprep.mubr.f32.mxu0 %v4833_v15 }
 0x59b   : > { %v2432_v14 = vpop.f32.mrf.mxu1 }
 0x59c   : > { %4310 = vmatmul.mubr.msk.f32.gmra.mxu0 %vm2007_vm1, %v2432_v14 }
 0x59d   : > { %v2434_v16 = vpop.f32.mrf.mxu1  ;;  %2771 = vmatprep.mubr.f32.mxu0 %v4833_v15 }
 0x59f   : > { %v2437_v17 = vpop.f32.mrf.mxu1 }
 0x5a0   : > { %4311 = vmatmul.mubr.msk.f32.gmra.mxu0 %vm2007_vm1, %v2437_v17 }
 0x5a1   : > { %v2439_v37 = vpop.f32.mrf.mxu1  ;;  %2777 = vmatprep.mubr.f32.mxu0 %v4833_v15 }
 0x5a3   : > { %v2442_v20 = vpop.f32.mrf.mxu1 }
 0x5a4   : > { %4312 = vmatmul.mubr.msk.f32.gmra.mxu0 %vm2007_vm1, %v2442_v20 }
 0x5a5   : > { %v2444_v21 = vpop.f32.mrf.mxu1  ;;  %2783 = vmatprep.mubr.f32.mxu0 %v4833_v15 }
 0x5a7   : > { %v2447_v22 = vpop.f32.mrf.mxu1 }
 0x5a8   : > { %4313 = vmatmul.mubr.msk.f32.gmra.mxu0 %vm2007_vm1, %v2447_v22 }
 0x5a9   : > { %v2449_v23 = vpop.f32.mrf.mxu1  ;;  %2789 = vmatprep.mubr.f32.mxu0 %v4833_v15 }
 0x5ab   : > { %v2452_v25 = vpop.f32.mrf.mxu1 }
 0x5ac   : > { %4314 = vmatmul.mubr.msk.f32.gmra.mxu0 %vm2007_vm1, %v2452_v25 }
 0x5ad   : > { %v2454_v26 = vpop.f32.mrf.mxu1  ;;  %2795 = vmatprep.mubr.f32.mxu0 %v4833_v15 }
 0x5af   : > { %v2457_v27 = vpop.f32.mrf.mxu1 }
 0x5b0   : > { %4315 = vmatmul.mubr.msk.f32.gmra.mxu0 %vm2007_vm1, %v2457_v27 }
 0x5b1   : > { %v2459_v36 = vpop.f32.mrf.mxu1  ;;  %2801 = vmatprep.mubr.f32.mxu0 %v4833_v15 }
 0x5b3   : > { %v2462_v28 = vpop.f32.mrf.mxu1 }
 0x5b4   : > { %4316 = vmatmul.mubr.msk.f32.gmra.mxu0 %vm2007_vm1, %v2462_v28 }
 0x5b5   : > { %v2464_v29 = vpop.f32.mrf.mxu1  ;;  %2807 = vmatprep.mubr.f32.mxu0 %v4833_v15 }
 0x5b7   : > { %v2467_v30 = vpop.f32.mrf.mxu1 }
 0x5b8   : > { %4317 = vmatmul.mubr.msk.f32.gmra.mxu0 %vm2007_vm1, %v2467_v30 }
 0x5b9   : > { %v2469_v31 = vpop.f32.mrf.mxu1  ;;  %2813 = vmatprep.mubr.f32.mxu0 %v4833_v15 }
 0x5bb   : > { %v2472_v32 = vpop.f32.mrf.mxu1 }
 0x5bc   : > { %4318 = vmatmul.mubr.msk.f32.gmra.mxu0 %vm2007_vm1, %v2472_v32 }
 0x5bd   : > { %v2474_v33 = vpop.f32.mrf.mxu1  ;;  %2819 = vmatprep.mubr.f32.mxu0 %v4833_v15 }
 0x5bf   : > { %v2477_v18 = vpop.f32.mrf.mxu1 }
 0x5c0   : > { %4319 = vmatmul.mubr.msk.f32.gmra.mxu0 %vm2007_vm1, %v2477_v18 }
 0x5c1   : > { %v2479_v34 = vpop.f32.mrf.mxu1  ;;  %2825 = vmatprep.mubr.f32.mxu0 %v4833_v15 }
 0x5c3   : > { %v2482_v35 = vpop.f32.mrf.mxu1 }
 0x5c4   : > { %4320 = vmatmul.mubr.msk.f32.gmra.mxu0 %vm2007_vm1, %v2482_v35 }
 0x5c5   : > { %v2484_v38 = vpop.f32.mrf.mxu1  ;;  %2831 = vmatprep.mubr.f32.mxu0 %v4833_v15 }
 0x5c7   : > { %v2487_v39 = vpop.f32.mrf.mxu1 }
 0x5c8   : > { %4321 = vmatmul.mubr.msk.f32.gmra.mxu0 %vm2007_vm1, %v2487_v39 }
 0x5c9   : > { %v2489_v58 = vpop.f32.mrf.mxu1  ;;  %2837 = vmatprep.mubr.f32.mxu0 %v4833_v15 }
 0x5cb   : > { %v2492_v40 = vpop.f32.mrf.mxu1 }
 0x5cc   : > { %4322 = vmatmul.mubr.msk.f32.gmra.mxu0 %vm2007_vm1, %v2492_v40 }
 0x5cd   : > { %v2494_v42 = vpop.f32.mrf.mxu1  ;;  %2843 = vmatprep.mubr.f32.mxu0 %v4833_v15 }
 0x5cf   : > { %v2497_v41 = vpop.f32.mrf.mxu1 }
 0x5d0   : > { %4323 = vmatmul.mubr.msk.f32.gmra.mxu0 %vm2007_vm1, %v2497_v41 }
 0x5d1   : > { %v2499_v43 = vpop.f32.mrf.mxu1  ;;  %2849 = vmatprep.mubr.f32.mxu0 %v4833_v15 }
 0x5d3   : > { %v2502_v44 = vpop.f32.mrf.mxu1 }
 0x5d4   : > { %4324 = vmatmul.mubr.msk.f32.gmra.mxu0 %vm2007_vm1, %v2502_v44 }
 0x5d5   : > { %v2504_v11 = vpop.f32.mrf.mxu1  ;;  %2855 = vmatprep.mubr.f32.mxu0 %v4833_v15 }
 0x5d7   : > { %v2507_v45 = vpop.f32.mrf.mxu1 }
 0x5d8   : > { %4325 = vmatmul.mubr.msk.f32.gmra.mxu0 %vm2007_vm1, %v2507_v45 }
 0x5d9   : > { %v2509_v46 = vpop.f32.mrf.mxu1  ;;  %2861 = vmatprep.mubr.f32.mxu0 %v4833_v15 }
 0x5db   : > { %v2512_v47 = vpop.f32.mrf.mxu1 }
 0x5dc   : > { %4326 = vmatmul.mubr.msk.f32.gmra.mxu0 %vm2007_vm1, %v2512_v47 }
 0x5dd   : > { %v2514_v48 = vpop.f32.mrf.mxu1  ;;  %2867 = vmatprep.mubr.f32.mxu0 %v4833_v15 }
 0x5df   : > { %v2517_v49 = vpop.f32.mrf.mxu1 }
 0x5e0   : > { %4327 = vmatmul.mubr.msk.f32.gmra.mxu0 %vm2007_vm1, %v2517_v49 }
 0x5e1   : > { %v2519_v50 = vpop.f32.mrf.mxu1  ;;  %2873 = vmatprep.mubr.f32.mxu0 %v4833_v15 }
 0x5e3   : > { %v2522_v51 = vpop.f32.mrf.mxu1 }
 0x5e4   : > { %4328 = vmatmul.mubr.msk.f32.gmra.mxu0 %vm2007_vm1, %v2522_v51 }
 0x5e5   : > { %v2524_v24 = vpop.f32.mrf.mxu1  ;;  %2879 = vmatprep.mubr.f32.mxu0 %v4833_v15 }
 0x5e7   : > { %v2527_v52 = vpop.f32.mrf.mxu1 }
 0x5e8   : > { %4329 = vmatmul.mubr.msk.f32.gmra.mxu0 %vm2007_vm1, %v2527_v52 }
 0x5e9   : > { %v2529_v53 = vpop.f32.mrf.mxu1  ;;  %2885 = vmatprep.mubr.f32.mxu0 %v4833_v15 }
 0x5eb   : > { %v2532_v54 = vpop.f32.mrf.mxu1 }
 0x5ec   : > { %4330 = vmatmul.mubr.msk.f32.gmra.mxu0 %vm2007_vm1, %v2532_v54 }
 0x5ed   : > { %v2534_v55 = vpop.f32.mrf.mxu1  ;;  %2891 = vmatprep.mubr.f32.mxu0 %v4833_v15 }
 0x5ef   : > { %v2537_v56 = vpop.f32.mrf.mxu1 }
 0x5f0   : > { %4331 = vmatmul.mubr.msk.f32.gmra.mxu0 %vm2007_vm1, %v2537_v56 }
 0x5f1   : > { %v2539_v57 = vpop.f32.mrf.mxu1  ;;  %2897 = vmatprep.mubr.f32.mxu0 %v4833_v15 }
 0x5f3   : > { %v2542_v59 = vpop.f32.mrf.mxu1 }
 0x5f4   : > { %4332 = vmatmul.mubr.msk.f32.gmra.mxu0 %vm2007_vm1, %v2542_v59 }
 0x5f5   : > { %v2544_v60 = vpop.f32.mrf.mxu1  ;;  %2903 = vmatprep.mubr.f32.mxu0 %v4833_v15 }
 0x5f7   : > { %v2547_v61 = vpop.f32.mrf.mxu1 }
 0x5f8   : > { %4333 = vmatmul.mubr.msk.f32.gmra.mxu0 %vm2007_vm1, %v2547_v61 }
 0x5f9   : > { %v2549_v62 = vpop.f32.mrf.mxu1  ;;  %2909 = vmatprep.mubr.f32.mxu0 %v4833_v15 }
 0x5fb   : > { %v2552_v63 = vpop.f32.mrf.mxu1 }
 0x5fc   : > { %4334 = vmatmul.mubr.msk.f32.gmra.mxu0 %vm2007_vm1, %v2552_v63 }
 0x5fd   : > { %v2554_v2 = vpop.f32.mrf.mxu1  ;;  %2915 = vmatprep.mubr.f32.mxu0 %v4833_v15 }
 0x5ff   : > { %v2557_v19 = vpop.f32.mrf.mxu1 }
 0x600   : > { %4335 = vmatmul.mubr.msk.f32.gmra.mxu0 %vm2007_vm1, %v2557_v19 }
 0x601   : > { %v2559_v3 = vpop.f32.mrf.mxu1 }
 0x644   : > { %v2731_v4 = vpop.f32.mrf.mxu0 }
 0x645   : > { %v5257_v6 = vmul.f32 0.5, %v2731_v4 }
 0x646   : > { %v2733_v5 = vpop.f32.mrf.mxu0 }
 0x647   : > { %v5259_v7 = vmul.f32 0.5, %v2733_v5 }
 0x648   : > { %v2737_v8 = vpop.f32.mrf.mxu0 }
 0x649   : > { %v2986_v9 = vmax.f32 %v5257_v6, %v5259_v7  ;;  %v5263_v12 = vmul.f32 0.5, %v2737_v8 }
 0x64a   : > { %v2739_v10 = vpop.f32.mrf.mxu0 }
 0x64b   : > { %v5265_v13 = vmul.f32 0.5, %v2739_v10  ;;  %2987 = vmax.xlane.f32.xlu1 %v2986_v9 }
 0x64c   : > { %v2743_v15 = vpop.f32.mrf.mxu0 }
 0x64d   : > { %v2989_v14 = vmax.f32 %v5263_v12, %v5265_v13  ;;  %v5269_v17 = vmul.f32 0.5, %v2743_v15 }
 0x64e   : > { %v2745_v16 = vpop.f32.mrf.mxu0 }
 0x64f   : > { %v5271_v37 = vmul.f32 0.5, %v2745_v16  ;;  %2990 = vmax.xlane.f32.xlu0 %v2989_v14 }
 0x650   : > { %v2749_v20 = vpop.f32.mrf.mxu0 }
 0x651   : > { %v2992_v21 = vmax.f32 %v5269_v17, %v5271_v37  ;;  %v5275_v23 = vmul.f32 0.5, %v2749_v20 }
 0x652   : > { %v2751_v22 = vpop.f32.mrf.mxu0 }
 0x653   : > { %v5277_v25 = vmul.f32 0.5, %v2751_v22  ;;  %2993 = vmax.xlane.f32.xlu0 %v2992_v21 }
 0x654   : > { %v2755_v26 = vpop.f32.mrf.mxu0 }
 0x655   : > { %v2995_v27 = vmax.f32 %v5275_v23, %v5277_v25  ;;  %v5281_v28 = vmul.f32 0.5, %v2755_v26 }
 0x656   : > { %v2757_v36 = vpop.f32.mrf.mxu0 }
 0x657   : > { %v5283_v29 = vmul.f32 0.5, %v2757_v36  ;;  %2996 = vmax.xlane.f32.xlu1 %v2995_v27 }
 0x658   : > { %v2761_v30 = vpop.f32.mrf.mxu0 }
 0x659   : > { %v2998_v31 = vmax.f32 %v5281_v28, %v5283_v29  ;;  %v5287_v33 = vmul.f32 0.5, %v2761_v30 }
 0x65a   : > { %v2763_v32 = vpop.f32.mrf.mxu0 }
 0x65b   : > { %v5289_v18 = vmul.f32 0.5, %v2763_v32  ;;  %2999 = vmax.xlane.f32.xlu0 %v2998_v31 }
 0x65c   : > { %v2767_v34 = vpop.f32.mrf.mxu0 }
 0x65d   : > { %v3001_v35 = vmax.f32 %v5287_v33, %v5289_v18  ;;  %v5293_v39 = vmul.f32 0.5, %v2767_v34 }
 0x65e   : > { %v2769_v38 = vpop.f32.mrf.mxu0 }
 0x65f   : > { %v5295_v58 = vmul.f32 0.5, %v2769_v38  ;;  %3002 = vmax.xlane.f32.xlu1 %v3001_v35 }
 0x660   : > { %v2773_v40 = vpop.f32.mrf.mxu0 }
 0x661   : > { %v3004_v42 = vmax.f32 %v5293_v39, %v5295_v58  ;;  %v5299_v43 = vmul.f32 0.5, %v2773_v40 }
 0x662   : > { %v2775_v41 = vpop.f32.mrf.mxu0 }
 0x663   : > { %v5301_v44 = vmul.f32 0.5, %v2775_v41  ;;  %3005 = vmax.xlane.f32.xlu0 %v3004_v42 }
 0x664   : > { %v2779_v11 = vpop.f32.mrf.mxu0 }
 0x665   : > { %v5303_v45 = vmul.f32 0.5, %v2779_v11  ;;  %v3007_v46 = vmax.f32 %v5299_v43, %v5301_v44 }
 0x666   : > { %v2781_v47 = vpop.f32.mrf.mxu0 }
 0x667   : > { %v5307_v48 = vmul.f32 0.5, %v2781_v47  ;;  %3008 = vmax.xlane.f32.xlu1 %v3007_v46 }
 0x668   : > { %v2785_v49 = vpop.f32.mrf.mxu0 }
 0x669   : > { %v5309_v50 = vmul.f32 0.5, %v2785_v49  ;;  %v3010_v51 = vmax.f32 %v5303_v45, %v5307_v48 }
 0x66a   : > { %v2787_v24 = vpop.f32.mrf.mxu0 }
 0x66b   : > { %v5313_v52 = vmul.f32 0.5, %v2787_v24  ;;  %3011 = vmax.xlane.f32.xlu0 %v3010_v51 }
 0x66c   : > { %v2791_v53 = vpop.f32.mrf.mxu0 }
 0x66d   : > { %v5315_v54 = vmul.f32 0.5, %v2791_v53  ;;  %v3013_v55 = vmax.f32 %v5309_v50, %v5313_v52 }
 0x66e   : > { %v2793_v56 = vpop.f32.mrf.mxu0 }
 0x66f   : > { %v5319_v57 = vmul.f32 0.5, %v2793_v56  ;;  %3014 = vmax.xlane.f32.xlu1 %v3013_v55 }
 0x670   : > { %v2797_v59 = vpop.f32.mrf.mxu0 }
 0x671   : > { %v5321_v60 = vmul.f32 0.5, %v2797_v59  ;;  %v3016_v61 = vmax.f32 %v5315_v54, %v5319_v57 }
 0x672   : > { %v2799_v62 = vpop.f32.mrf.mxu0 }
 0x673   : > { %v5325_v63 = vmul.f32 0.5, %v2799_v62  ;;  %3017 = vmax.xlane.f32.xlu0 %v3016_v61 }
 0x674   : > { %v2803_v2 = vpop.f32.mrf.mxu0 }
 0x675   : > { %v5327_v19 = vmul.f32 0.5, %v2803_v2  ;;  %v3019_v3 = vmax.f32 %v5321_v60, %v5325_v63 }
 0x676   : > { %v2805_v4 = vpop.f32.mrf.mxu0 }
 0x677   : > { %v5331_v5 = vmul.f32 0.5, %v2805_v4  ;;  %3020 = vmax.xlane.f32.xlu1 %v3019_v3 }
 0x678   : > { %v2809_v8 = vpop.f32.mrf.mxu0 }
 0x679   : > { %v5333_v9 = vmul.f32 0.5, %v2809_v8  ;;  %v3022_v10 = vmax.f32 %v5327_v19, %v5331_v5 }
 0x67a   : > { %v2811_v15 = vpop.f32.mrf.mxu0 }
 0x67b   : > { %v5337_v14 = vmul.f32 0.5, %v2811_v15  ;;  %3023 = vmax.xlane.f32.xlu0 %v3022_v10 }
 0x67c   : > { %v2815_v16 = vpop.f32.mrf.mxu0 }
 0x67d   : > { %v5339_v20 = vmul.f32 0.5, %v2815_v16  ;;  %v3025_v21 = vmax.f32 %v5333_v9, %v5337_v14 }
 0x67e   : > { %v2817_v22 = vpop.f32.mrf.mxu0 }
 0x67f   : > { %v5343_v26 = vmul.f32 0.5, %v2817_v22  ;;  %3026 = vmax.xlane.f32.xlu1 %v3025_v21 }
 0x680   : > { %v2821_v27 = vpop.f32.mrf.mxu0 }
 0x681   : > { %v5345_v36 = vmul.f32 0.5, %v2821_v27  ;;  %v3028_v30 = vmax.f32 %v5339_v20, %v5343_v26 }
 0x682   : > { %v2823_v31 = vpop.f32.mrf.mxu0 }
 0x683   : > { %v5349_v32 = vmul.f32 0.5, %v2823_v31  ;;  %3029 = vmax.xlane.f32.xlu0 %v3028_v30 }
 0x684   : > { %v2827_v34 = vpop.f32.mrf.mxu0 }
 0x685   : > { %v5351_v35 = vmul.f32 0.5, %v2827_v34  ;;  %v3031_v38 = vmax.f32 %v5345_v36, %v5349_v32 }
 0x686   : > { %v2829_v40 = vpop.f32.mrf.mxu0 }
 0x687   : > { %v5355_v42 = vmul.f32 0.5, %v2829_v40  ;;  %3032 = vmax.xlane.f32.xlu1 %v3031_v38 }
 0x688   : > { %v2833_v41 = vpop.f32.mrf.mxu0 }
 0x689   : > { %v5357_v11 = vmul.f32 0.5, %v2833_v41  ;;  %v3034_v46 = vmax.f32 %v5351_v35, %v5355_v42 }
 0x68a   : > { %v2835_v47 = vpop.f32.mrf.mxu0 }
 0x68b   : > { %v5361_v49 = vmul.f32 0.5, %v2835_v47  ;;  %3035 = vmax.xlane.f32.xlu0 %v3034_v46 }
 0x68c   : > { %v2839_v51 = vpop.f32.mrf.mxu0 }
 0x68d   : > { %v5363_v24 = vmul.f32 0.5, %v2839_v51  ;;  %v3037_v53 = vmax.f32 %v5357_v11, %v5361_v49 }
 0x68e   : > { %v2841_v55 = vpop.f32.mrf.mxu0 }
 0x68f   : > { %v5367_v56 = vmul.f32 0.5, %v2841_v55  ;;  %3038 = vmax.xlane.f32.xlu1 %v3037_v53 }
 0x690   : > { %v2845_v59 = vpop.f32.mrf.mxu0 }
 0x691   : > { %v5369_v61 = vmul.f32 0.5, %v2845_v59  ;;  %v3040_v62 = vmax.f32 %v5363_v24, %v5367_v56 }
 0x692   : > { %v2847_v2 = vpop.f32.mrf.mxu0 }
 0x693   : > { %v5373_v3 = vmul.f32 0.5, %v2847_v2  ;;  %3041 = vmax.xlane.f32.xlu0 %v3040_v62 }
 0x694   : > { %v2851_v4 = vpop.f32.mrf.mxu0 }
 0x695   : > { %v5375_v8 = vmul.f32 0.5, %v2851_v4  ;;  %v3043_v10 = vmax.f32 %v5369_v61, %v5373_v3 }
 0x696   : > { %v2853_v15 = vpop.f32.mrf.mxu0 }
 0x697   : > { %v5379_v16 = vmul.f32 0.5, %v2853_v15  ;;  %3044 = vmax.xlane.f32.xlu1 %v3043_v10 }
 0x698   : > { %v2857_v21 = vpop.f32.mrf.mxu0 }
 0x699   : > { %v5381_v22 = vmul.f32 0.5, %v2857_v21  ;;  %v3046_v27 = vmax.f32 %v5375_v8, %v5379_v16 }
 0x69a   : > { %v2859_v30 = vpop.f32.mrf.mxu0 }
 0x69b   : > { %v5385_v31 = vmul.f32 0.5, %v2859_v30  ;;  %3047 = vmax.xlane.f32.xlu0 %v3046_v27 }
 0x69c   : > { %v2863_v34 = vpop.f32.mrf.mxu0 }
 0x69d   : > { %v5387_v38 = vmul.f32 0.5, %v2863_v34  ;;  %v3049_v40 = vmax.f32 %v5381_v22, %v5385_v31 }
 0x69e   : > { %v2865_v41 = vpop.f32.mrf.mxu0 }
 0x69f   : > { %v5391_v46 = vmul.f32 0.5, %v2865_v41  ;;  %3050 = vmax.xlane.f32.xlu1 %v3049_v40 }
 0x6a0   : > { %v2869_v47 = vpop.f32.mrf.mxu0 }
 0x6a1   : > { %v5393_v51 = vmul.f32 0.5, %v2869_v47  ;;  %v3052_v53 = vmax.f32 %v5387_v38, %v5391_v46 }
 0x6a2   : > { %v2871_v55 = vpop.f32.mrf.mxu0 }
 0x6a3   : > { %v5397_v59 = vmul.f32 0.5, %v2871_v55  ;;  %3053 = vmax.xlane.f32.xlu0 %v3052_v53 }
 0x6a4   : > { %v2875_v62 = vpop.f32.mrf.mxu0 }
 0x6a5   : > { %v5399_v2 = vmul.f32 0.5, %v2875_v62  ;;  %v3055_v4 = vmax.f32 %v5393_v51, %v5397_v59 }
 0x6a6   : > { %v2877_v10 = vpop.f32.mrf.mxu0 }
 0x6a7   : > { %v5403_v15 = vmul.f32 0.5, %v2877_v10  ;;  %3056 = vmax.xlane.f32.xlu0 %v3055_v4 }
 0x6a8   : > { %v2881_v21 = vpop.f32.mrf.mxu0 }
 0x6a9   : > { %v5405_v27 = vmul.f32 0.5, %v2881_v21  ;;  %v3058_v30 = vmax.f32 %v5399_v2, %v5403_v15 }
 0x6aa   : > { %v2883_v34 = vpop.f32.mrf.mxu0 }
 0x6ab   : > { %5993 = vst [vmem:[#allocation12_spill] sm:$0xff] %v5405_v27  ;;  %v5409_v40 = vmul.f32 0.5, %v2883_v34  ;;  %3059 = vmax.xlane.f32.xlu0 %v3058_v30 }
 0x6ac   : > { %v2887_v41 = vpop.f32.mrf.mxu0 }
 0x6ad   : > { %5994 = vst [vmem:[#allocation13_spill] sm:$0xff] %v5409_v40  ;;  %v5411_v47 = vmul.f32 0.5, %v2887_v41  ;;  %v3061_v53 = vmax.f32 %v5405_v27, %v5409_v40 }
 0x6ae   : > { %v2889_v55 = vpop.f32.mrf.mxu0 }
 0x6af   : > { %5995 = vst [vmem:[#allocation14_spill] sm:$0xff] %v5411_v47  ;;  %v5415_v62 = vmul.f32 0.5, %v2889_v55  ;;  %3062 = vmax.xlane.f32.xlu1 %v3061_v53 }
 0x6b0   : > { %v2893_v4 = vpop.f32.mrf.mxu0 }
 0x6b1   : > { %5996 = vst [vmem:[#allocation15_spill] sm:$0xff] %v5415_v62  ;;  %v5417_v10 = vmul.f32 0.5, %v2893_v4  ;;  %v3064_v21 = vmax.f32 %v5411_v47, %v5415_v62 }
 0x6b2   : > { %v2895_v1 = vpop.f32.mrf.mxu0 }
 0x6b3   : > { %5997 = vst [vmem:[#allocation16_spill] sm:$0xff] %v5417_v10  ;;  %v5421_v34 = vmul.f32 0.5, %v2895_v1  ;;  %3065 = vmax.xlane.f32.xlu1 %v3064_v21 }
 0x6b4   : > { %v2899_v30 = vpop.f32.mrf.mxu0 }
 0x6b5   : > { %5998 = vst [vmem:[#allocation17_spill] sm:$0xff] %v5421_v34  ;;  %v5423_v41 = vmul.f32 0.5, %v2899_v30  ;;  %v3067_v0 = vmax.f32 %v5417_v10, %v5421_v34 }
 0x6b6   : > { %v2901_v40 = vpop.f32.mrf.mxu0 }
 0x6b7   : > { %5999 = vst [vmem:[#allocation18_spill] sm:$0xff] %v5423_v41  ;;  %v5427_v55 = vmul.f32 0.5, %v2901_v40  ;;  %3068 = vmax.xlane.f32.xlu1 %v3067_v0  ;;  %v1996_v0 = vld [vmem:[%s5963_s8 + $0x8] sm:$0xf] }
 0x6b8   : > { %v2905_v53 = vpop.f32.mrf.mxu0 }
 0x6b9   : > { %6000 = vst [vmem:[#allocation19_spill] sm:$0xff] %v5427_v55  ;;  %v5429_v4 = vmul.f32 0.5, %v2905_v53  ;;  %v3070_v62 = vmax.f32 %v5423_v41, %v5427_v55 }
 0x6ba   : > { %v2907_v47 = vpop.f32.mrf.mxu0 }
 0x6bb   : > { %6001 = vst [vmem:[#allocation20_spill] sm:$0xff] %v5429_v4  ;;  %v5433_v1 = vmul.f32 0.5, %v2907_v47  ;;  %3071 = vmax.xlane.f32.xlu1 %v3070_v62 }
 0x6bc   : > { %v2911_v21 = vpop.f32.mrf.mxu0 }
 0x6bd   : > { %6002 = vst [vmem:[#allocation21_spill] sm:$0xff] %v5433_v1  ;;  %v5435_v30 = vmul.f32 0.5, %v2911_v21  ;;  %v3073_v34 = vmax.f32 %v5429_v4, %v5433_v1 }
 0x6be   : > { %v2913_v10 = vpop.f32.mrf.mxu0 }
 0x6bf   : > { %v5442_v40 = vmul.f32 0.5, %v2913_v10  ;;  %3074 = vmax.xlane.f32.xlu1 %v3073_v34 }
 0x6c1   : > { %6003 = vst [vmem:[#allocation22_spill] sm:$0xff] %v5442_v40  ;;  %2004 = vperm.xlu0 %4524, %v1996_v0   ;;  %v3076_v47 = vmax.f32 %v5435_v30, %v5442_v40 }
 0x6c3   : > { %3077 = vmax.xlane.f32.xlu1 %v3076_v47 }
 0x6d4   : > { %v2988_v62 = vpop.xlane.xlu1 %2987 }
 0x6d5   : > { %v3082_v53 = vsub.f32 %v5257_v6, %v2988_v62  ;;  %v3083_v21 = vsub.f32 %v5259_v7, %v2988_v62 }
 0x6d7   : > { %v3146_v55 = vmul.f32 1.442695, %v3082_v53  ;;  %v3148_v1 = vmul.f32 1.442695, %v3083_v21 }
 0x6d8   : > { %v2991_v4 = vpop.xlane.xlu0 %2990 }
 0x6d9   : > { %4530 = vpow2.f32 %v3146_v55  ;;  %v3084_v41 = vsub.f32 %v5263_v12, %v2991_v4  ;;  %v3085_v10 = vsub.f32 %v5265_v13, %v2991_v4 }
 0x6da   : > { %4532 = vpow2.f32 %v3148_v1 }
 0x6db   : > { %v3150_v34 = vmul.f32 1.442695, %v3084_v41  ;;  %v3152_v0 = vmul.f32 1.442695, %v3085_v10 }
 0x6dc   : > { %v2994_v27 = vpop.xlane.xlu0 %2993 }
 0x6dd   : > { %4534 = vpow2.f32 %v3150_v34  ;;  %v3086_v47 = vsub.f32 %v5269_v17, %v2994_v27  ;;  %v3087_v40 = vsub.f32 %v5271_v37, %v2994_v27 }
 0x6de   : > { %4536 = vpow2.f32 %v3152_v0 }
 0x6df   : > { %v3154_v6 = vmul.f32 1.442695, %v3086_v47  ;;  %v3156_v7 = vmul.f32 1.442695, %v3087_v40 }
 0x6e0   : > { %v2997_v62 = vpop.xlane.xlu1 %2996 }
 0x6e1   : > { %4538 = vpow2.f32 %v3154_v6  ;;  %v3088_v55 = vsub.f32 %v5275_v23, %v2997_v62  ;;  %v3089_v12 = vsub.f32 %v5277_v25, %v2997_v62 }
 0x6e2   : > { %4540 = vpow2.f32 %v3156_v7 }
 0x6e3   : > { %v3158_v13 = vmul.f32 1.442695, %v3088_v55  ;;  %v3160_v4 = vmul.f32 1.442695, %v3089_v12 }
 0x6e4   : > { %v3000_v41 = vpop.xlane.xlu0 %2999 }
 0x6e5   : > { %4542 = vpow2.f32 %v3158_v13  ;;  %v3090_v1 = vsub.f32 %v5281_v28, %v3000_v41  ;;  %v3091_v17 = vsub.f32 %v5283_v29, %v3000_v41 }
 0x6e6   : > { %v5456_v53 = vpop.eup %4530  ;;  %4544 = vpow2.f32 %v3160_v4 }
 0x6e7   : > { %v5458_v37 = vpop.eup %4532  ;;  %v3162_v27 = vmul.f32 1.442695, %v3090_v1  ;;  %v3164_v40 = vmul.f32 1.442695, %v3091_v17 }
 0x6e8   : > { %v3003_v21 = vpop.xlane.xlu1 %3002  ;;  %v3274_v23 = vadd.f32 %v5458_v37, %v5456_v53 }
 0x6e9   : > { %4546 = vpow2.f32 %v3162_v27  ;;  %v3092_v25 = vsub.f32 %v5287_v33, %v3003_v21  ;;  %v3093_v10 = vsub.f32 %v5289_v18, %v3003_v21 }
 0x6ea   : > { %v5464_v34 = vpop.eup %4534  ;;  %4548 = vpow2.f32 %v3164_v40  ;;  %3275 = vadd.xlane.f32.xlu1 %v3274_v23 }
 0x6eb   : > { %v5466_v28 = vpop.eup %4536  ;;  %v3166_v29 = vmul.f32 1.442695, %v3092_v25  ;;  %v3168_v0 = vmul.f32 1.442695, %v3093_v10 }
 0x6ec   : > { %v3006_v47 = vpop.xlane.xlu0 %3005  ;;  %v3277_v6 = vadd.f32 %v5466_v28, %v5464_v34 }
 0x6ed   : > { %4550 = vpow2.f32 %v3166_v29  ;;  %v3094_v7 = vsub.f32 %v5293_v39, %v3006_v47  ;;  %v3095_v62 = vsub.f32 %v5295_v58, %v3006_v47 }
 0x6ee   : > { %v5472_v33 = vpop.eup %4538  ;;  %4552 = vpow2.f32 %v3168_v0  ;;  %3278 = vadd.xlane.f32.xlu1 %v3277_v6 }
 0x6ef   : > { %v5474_v18 = vpop.eup %4540  ;;  %v3170_v55 = vmul.f32 1.442695, %v3094_v7  ;;  %v3172_v12 = vmul.f32 1.442695, %v3095_v62 }
 0x6f0   : > { %v3009_v13 = vpop.xlane.xlu1 %3008  ;;  %v3280_v4 = vadd.f32 %v5474_v18, %v5472_v33 }
 0x6f1   : > { %4554 = vpow2.f32 %v3170_v55  ;;  %v3096_v41 = vsub.f32 %v5299_v43, %v3009_v13  ;;  %v3097_v1 = vsub.f32 %v5301_v44, %v3009_v13 }
 0x6f2   : > { %v5480_v39 = vpop.eup %4542  ;;  %4556 = vpow2.f32 %v3172_v12  ;;  %3281 = vadd.xlane.f32.xlu1 %v3280_v4 }
 0x6f3   : > { %v5482_v58 = vpop.eup %4544  ;;  %v3174_v17 = vmul.f32 1.442695, %v3096_v41  ;;  %v3176_v27 = vmul.f32 1.442695, %v3097_v1 }
 0x6f4   : > { %v3012_v40 = vpop.xlane.xlu0 %3011  ;;  %v3283_v21 = vadd.f32 %v5482_v58, %v5480_v39 }
 0x6f5   : > { %4558 = vpow2.f32 %v3174_v17  ;;  %v3098_v23 = vsub.f32 %v5303_v45, %v3012_v40  ;;  %v3099_v25 = vsub.f32 %v5307_v48, %v3012_v40 }
 0x6f6   : > { %v5488_v43 = vpop.eup %4546  ;;  %4560 = vpow2.f32 %v3176_v27  ;;  %3284 = vadd.xlane.f32.xlu1 %v3283_v21 }
 0x6f7   : > { %v5490_v44 = vpop.eup %4548  ;;  %v3178_v10 = vmul.f32 1.442695, %v3098_v23  ;;  %v3180_v29 = vmul.f32 1.442695, %v3099_v25 }
 0x6f8   : > { %v3015_v0 = vpop.xlane.xlu1 %3014  ;;  %v3286_v47 = vadd.f32 %v5490_v44, %v5488_v43 }
 0x6f9   : > { %4562 = vpow2.f32 %v3178_v10  ;;  %v3100_v6 = vsub.f32 %v5309_v50, %v3015_v0  ;;  %v3101_v7 = vsub.f32 %v5313_v52, %v3015_v0  ;;  %v2917_v50 = vpop.f32.mrf.mxu0 }
 0x6fa   : > { %v5496_v45 = vpop.eup %4550  ;;  %4564 = vpow2.f32 %v3180_v29  ;;  %3287 = vadd.xlane.f32.xlu1 %v3286_v47  ;;  %v5516_v47 = vmul.f32 0.5, %v2917_v50 }
 0x6fb   : > { %v5498_v48 = vpop.eup %4552  ;;  %v3182_v62 = vmul.f32 1.442695, %v3100_v6  ;;  %v3184_v55 = vmul.f32 1.442695, %v3101_v7  ;;  %v2919_v25 = vpop.f32.mrf.mxu0 }
 0x6fc   : > { %v3018_v12 = vpop.xlane.xlu0 %3017  ;;  %v3289_v13 = vadd.f32 %v5498_v48, %v5496_v45  ;;  %v5518_v7 = vmul.f32 0.5, %v2919_v25 }
 0x6fd   : > { %4566 = vpow2.f32 %v3182_v62  ;;  %v3102_v4 = vsub.f32 %v5315_v54, %v3018_v12  ;;  %v3103_v41 = vsub.f32 %v5319_v57, %v3018_v12 }
 0x6fe   : > { %v5504_v1 = vpop.eup %4554  ;;  %4568 = vpow2.f32 %v3184_v55  ;;  %3290 = vadd.xlane.f32.xlu1 %v3289_v13 }
 0x6ff   : > { %v5506_v52 = vpop.eup %4556  ;;  %v3186_v17 = vmul.f32 1.442695, %v3102_v4  ;;  %v3188_v27 = vmul.f32 1.442695, %v3103_v41 }
 0x700   : > { %v3021_v40 = vpop.xlane.xlu1 %3020  ;;  %v3292_v21 = vadd.f32 %v5506_v52, %v5504_v1 }
 0x701   : > { %4570 = vpow2.f32 %v3186_v17  ;;  %v3104_v23 = vsub.f32 %v5321_v60, %v3021_v40  ;;  %v3105_v54 = vsub.f32 %v5325_v63, %v3021_v40  ;;  %v3079_v17 = vmax.f32 %v5516_v47, %v5518_v7 }
 0x702   : > { %v5512_v57 = vpop.eup %4558  ;;  %4572 = vpow2.f32 %v3188_v27  ;;  %3293 = vadd.xlane.f32.xlu1 %v3292_v21 }
 0x703   : > { %v5514_v10 = vpop.eup %4560  ;;  %v3190_v29 = vmul.f32 1.442695, %v3104_v23  ;;  %v3192_v0 = vmul.f32 1.442695, %v3105_v54 }
 0x704   : > { %v3024_v6 = vpop.xlane.xlu0 %3023  ;;  %v3295_v62 = vadd.f32 %v5514_v10, %v5512_v57 }
 0x705   : > { %4574 = vpow2.f32 %v3190_v29  ;;  %v3106_v60 = vsub.f32 %v5327_v19, %v3024_v6  ;;  %v3107_v63 = vsub.f32 %v5331_v5, %v3024_v6 }
 0x706   : > { %v5524_v55 = vpop.eup %4562  ;;  %4576 = vpow2.f32 %v3192_v0  ;;  %3296 = vadd.xlane.f32.xlu1 %v3295_v62 }
 0x707   : > { %v5526_v12 = vpop.eup %4564  ;;  %v3194_v13 = vmul.f32 1.442695, %v3106_v60  ;;  %v3196_v4 = vmul.f32 1.442695, %v3107_v63 }
 0x708   : > { %v3027_v41 = vpop.xlane.xlu1 %3026  ;;  %v3298_v50 = vadd.f32 %v5526_v12, %v5524_v55 }
 0x709   : > { %4578 = vpow2.f32 %v3194_v13  ;;  %v3108_v19 = vsub.f32 %v5333_v9, %v3027_v41  ;;  %v3109_v5 = vsub.f32 %v5337_v14, %v3027_v41 }
 0x70a   : > { %v5534_v27 = vpop.eup %4566  ;;  %4580 = vpow2.f32 %v3196_v4  ;;  %3299 = vadd.xlane.f32.xlu0 %v3298_v50  ;;  %3080 = vmax.xlane.f32.xlu1 %v3079_v17 }
 0x70b   : > { %v5536_v40 = vpop.eup %4568  ;;  %v3198_v21 = vmul.f32 1.442695, %v3108_v19  ;;  %v3200_v23 = vmul.f32 1.442695, %v3109_v5 }
 0x70c   : > { %v3030_v54 = vpop.xlane.xlu0 %3029  ;;  %v3301_v25 = vadd.f32 %v5536_v40, %v5534_v27 }
 0x70d   : > { %4582 = vpow2.f32 %v3198_v21  ;;  %v3110_v29 = vsub.f32 %v5339_v20, %v3030_v54  ;;  %v3111_v9 = vsub.f32 %v5343_v26, %v3030_v54 }
 0x70e   : > { %v5542_v0 = vpop.eup %4570  ;;  %4584 = vpow2.f32 %v3200_v23  ;;  %3302 = vadd.xlane.f32.xlu1 %v3301_v25 }
 0x70f   : > { %v5544_v14 = vpop.eup %4572  ;;  %v3202_v6 = vmul.f32 1.442695, %v3110_v29  ;;  %v3204_v62 = vmul.f32 1.442695, %v3111_v9 }
 0x710   : > { %v3033_v60 = vpop.xlane.xlu1 %3032  ;;  %v3304_v63 = vadd.f32 %v5544_v14, %v5542_v0 }
 0x711   : > { %4586 = vpow2.f32 %v3202_v6  ;;  %v3112_v13 = vsub.f32 %v5345_v36, %v3033_v60  ;;  %v3113_v4 = vsub.f32 %v5349_v32, %v3033_v60 }
 0x712   : > { %v5550_v20 = vpop.eup %4574  ;;  %4588 = vpow2.f32 %v3204_v62  ;;  %3305 = vadd.xlane.f32.xlu1 %v3304_v63 }
 0x713   : > { %v5552_v26 = vpop.eup %4576  ;;  %v3206_v41 = vmul.f32 1.442695, %v3112_v13  ;;  %v3208_v50 = vmul.f32 1.442695, %v3113_v4 }
 0x714   : > { %v3036_v17 = vpop.xlane.xlu0 %3035  ;;  %v3307_v19 = vadd.f32 %v5552_v26, %v5550_v20 }
 0x715   : > { %4590 = vpow2.f32 %v3206_v41  ;;  %v3114_v5 = vsub.f32 %v5351_v35, %v3036_v17  ;;  %v3115_v21 = vsub.f32 %v5355_v42, %v3036_v17 }
 0x716   : > { %v5558_v36 = vpop.eup %4578  ;;  %4592 = vpow2.f32 %v3208_v50  ;;  %3308 = vadd.xlane.f32.xlu1 %v3307_v19 }
 0x717   : > { %v5560_v32 = vpop.eup %4580  ;;  %v3210_v23 = vmul.f32 1.442695, %v3114_v5  ;;  %v3212_v54 = vmul.f32 1.442695, %v3115_v21 }
 0x718   : > { %v3039_v25 = vpop.xlane.xlu1 %3038  ;;  %v3310_v29 = vadd.f32 %v5560_v32, %v5558_v36 }
 0x719   : > { %4594 = vpow2.f32 %v3210_v23  ;;  %v3116_v9 = vsub.f32 %v5357_v11, %v3039_v25  ;;  %v3117_v6 = vsub.f32 %v5361_v49, %v3039_v25 }
 0x71a   : > { %v5566_v35 = vpop.eup %4582  ;;  %4596 = vpow2.f32 %v3212_v54  ;;  %3311 = vadd.xlane.f32.xlu1 %v3310_v29 }
 0x71b   : > { %v5568_v42 = vpop.eup %4584  ;;  %v3214_v62 = vmul.f32 1.442695, %v3116_v9  ;;  %v3216_v60 = vmul.f32 1.442695, %v3117_v6 }
 0x71c   : > { %v3042_v63 = vpop.xlane.xlu0 %3041  ;;  %v3313_v13 = vadd.f32 %v5568_v42, %v5566_v35 }
 0x71d   : > { %4598 = vpow2.f32 %v3214_v62  ;;  %v3118_v4 = vsub.f32 %v5363_v24, %v3042_v63  ;;  %v3119_v41 = vsub.f32 %v5367_v56, %v3042_v63 }
 0x71e   : > { %v5574_v11 = vpop.eup %4586  ;;  %4600 = vpow2.f32 %v3216_v60  ;;  %3314 = vadd.xlane.f32.xlu1 %v3313_v13 }
 0x71f   : > { %v5576_v49 = vpop.eup %4588  ;;  %v3218_v50 = vmul.f32 1.442695, %v3118_v4  ;;  %v3220_v17 = vmul.f32 1.442695, %v3119_v41 }
 0x720   : > { %v3045_v19 = vpop.xlane.xlu1 %3044  ;;  %v3316_v5 = vadd.f32 %v5576_v49, %v5574_v11 }
 0x721   : > { %4602 = vpow2.f32 %v3218_v50  ;;  %v3120_v21 = vsub.f32 %v5369_v61, %v3045_v19  ;;  %v3121_v23 = vsub.f32 %v5373_v3, %v3045_v19 }
 0x722   : > { %v5582_v24 = vpop.eup %4590  ;;  %4604 = vpow2.f32 %v3220_v17  ;;  %3317 = vadd.xlane.f32.xlu1 %v3316_v5 }
 0x723   : > { %v5584_v56 = vpop.eup %4592  ;;  %v3222_v54 = vmul.f32 1.442695, %v3120_v21  ;;  %v3224_v25 = vmul.f32 1.442695, %v3121_v23 }
 0x724   : > { %v3048_v29 = vpop.xlane.xlu0 %3047  ;;  %v3319_v9 = vadd.f32 %v5584_v56, %v5582_v24 }
 0x725   : > { %4606 = vpow2.f32 %v3222_v54  ;;  %v3122_v6 = vsub.f32 %v5375_v8, %v3048_v29  ;;  %v3123_v62 = vsub.f32 %v5379_v16, %v3048_v29 }
 0x726   : > { %v5590_v61 = vpop.eup %4594  ;;  %4608 = vpow2.f32 %v3224_v25  ;;  %3320 = vadd.xlane.f32.xlu1 %v3319_v9 }
 0x727   : > { %v5592_v3 = vpop.eup %4596  ;;  %v3226_v60 = vmul.f32 1.442695, %v3122_v6  ;;  %v3228_v63 = vmul.f32 1.442695, %v3123_v62 }
 0x728   : > { %v3051_v13 = vpop.xlane.xlu1 %3050  ;;  %v3322_v4 = vadd.f32 %v5592_v3, %v5590_v61 }
 0x729   : > { %4610 = vpow2.f32 %v3226_v60  ;;  %v3124_v41 = vsub.f32 %v5381_v22, %v3051_v13  ;;  %v3125_v50 = vsub.f32 %v5385_v31, %v3051_v13 }
 0x72a   : > { %v5598_v8 = vpop.eup %4598  ;;  %4612 = vpow2.f32 %v3228_v63  ;;  %3323 = vadd.xlane.f32.xlu0 %v3322_v4 }
 0x72b   : > { %v5600_v16 = vpop.eup %4600  ;;  %v3230_v17 = vmul.f32 1.442695, %v3124_v41  ;;  %v3232_v19 = vmul.f32 1.442695, %v3125_v50 }
 0x72c   : > { %v3054_v5 = vpop.xlane.xlu0 %3053  ;;  %v3325_v21 = vadd.f32 %v5600_v16, %v5598_v8 }
 0x72d   : > { %4614 = vpow2.f32 %v3230_v17  ;;  %v3126_v23 = vsub.f32 %v5387_v38, %v3054_v5  ;;  %v3127_v54 = vsub.f32 %v5391_v46, %v3054_v5 }
 0x72e   : > { %v5606_v22 = vpop.eup %4602  ;;  %4616 = vpow2.f32 %v3232_v19  ;;  %3326 = vadd.xlane.f32.xlu1 %v3325_v21 }
 0x72f   : > { %v5608_v31 = vpop.eup %4604  ;;  %v3234_v25 = vmul.f32 1.442695, %v3126_v23  ;;  %v3236_v29 = vmul.f32 1.442695, %v3127_v54  ;;  %v6004_v54 = vld [vmem:[#allocation12_spill] sm:$0xff] }
 0x730   : > { %v3057_v9 = vpop.xlane.xlu0 %3056  ;;  %v3328_v6 = vadd.f32 %v5608_v31, %v5606_v22 }
 0x731   : > { %4618 = vpow2.f32 %v3234_v25  ;;  %v3128_v62 = vsub.f32 %v5393_v51, %v3057_v9  ;;  %v3129_v60 = vsub.f32 %v5397_v59, %v3057_v9 }
 0x732   : > { %v5614_v38 = vpop.eup %4606  ;;  %4620 = vpow2.f32 %v3236_v29  ;;  %3329 = vadd.xlane.f32.xlu0 %v3328_v6  ;;  %v6005_v29 = vld [vmem:[#allocation13_spill] sm:$0xff] }
 0x733   : > { %v5616_v46 = vpop.eup %4608  ;;  %v3238_v63 = vmul.f32 1.442695, %v3128_v62  ;;  %v3240_v13 = vmul.f32 1.442695, %v3129_v60 }
 0x734   : > { %v3060_v4 = vpop.xlane.xlu0 %3059  ;;  %v3331_v41 = vadd.f32 %v5616_v46, %v5614_v38 }
 0x735   : > { %4622 = vpow2.f32 %v3238_v63  ;;  %v3130_v50 = vsub.f32 %v5399_v2, %v3060_v4  ;;  %v3131_v17 = vsub.f32 %v5403_v15, %v3060_v4  ;;  %v6008_v4 = vld [vmem:[#allocation10_spill] sm:$0xff] }
 0x736   : > { %v5622_v51 = vpop.eup %4610  ;;  %4624 = vpow2.f32 %v3240_v13  ;;  %3332 = vadd.xlane.f32.xlu1 %v3331_v41 }
 0x737   : > { %v5624_v59 = vpop.eup %4612  ;;  %v3242_v19 = vmul.f32 1.442695, %v3130_v50  ;;  %v3244_v5 = vmul.f32 1.442695, %v3131_v17  ;;  %v6009_v50 = vld [vmem:[#allocation11_spill] sm:$0xff] }
 0x738   : > { %v3063_v21 = vpop.xlane.xlu1 %3062  ;;  %v3334_v23 = vadd.f32 %v5624_v59, %v5622_v51 }
 0x739   : > { %4626 = vpow2.f32 %v3242_v19  ;;  %v3132_v25 = vsub.f32 %v6004_v54, %v3063_v21  ;;  %v3133_v9 = vsub.f32 %v6005_v29, %v3063_v21  ;;  %v6010_v19 = vld [vmem:[#allocation14_spill] sm:$0xff] }
 0x73a   : > { %v5630_v2 = vpop.eup %4614  ;;  %4628 = vpow2.f32 %v3244_v5  ;;  %3335 = vadd.xlane.f32.xlu0 %v3334_v23  ;;  %v6011_v5 = vld [vmem:[#allocation15_spill] sm:$0xff] }
 0x73b   : > { %6006 = vst [vmem:[#allocation12_spill] sm:$0xff] %v5630_v2  ;;  %v5632_v15 = vpop.eup %4616  ;;  %v3246_v6 = vmul.f32 1.442695, %v3132_v25  ;;  %v3248_v62 = vmul.f32 1.442695, %v3133_v9 }
 0x73c   : > { %6007 = vst [vmem:[#allocation13_spill] sm:$0xff] %v5632_v15  ;;  %v2005_v60 = vpop.permute.xlu0 %2004  ;;  %v3066_v63 = vpop.xlane.xlu1 %3065  ;;  %v3337_v13 = vadd.f32 %v5632_v15, %v5630_v2 }
 0x73d   : > { %4630 = vpow2.f32 %v3246_v6  ;;  %v2094_v41 = vadd.f32 %v6008_v4, %v2005_v60  ;;  %v2096_v17 = vadd.f32 %v6009_v50, %v2005_v60  ;;  %v3134_v21 = vsub.f32 %v6010_v19, %v3066_v63  ;;  %v6012_v60 = vld [vmem:[#allocation16_spill] sm:$0xff]  ;;  %v6013_v50 = vld [vmem:[#allocation17_spill] sm:$0xff] }
 0x73e   : > { %v5639_v54 = vpop.eup %4618  ;;  %4632 = vpow2.f32 %v3248_v62  ;;  %v3135_v23 = vsub.f32 %v6011_v5, %v3066_v63  ;;  %3338 = vadd.xlane.f32.xlu1 %v3337_v13 }
 0x73f   : > { %v5642_v25 = vpop.eup %4620  ;;  %2100 = vst [vmem:[#allocation2 + $0x18] sm:$0xf] %v2094_v41  ;;  %2101 = vst [vmem:[#allocation2 + $0x8] sm:$0xf] %v2096_v17  ;;  %v3250_v29 = vmul.f32 1.442695, %v3134_v21 }
 0x740   : > { %v3252_v9 = vmul.f32 1.442695, %v3135_v23  ;;  %v3069_v2 = vpop.xlane.xlu1 %3068  ;;  %v3340_v6 = vadd.f32 %v5642_v25, %v5639_v54  ;;  %v6016_v21 = vld [vmem:[#allocation18_spill] sm:$0xff]  ;;  %v6017_v23 = vld [vmem:[#allocation19_spill] sm:$0xff] }
 0x741   : > { %4634 = vpow2.f32 %v3250_v29  ;;  %v3136_v4 = vsub.f32 %v6012_v60, %v3069_v2  ;;  %v3137_v19 = vsub.f32 %v6013_v50, %v3069_v2 }
 0x742   : > { %v5648_v15 = vpop.eup %4622  ;;  %4636 = vpow2.f32 %v3252_v9  ;;  %3341 = vadd.xlane.f32.xlu0 %v3340_v6 }
 0x743   : > { %6014 = vst [vmem:[#allocation10_spill] sm:$0xff] %v5648_v15  ;;  %v5650_v62 = vpop.eup %4624  ;;  %v3254_v63 = vmul.f32 1.442695, %v3136_v4  ;;  %v3256_v13 = vmul.f32 1.442695, %v3137_v19 }
 0x744   : > { %6015 = vst [vmem:[#allocation11_spill] sm:$0xff] %v5650_v62  ;;  %v3072_v41 = vpop.xlane.xlu1 %3071  ;;  %v3343_v17 = vadd.f32 %v5650_v62, %v5648_v15 }
 0x745   : > { %4638 = vpow2.f32 %v3254_v63  ;;  %v3138_v5 = vsub.f32 %v6016_v21, %v3072_v41  ;;  %v3139_v29 = vsub.f32 %v6017_v23, %v3072_v41  ;;  %v6019_v21 = vld [vmem:[#allocation20_spill] sm:$0xff]  ;;  %v6020_v41 = vld [vmem:[#allocation21_spill] sm:$0xff] }
 0x746   : > { %v5656_v60 = vpop.eup %4626  ;;  %4640 = vpow2.f32 %v3256_v13  ;;  %3344 = vadd.xlane.f32.xlu1 %v3343_v17  ;;  %v2107_v2 = vld [vmem:[#allocation2 + $0x8] sm:$0xf]  ;;  %v2106_v9 = vld [vmem:[#allocation2 + $0x18] sm:$0xf] }
 0x747   : > { %6018 = vst [vmem:[#allocation14_spill] sm:$0xff] %v5656_v60  ;;  %v5658_v6 = vpop.eup %4628  ;;  %v3258_v50 = vmul.f32 1.442695, %v3138_v5  ;;  %v3260_v4 = vmul.f32 1.442695, %v3139_v29  ;;  %3496 = vmatprep.subr.mxu1 %v2107_v2 }
 0x748   : > { %3497 = vmatpush1.xpose.msra.mxu1 %v2106_v9  ;;  %v3075_v19 = vpop.xlane.xlu1 %3074  ;;  %v3346_v63 = vadd.f32 %v5658_v6, %v5656_v60 }
 0x749   : > { %4642 = vpow2.f32 %v3258_v50  ;;  %v3140_v15 = vsub.f32 %v6019_v21, %v3075_v19  ;;  %v3141_v23 = vsub.f32 %v6020_v41, %v3075_v19  ;;  %v6021_v50 = vld [vmem:[#allocation22_spill] sm:$0xff] }
 0x74a   : > { %v5664_v62 = vpop.eup %4630  ;;  %4644 = vpow2.f32 %v3260_v4  ;;  %3347 = vadd.xlane.f32.xlu0 %v3346_v63 }
 0x74b   : > { %v5666_v13 = vpop.eup %4632  ;;  %v3262_v17 = vmul.f32 1.442695, %v3140_v15  ;;  %v3264_v5 = vmul.f32 1.442695, %v3141_v23 }
 0x74c   : > { %v3078_v29 = vpop.xlane.xlu1 %3077  ;;  %v3349_v2 = vadd.f32 %v5666_v13, %v5664_v62 }
 0x74d   : > { %4646 = vpow2.f32 %v3262_v17  ;;  %v3142_v9 = vsub.f32 %v5435_v30, %v3078_v29  ;;  %v3143_v60 = vsub.f32 %v6021_v50, %v3078_v29 }
 0x74e   : > { %v5672_v21 = vpop.eup %4634  ;;  %4648 = vpow2.f32 %v3264_v5  ;;  %3350 = vadd.xlane.f32.xlu1 %v3349_v2 }
 0x74f   : > { %v5674_v19 = vpop.eup %4636  ;;  %v3266_v4 = vmul.f32 1.442695, %v3142_v9  ;;  %v3268_v63 = vmul.f32 1.442695, %v3143_v60 }
 0x750   : > { %v3352_v15 = vadd.f32 %v5674_v19, %v5672_v21 }
 0x751   : > { %4650 = vpow2.f32 %v3266_v4 }
 0x752   : > { %v5678_v41 = vpop.eup %4638  ;;  %4652 = vpow2.f32 %v3268_v63  ;;  %3353 = vadd.xlane.f32.xlu0 %v3352_v15 }
 0x753   : > { %6022 = vst [vmem:[#allocation15_spill] sm:$0xff] %v5678_v41  ;;  %v5680_v23 = vpop.eup %4640 }
 0x754   : > { %v3355_v30 = vadd.f32 %v5680_v23, %v5678_v41 }
 0x756   : > { %v5684_v17 = vpop.eup %4642  ;;  %3356 = vadd.xlane.f32.xlu1 %v3355_v30 }
 0x757   : > { %6023 = vst [vmem:[#allocation16_spill] sm:$0xff] %v5684_v17  ;;  %v5686_v5 = vpop.eup %4644 }
 0x758   : > { %6024 = vst [vmem:[#allocation17_spill] sm:$0xff] %v5686_v5  ;;  %v3358_v60 = vadd.f32 %v5686_v5, %v5684_v17 }
 0x75a   : > { %v5690_v29 = vpop.eup %4646  ;;  %3359 = vadd.xlane.f32.xlu0 %v3358_v60 }
 0x75b   : > { %6025 = vst [vmem:[#allocation18_spill] sm:$0xff] %v5690_v29  ;;  %v5692_v2 = vpop.eup %4648 }
 0x75c   : > { %6026 = vst [vmem:[#allocation19_spill] sm:$0xff] %v5692_v2  ;;  %v3361_v9 = vadd.f32 %v5692_v2, %v5690_v29 }
 0x75e   : > { %v5696_v50 = vpop.eup %4650  ;;  %3362 = vadd.xlane.f32.xlu1 %v3361_v9 }
 0x75f   : > { %6027 = vst [vmem:[#allocation20_spill] sm:$0xff] %v5696_v50  ;;  %v5698_v4 = vpop.eup %4652 }
 0x760   : > { %v3364_v63 = vadd.f32 %v5698_v4, %v5696_v50 }
 0x762   : > { %3365 = vadd.xlane.f32.xlu0 %v3364_v63 }
 0x773   : > { %v3276_v15 = vpop.xlane.xlu1 %3275 }
 0x774   : > { %4654 = vrcp.f32 %v3276_v15 }
 0x777   : > { %v3279_v30 = vpop.xlane.xlu1 %3278 }
 0x778   : > { %4656 = vrcp.f32 %v3279_v30 }
 0x77b   : > { %v3282_v17 = vpop.xlane.xlu1 %3281 }
 0x77c   : > { %4658 = vrcp.f32 %v3282_v17 }
 0x77f   : > { %v3285_v60 = vpop.xlane.xlu1 %3284 }
 0x780   : > { %4660 = vrcp.f32 %v3285_v60 }
 0x781   : > { %v4655_v5 = vpop.eup %4654 }
 0x782   : > { %v3403_v29 = vmul.f32 %v4655_v5, %v5458_v37  ;;  %v3402_v2 = vmul.f32 %v4655_v5, %v5456_v53 }
 0x783   : > { %v3288_v9 = vpop.xlane.xlu1 %3287 }
 0x784   : > { %4662 = vrcp.f32 %v3288_v9  ;;  %3530 = vmatprep.mubr.f32.mxu1 %v3403_v29 }
 0x785   : > { %v4657_v41 = vpop.eup %4656  ;;  %3531 = vmatmul.mubr.f32.vlgmr.msra.gmra.mxu1 %v3402_v2 }
 0x786   : > { %v3405_v63 = vmul.f32 %v4657_v41, %v5466_v28  ;;  %v3404_v15 = vmul.f32 %v4657_v41, %v5464_v34 }
 0x787   : > { %v3291_v50 = vpop.xlane.xlu1 %3290 }
 0x788   : > { %4664 = vrcp.f32 %v3291_v50  ;;  %3535 = vmatprep.mubr.f32.mxu1 %v3405_v63 }
 0x789   : > { %v4659_v17 = vpop.eup %4658  ;;  %3536 = vmatmul.mubr.f32.gmra.mxu1 %v3404_v15 }
 0x78a   : > { %v3407_v30 = vmul.f32 %v4659_v17, %v5474_v18  ;;  %v3406_v37 = vmul.f32 %v4659_v17, %v5472_v33 }
 0x78b   : > { %v3294_v60 = vpop.xlane.xlu1 %3293 }
 0x78c   : > { %4666 = vrcp.f32 %v3294_v60  ;;  %3540 = vmatprep.mubr.f32.mxu1 %v3407_v30 }
 0x78d   : > { %v4661_v53 = vpop.eup %4660  ;;  %3541 = vmatmul.mubr.f32.gmra.mxu1 %v3406_v37 }
 0x78e   : > { %v3409_v5 = vmul.f32 %v4661_v53, %v5482_v58  ;;  %v3408_v28 = vmul.f32 %v4661_v53, %v5480_v39 }
 0x78f   : > { %v3297_v29 = vpop.xlane.xlu1 %3296 }
 0x790   : > { %4668 = vrcp.f32 %v3297_v29  ;;  %3545 = vmatprep.mubr.f32.mxu1 %v3409_v5 }
 0x791   : > { %v4663_v34 = vpop.eup %4662  ;;  %3546 = vmatmul.mubr.f32.gmra.mxu1 %v3408_v28 }
 0x792   : > { %v3411_v41 = vmul.f32 %v4663_v34, %v5490_v44  ;;  %v3410_v18 = vmul.f32 %v4663_v34, %v5488_v43 }
 0x793   : > { %v3300_v2 = vpop.xlane.xlu0 %3299  ;;  %v3081_v33 = vpop.xlane.xlu1 %3080 }
 0x794   : > { %4670 = vrcp.f32 %v3300_v2  ;;  %v3144_v50 = vsub.f32 %v5516_v47, %v3081_v33  ;;  %v3145_v9 = vsub.f32 %v5518_v7, %v3081_v33  ;;  %3550 = vmatprep.mubr.f32.mxu1 %v3411_v41 }
 0x795   : > { %v4665_v58 = vpop.eup %4664  ;;  %3551 = vmatmul.mubr.f32.gmra.mxu1 %v3410_v18 }
 0x796   : > { %v3270_v39 = vmul.f32 1.442695, %v3144_v50  ;;  %v3272_v63 = vmul.f32 1.442695, %v3145_v9  ;;  %v3413_v15 = vmul.f32 %v4665_v58, %v5498_v48  ;;  %v3412_v17 = vmul.f32 %v4665_v58, %v5496_v45 }
 0x797   : > { %v3303_v30 = vpop.xlane.xlu1 %3302 }
 0x798   : > { %4672 = vpow2.f32 %v3270_v39  ;;  %3555 = vmatprep.mubr.f32.mxu1 %v3413_v15 }
 0x799   : > { %v4667_v43 = vpop.eup %4666  ;;  %4674 = vpow2.f32 %v3272_v63  ;;  %3556 = vmatmul.mubr.f32.gmra.mxu1 %v3412_v17 }
 0x79a   : > { %4676 = vrcp.f32 %v3303_v30  ;;  %v3415_v44 = vmul.f32 %v4667_v43, %v5506_v52  ;;  %v3414_v47 = vmul.f32 %v4667_v43, %v5504_v1 }
 0x79b   : > { %v3306_v7 = vpop.xlane.xlu1 %3305 }
 0x79c   : > { %4678 = vrcp.f32 %v3306_v7  ;;  %3560 = vmatprep.mubr.f32.mxu1 %v3415_v44 }
 0x79d   : > { %v4669_v37 = vpop.eup %4668  ;;  %3561 = vmatmul.mubr.f32.gmra.mxu1 %v3414_v47 }
 0x79e   : > { %v3417_v48 = vmul.f32 %v4669_v37, %v5514_v10  ;;  %v3416_v45 = vmul.f32 %v4669_v37, %v5512_v57 }
 0x79f   : > { %v3309_v60 = vpop.xlane.xlu1 %3308 }
 0x7a0   : > { %4680 = vrcp.f32 %v3309_v60  ;;  %3565 = vmatprep.mubr.f32.mxu1 %v3417_v48 }
 0x7a1   : > { %v4671_v53 = vpop.eup %4670  ;;  %3566 = vmatmul.mubr.f32.gmra.mxu1 %v3416_v45 }
 0x7a2   : > { %v3419_v5 = vmul.f32 %v4671_v53, %v5526_v12  ;;  %v3418_v52 = vmul.f32 %v4671_v53, %v5524_v55 }
 0x7a3   : > { %v3312_v28 = vpop.xlane.xlu1 %3311 }
 0x7a4   : > { %4682 = vrcp.f32 %v3312_v28  ;;  %3570 = vmatprep.mubr.f32.mxu1 %v3419_v5 }
 0x7a5   : > { %v5722_v1 = vpop.eup %4672  ;;  %3571 = vmatmul.mubr.f32.gmra.mxu1 %v3418_v52 }
 0x7a6   : > { %v5724_v29 = vpop.eup %4674 }
 0x7a7   : > { %v4677_v10 = vpop.eup %4676  ;;  %v3315_v34 = vpop.xlane.xlu1 %3314  ;;  %v3367_v57 = vadd.f32 %v5724_v29, %v5722_v1 }
 0x7a8   : > { %4684 = vrcp.f32 %v3315_v34  ;;  %v3421_v41 = vmul.f32 %v4677_v10, %v5536_v40  ;;  %v3420_v12 = vmul.f32 %v4677_v10, %v5534_v27 }
 0x7a9   : > { %v4679_v18 = vpop.eup %4678  ;;  %3368 = vadd.xlane.f32.xlu1 %v3367_v57  ;;  %v6028_v57 = vld [vmem:[#allocation13_spill] sm:$0xff] }
 0x7aa   : > { %3575 = vmatprep.mubr.f32.mxu1 %v3421_v41  ;;  %v3423_v55 = vmul.f32 %v4679_v18, %v5544_v14  ;;  %v3422_v33 = vmul.f32 %v4679_v18, %v5542_v0 }
 0x7ab   : > { %3576 = vmatmul.mubr.f32.gmra.mxu1 %v3420_v12  ;;  %v3318_v2 = vpop.xlane.xlu1 %3317  ;;  %v6029_v12 = vld [vmem:[#allocation12_spill] sm:$0xff] }
 0x7ac   : > { %4686 = vrcp.f32 %v3318_v2  ;;  %3580 = vmatprep.mubr.f32.mxu1 %v3423_v55 }
 0x7ad   : > { %v4681_v50 = vpop.eup %4680 }
 0x7ae   : > { %v3425_v9 = vmul.f32 %v4681_v50, %v5552_v26  ;;  %v3424_v40 = vmul.f32 %v4681_v50, %v5550_v20 }
 0x7af   : > { %3581 = vmatmul.mubr.f32.gmra.mxu1 %v3422_v33  ;;  %v3321_v58 = vpop.xlane.xlu1 %3320  ;;  %v6030_v33 = vld [vmem:[#allocation11_spill] sm:$0xff] }
 0x7b0   : > { %4688 = vrcp.f32 %v3321_v58  ;;  %3585 = vmatprep.mubr.f32.mxu1 %v3425_v9  ;;  %v6031_v58 = vld [vmem:[#allocation10_spill] sm:$0xff] }
 0x7b1   : > { %v4683_v27 = vpop.eup %4682 }
 0x7b2   : > { %v3427_v39 = vmul.f32 %v4683_v27, %v5560_v32  ;;  %v3426_v63 = vmul.f32 %v4683_v27, %v5558_v36 }
 0x7b3   : > { %3586 = vmatmul.mubr.f32.gmra.mxu1 %v3424_v40  ;;  %v3324_v14 = vpop.xlane.xlu0 %3323 }
 0x7b4   : > { %4690 = vrcp.f32 %v3324_v14  ;;  %3590 = vmatprep.mubr.f32.mxu1 %v3427_v39  ;;  %v6032_v14 = vld [vmem:[#allocation14_spill] sm:$0xff] }
 0x7b5   : > { %v4685_v0 = vpop.eup %4684 }
 0x7b6   : > { %v3429_v15 = vmul.f32 %v4685_v0, %v5568_v42  ;;  %v3428_v17 = vmul.f32 %v4685_v0, %v5566_v35 }
 0x7b7   : > { %3591 = vmatmul.mubr.f32.gmra.mxu1 %v3426_v63  ;;  %v3327_v26 = vpop.xlane.xlu1 %3326 }
 0x7b8   : > { %4692 = vrcp.f32 %v3327_v26  ;;  %3595 = vmatprep.mubr.f32.mxu1 %v3429_v15 }
 0x7b9   : > { %v4687_v20 = vpop.eup %4686 }
 0x7ba   : > { %v3431_v30 = vmul.f32 %v4687_v20, %v5576_v49  ;;  %v3430_v43 = vmul.f32 %v4687_v20, %v5574_v11 }
 0x7bb   : > { %3596 = vmatmul.mubr.f32.gmra.mxu1 %v3428_v17  ;;  %v3330_v32 = vpop.xlane.xlu0 %3329 }
 0x7bc   : > { %4694 = vrcp.f32 %v3330_v32  ;;  %3600 = vmatprep.mubr.f32.mxu1 %v3431_v30 }
 0x7bd   : > { %v4689_v36 = vpop.eup %4688 }
 0x7be   : > { %v3433_v44 = vmul.f32 %v4689_v36, %v5584_v56  ;;  %v3432_v47 = vmul.f32 %v4689_v36, %v5582_v24  ;;  %v3691_v24 = vld [vmem:[%s5964_s9] sm:$0xf] }
 0x7bf   : > { %3601 = vmatmul.mubr.f32.gmra.mxu1 %v3430_v43  ;;  %v3333_v42 = vpop.xlane.xlu1 %3332  ;;  %4408 = vmatprep.subr.msk.mxu0 %vm2014_vm0, %v3691_v24 }
 0x7c0   : > { %4696 = vrcp.f32 %v3333_v42  ;;  %3605 = vmatprep.mubr.f32.mxu1 %v3433_v44  ;;  %4409 = vmatpush3.msk.msra.mxu0 %vm2014_vm0, %v3691_v24 }
 0x7c1   : > { %v4691_v35 = vpop.eup %4690 }
 0x7c2   : > { %v3435_v7 = vmul.f32 %v4691_v35, %v5592_v3  ;;  %v3434_v37 = vmul.f32 %v4691_v35, %v5590_v61 }
 0x7c3   : > { %3606 = vmatmul.mubr.f32.gmra.mxu1 %v3432_v47  ;;  %v3336_v49 = vpop.xlane.xlu0 %3335  ;;  %v6035_v47 = vld [vmem:[#allocation16_spill] sm:$0xff] }
 0x7c4   : > { %4698 = vrcp.f32 %v3336_v49  ;;  %3610 = vmatprep.mubr.f32.mxu1 %v3435_v7  ;;  %v6036_v7 = vld [vmem:[#allocation19_spill] sm:$0xff] }
 0x7c5   : > { %v4693_v11 = vpop.eup %4692 }
 0x7c6   : > { %v3437_v48 = vmul.f32 %v4693_v11, %v5600_v16  ;;  %v3436_v45 = vmul.f32 %v4693_v11, %v5598_v8 }
 0x7c7   : > { %3611 = vmatmul.mubr.f32.gmra.mxu1 %v3434_v37  ;;  %v3339_v56 = vpop.xlane.xlu1 %3338 }
 0x7c8   : > { %4700 = vrcp.f32 %v3339_v56  ;;  %3615 = vmatprep.mubr.f32.mxu1 %v3437_v48  ;;  %v6038_v48 = vld [vmem:[#allocation20_spill] sm:$0xff] }
 0x7c9   : > { %v4695_v3 = vpop.eup %4694 }
 0x7ca   : > { %v3439_v61 = vmul.f32 %v4695_v3, %v5608_v31  ;;  %v3438_v16 = vmul.f32 %v4695_v3, %v5606_v22 }
 0x7cb   : > { %3616 = vmatmul.mubr.f32.gmra.mxu1 %v3436_v45  ;;  %v3342_v60 = vpop.xlane.xlu0 %3341 }
 0x7cc   : > { %4702 = vrcp.f32 %v3342_v60  ;;  %3620 = vmatprep.mubr.f32.mxu1 %v3439_v61 }
 0x7cd   : > { %v4697_v8 = vpop.eup %4696 }
 0x7ce   : > { %v3441_v53 = vmul.f32 %v4697_v8, %v5616_v46  ;;  %v3440_v52 = vmul.f32 %v4697_v8, %v5614_v38 }
 0x7cf   : > { %3621 = vmatmul.mubr.f32.gmra.mxu1 %v3438_v16  ;;  %v3345_v5 = vpop.xlane.xlu1 %3344 }
 0x7d0   : > { %4704 = vrcp.f32 %v3345_v5  ;;  %3625 = vmatprep.mubr.f32.mxu1 %v3441_v53 }
 0x7d1   : > { %v4699_v28 = vpop.eup %4698 }
 0x7d2   : > { %v3443_v10 = vmul.f32 %v4699_v28, %v5624_v59  ;;  %v3442_v34 = vmul.f32 %v4699_v28, %v5622_v51 }
 0x7d3   : > { %3626 = vmatmul.mubr.f32.gmra.mxu1 %v3440_v52  ;;  %v3348_v31 = vpop.xlane.xlu0 %3347 }
 0x7d4   : > { %4706 = vrcp.f32 %v3348_v31  ;;  %3630 = vmatprep.mubr.f32.mxu1 %v3443_v10 }
 0x7d5   : > { %v4701_v22 = vpop.eup %4700 }
 0x7d6   : > { %v3445_v41 = vmul.f32 %v4701_v22, %v6028_v57  ;;  %v3444_v18 = vmul.f32 %v4701_v22, %v6029_v12 }
 0x7d7   : > { %3631 = vmatmul.mubr.f32.gmra.mxu1 %v3442_v34  ;;  %v3351_v46 = vpop.xlane.xlu1 %3350 }
 0x7d8   : > { %4708 = vrcp.f32 %v3351_v46  ;;  %3635 = vmatprep.mubr.f32.mxu1 %v3445_v41 }
 0x7d9   : > { %v4703_v38 = vpop.eup %4702 }
 0x7da   : > { %v3447_v55 = vmul.f32 %v4703_v38, %v5642_v25  ;;  %v3446_v2 = vmul.f32 %v4703_v38, %v5639_v54 }
 0x7db   : > { %3636 = vmatmul.mubr.f32.gmra.mxu1 %v3444_v18  ;;  %v3354_v59 = vpop.xlane.xlu0 %3353 }
 0x7dc   : > { %4710 = vrcp.f32 %v3354_v59  ;;  %3640 = vmatprep.mubr.f32.mxu1 %v3447_v55 }
 0x7dd   : > { %v4705_v51 = vpop.eup %4704 }
 0x7de   : > { %v3449_v50 = vmul.f32 %v4705_v51, %v6030_v33  ;;  %v3448_v40 = vmul.f32 %v4705_v51, %v6031_v58 }
 0x7df   : > { %3641 = vmatmul.mubr.f32.gmra.mxu1 %v3446_v2  ;;  %v3357_v9 = vpop.xlane.xlu1 %3356 }
 0x7e0   : > { %4712 = vrcp.f32 %v3357_v9  ;;  %3645 = vmatprep.mubr.f32.mxu1 %v3449_v50 }
 0x7e1   : > { %v4707_v27 = vpop.eup %4706 }
 0x7e2   : > { %v3451_v39 = vmul.f32 %v4707_v27, %v5658_v6  ;;  %v3450_v63 = vmul.f32 %v4707_v27, %v6032_v14 }
 0x7e3   : > { %3646 = vmatmul.mubr.f32.gmra.mxu1 %v3448_v40  ;;  %v3360_v25 = vpop.xlane.xlu0 %3359 }
 0x7e4   : > { %4714 = vrcp.f32 %v3360_v25  ;;  %3650 = vmatprep.mubr.f32.mxu1 %v3451_v39 }
 0x7e5   : > { %v4709_v54 = vpop.eup %4708 }
 0x7e6   : > { %v3453_v0 = vmul.f32 %v4709_v54, %v5666_v13  ;;  %v3452_v26 = vmul.f32 %v4709_v54, %v5664_v62  ;;  %v6033_v13 = vld [vmem:[#allocation15_spill] sm:$0xff]  ;;  %v6034_v62 = vld [vmem:[#allocation17_spill] sm:$0xff] }
 0x7e7   : > { %3651 = vmatmul.mubr.f32.gmra.mxu1 %v3450_v63  ;;  %v3363_v15 = vpop.xlane.xlu1 %3362 }
 0x7e8   : > { %4716 = vrcp.f32 %v3363_v15  ;;  %3655 = vmatprep.mubr.f32.mxu1 %v3453_v0 }
 0x7e9   : > { %v4711_v17 = vpop.eup %4710 }
 0x7ea   : > { %v3455_v20 = vmul.f32 %v4711_v17, %v5674_v19  ;;  %v3454_v30 = vmul.f32 %v4711_v17, %v5672_v21  ;;  %v6037_v21 = vld [vmem:[#allocation18_spill] sm:$0xff] }
 0x7eb   : > { %3656 = vmatmul.mubr.f32.gmra.mxu1 %v3452_v26  ;;  %v3366_v6 = vpop.xlane.xlu0 %3365 }
 0x7ec   : > { %4718 = vrcp.f32 %v3366_v6  ;;  %3660 = vmatprep.mubr.f32.mxu1 %v3455_v20 }
 0x7ed   : > { %v4713_v32 = vpop.eup %4712 }
 0x7ee   : > { %v3457_v43 = vmul.f32 %v4713_v32, %v5680_v23  ;;  %v3456_v36 = vmul.f32 %v4713_v32, %v6033_v13 }
 0x7ef   : > { %3661 = vmatmul.mubr.f32.gmra.mxu1 %v3454_v30 }
 0x7f0   : > { %3665 = vmatprep.mubr.f32.mxu1 %v3457_v43 }
 0x7f1   : > { %v4715_v44 = vpop.eup %4714 }
 0x7f2   : > { %v3459_v42 = vmul.f32 %v4715_v44, %v6034_v62  ;;  %v3458_v35 = vmul.f32 %v4715_v44, %v6035_v47 }
 0x7f3   : > { %3666 = vmatmul.mubr.f32.gmra.mxu1 %v3456_v36 }
 0x7f4   : > { %3670 = vmatprep.mubr.f32.mxu1 %v3459_v42 }
 0x7f5   : > { %v4717_v19 = vpop.eup %4716 }
 0x7f6   : > { %v3461_v49 = vmul.f32 %v4717_v19, %v6036_v7  ;;  %v3460_v37 = vmul.f32 %v4717_v19, %v6037_v21 }
 0x7f7   : > { %3671 = vmatmul.mubr.f32.gmra.mxu1 %v3458_v35 }
 0x7f8   : > { %3675 = vmatprep.mubr.f32.mxu1 %v3461_v49 }
 0x7f9   : > { %v4719_v11 = vpop.eup %4718 }
 0x7fa   : > { %v3463_v23 = vmul.f32 %v4719_v11, %v5698_v4  ;;  %v3462_v56 = vmul.f32 %v4719_v11, %v6038_v48 }
 0x7fb   : > { %3676 = vmatmul.mubr.f32.gmra.mxu1 %v3460_v37 }
 0x7fc   : > { %3680 = vmatprep.mubr.f32.mxu1 %v3463_v23 }
 0x7ff   : > { %3681 = vmatmul.mubr.f32.gmra.mxu1 %v3462_v56 }
 0x832   : > { %v3369_v45 = vpop.xlane.xlu1 %3368 }
 0x833   : > { %4720 = vrcp.f32 %v3369_v45 }
 0x840   : > { %v4721_v24 = vpop.eup %4720 }
 0x841   : > { %v3465_v3 = vmul.f32 %v4721_v24, %v5724_v29  ;;  %v3464_v61 = vmul.f32 %v4721_v24, %v5722_v1 }
 0x843   : > { %3685 = vmatprep.mubr.f32.mxu1 %v3465_v3 }
 0x844   : > { %3686 = vmatmul.mubr.f32.gmra.mxu1 %v3464_v61 }
 0x845   : > { %v3532_v60 = vpop.f32.mrf.mxu1 }
 0x846   : > { %4410 = vmatprep.mubr.msk.f32.mxu0 %vm2007_vm1, %v3532_v60  ;;  %v5817_v60 = vld [vmem:[#allocation7] ss:$0 sm:$0xff] }
 0x847   : > { %v3534_v16 = vpop.f32.mrf.mxu1 }
 0x849   : > { %v3537_v8 = vpop.f32.mrf.mxu1 }
 0x84a   : > { %4411 = vmatmul.mubr.msk.f32.vlgmr.msra.gmra.mxu0 %vm2007_vm1, %v3537_v8  ;;  %v4024_v8 = vld [vmem:[%s5815_s13 + $0x8] sm:$0xff] }
 0x84b   : > { %v3539_v4 = vpop.f32.mrf.mxu1 }
 0x84d   : > { %v3542_v53 = vpop.f32.mrf.mxu1 }
 0x84e   : > { %4413 = vmatprep.mubr.msk.f32.mxu0 %vm2007_vm1, %v3542_v53 }
 0x84f   : > { %v3544_v5 = vpop.f32.mrf.mxu1 }
 0x850   : > { %v4023_v5 = vld [vmem:[%s5815_s13] sm:$0xff] }
 0x851   : > { %v3547_v52 = vpop.f32.mrf.mxu1 }
 0x852   : > { %4414 = vmatmul.mubr.msk.f32.gmra.mxu0 %vm2007_vm1, %v3547_v52 }
 0x853   : > { %v3549_v29 = vpop.f32.mrf.mxu1 }
 0x855   : > { %v3552_v28 = vpop.f32.mrf.mxu1 }
 0x856   : > { %4416 = vmatprep.mubr.msk.f32.mxu0 %vm2007_vm1, %v3552_v28 }
 0x857   : > { %v3554_v1 = vpop.f32.mrf.mxu1 }
 0x859   : > { %v3557_v10 = vpop.f32.mrf.mxu1 }
 0x85a   : > { %4417 = vmatmul.mubr.msk.f32.gmra.mxu0 %vm2007_vm1, %v3557_v10  ;;  %v4026_v10 = vld [vmem:[%s5815_s13 + $0x18] sm:$0xff] }
 0x85b   : > { %v3559_v31 = vpop.f32.mrf.mxu1 }
 0x85d   : > { %v3562_v34 = vpop.f32.mrf.mxu1 }
 0x85e   : > { %4419 = vmatprep.mubr.msk.f32.mxu0 %vm2007_vm1, %v3562_v34 }
 0x85f   : > { %v3564_v22 = vpop.f32.mrf.mxu1 }
 0x860   : > { %v4025_v22 = vld [vmem:[%s5815_s13 + $0x10] sm:$0xff] }
 0x861   : > { %v3567_v57 = vpop.f32.mrf.mxu1 }
 0x862   : > { %4420 = vmatmul.mubr.msk.f32.gmra.mxu0 %vm2007_vm1, %v3567_v57 }
 0x863   : > { %v3569_v41 = vpop.f32.mrf.mxu1 }
 0x865   : > { %v3572_v46 = vpop.f32.mrf.mxu1 }
 0x866   : > { %4422 = vmatprep.mubr.msk.f32.mxu0 %vm2007_vm1, %v3572_v46 }
 0x867   : > { %v3574_v12 = vpop.f32.mrf.mxu1 }
 0x86b   : > { %v3577_v18 = vpop.f32.mrf.mxu1 }
 0x86c   : > { %4423 = vmatmul.mubr.msk.f32.gmra.mxu0 %vm2007_vm1, %v3577_v18  ;;  %v4028_v18 = vld [vmem:[%s5815_s13 + $0x28] sm:$0xff] }
 0x86d   : > { %v3579_v38 = vpop.f32.mrf.mxu1 }
 0x86f   : > { %v3582_v55 = vpop.f32.mrf.mxu1 }
 0x870   : > { %4425 = vmatprep.mubr.msk.f32.mxu0 %vm2007_vm1, %v3582_v55 }
 0x871   : > { %v3584_v59 = vpop.f32.mrf.mxu1 }
 0x872   : > { %v4027_v59 = vld [vmem:[%s5815_s13 + $0x20] sm:$0xff] }
 0x873   : > { %v3587_v2 = vpop.f32.mrf.mxu1 }
 0x874   : > { %4426 = vmatmul.mubr.msk.f32.gmra.mxu0 %vm2007_vm1, %v3587_v2 }
 0x875   : > { %v3589_v51 = vpop.f32.mrf.mxu1 }
 0x877   : > { %v3592_v33 = vpop.f32.mrf.mxu1 }
 0x878   : > { %4428 = vmatprep.mubr.msk.f32.mxu0 %vm2007_vm1, %v3592_v33 }
 0x879   : > { %v3594_v50 = vpop.f32.mrf.mxu1 }
 0x87b   : > { %v3597_v9 = vpop.f32.mrf.mxu1 }
 0x87c   : > { %4429 = vmatmul.mubr.msk.f32.gmra.mxu0 %vm2007_vm1, %v3597_v9  ;;  %v4030_v9 = vld [vmem:[%s5815_s13 + $0x38] sm:$0xff] }
 0x87d   : > { %v3599_v58 = vpop.f32.mrf.mxu1 }
 0x87f   : > { %v3602_v40 = vpop.f32.mrf.mxu1 }
 0x880   : > { %4431 = vmatprep.mubr.msk.f32.mxu0 %vm2007_vm1, %v3602_v40 }
 0x881   : > { %v3604_v27 = vpop.f32.mrf.mxu1 }
 0x882   : > { %v4029_v27 = vld [vmem:[%s5815_s13 + $0x30] sm:$0xff] }
 0x883   : > { %v3607_v39 = vpop.f32.mrf.mxu1 }
 0x884   : > { %4432 = vmatmul.mubr.msk.f32.gmra.mxu0 %vm2007_vm1, %v3607_v39 }
 0x885   : > { %v3609_v25 = vpop.f32.mrf.mxu1 }
 0x887   : > { %v3612_v14 = vpop.f32.mrf.mxu1 }
 0x888   : > { %4434 = vmatprep.mubr.msk.f32.mxu0 %vm2007_vm1, %v3612_v14 }
 0x889   : > { %v3614_v63 = vpop.f32.mrf.mxu1 }
 0x88b   : > { %v3617_v54 = vpop.f32.mrf.mxu1 }
 0x88c   : > { %4435 = vmatmul.mubr.msk.f32.gmra.mxu0 %vm2007_vm1, %v3617_v54  ;;  %v4032_v54 = vld [vmem:[%s5815_s13 + $0x48] sm:$0xff] }
 0x88d   : > { %v3619_v0 = vpop.f32.mrf.mxu1 }
 0x88f   : > { %v3622_v15 = vpop.f32.mrf.mxu1 }
 0x890   : > { %4437 = vmatprep.mubr.msk.f32.mxu0 %vm2007_vm1, %v3622_v15 }
 0x891   : > { %v3624_v26 = vpop.f32.mrf.mxu1 }
 0x892   : > { %v4031_v26 = vld [vmem:[%s5815_s13 + $0x40] sm:$0xff] }
 0x893   : > { %v3627_v17 = vpop.f32.mrf.mxu1 }
 0x894   : > { %4438 = vmatmul.mubr.msk.f32.gmra.mxu0 %vm2007_vm1, %v3627_v17 }
 0x895   : > { %v3629_v20 = vpop.f32.mrf.mxu1 }
 0x897   : > { %v3632_v6 = vpop.f32.mrf.mxu1 }
 0x898   : > { %4440 = vmatprep.mubr.msk.f32.mxu0 %vm2007_vm1, %v3632_v6 }
 0x899   : > { %v3634_v30 = vpop.f32.mrf.mxu1 }
 0x89b   : > { %v3637_v32 = vpop.f32.mrf.mxu1 }
 0x89c   : > { %4441 = vmatmul.mubr.msk.f32.gmra.mxu0 %vm2007_vm1, %v3637_v32  ;;  %v4034_v32 = vld [vmem:[%s5815_s13 + $0x58] sm:$0xff] }
 0x89d   : > { %v3639_v43 = vpop.f32.mrf.mxu1 }
 0x89f   : > { %v3642_v13 = vpop.f32.mrf.mxu1 }
 0x8a0   : > { %4443 = vmatprep.mubr.msk.f32.mxu0 %vm2007_vm1, %v3642_v13 }
 0x8a1   : > { %v3644_v36 = vpop.f32.mrf.mxu1 }
 0x8a2   : > { %v4033_v36 = vld [vmem:[%s5815_s13 + $0x50] sm:$0xff] }
 0x8a3   : > { %v3647_v44 = vpop.f32.mrf.mxu1 }
 0x8a4   : > { %4444 = vmatmul.mubr.msk.f32.gmra.mxu0 %vm2007_vm1, %v3647_v44 }
 0x8a5   : > { %v3649_v62 = vpop.f32.mrf.mxu1 }
 0x8a7   : > { %v3652_v42 = vpop.f32.mrf.mxu1 }
 0x8a8   : > { %4446 = vmatprep.mubr.msk.f32.mxu0 %vm2007_vm1, %v3652_v42 }
 0x8a9   : > { %v3654_v47 = vpop.f32.mrf.mxu1 }
 0x8ab   : > { %v3657_v35 = vpop.f32.mrf.mxu1 }
 0x8ac   : > { %4447 = vmatmul.mubr.msk.f32.gmra.mxu0 %vm2007_vm1, %v3657_v35  ;;  %v4036_v35 = vld [vmem:[%s5815_s13 + $0x68] sm:$0xff] }
 0x8ad   : > { %v3659_v19 = vpop.f32.mrf.mxu1 }
 0x8af   : > { %v3662_v7 = vpop.f32.mrf.mxu1 }
 0x8b0   : > { %4449 = vmatprep.mubr.msk.f32.mxu0 %vm2007_vm1, %v3662_v7 }
 0x8b1   : > { %v3664_v49 = vpop.f32.mrf.mxu1 }
 0x8b2   : > { %v4035_v49 = vld [vmem:[%s5815_s13 + $0x60] sm:$0xff] }
 0x8b3   : > { %v3667_v21 = vpop.f32.mrf.mxu1 }
 0x8b4   : > { %4450 = vmatmul.mubr.msk.f32.gmra.mxu0 %vm2007_vm1, %v3667_v21 }
 0x8b5   : > { %v3669_v37 = vpop.f32.mrf.mxu1 }
 0x8b7   : > { %v3672_v11 = vpop.f32.mrf.mxu1 }
 0x8b8   : > { %4452 = vmatprep.mubr.msk.f32.mxu0 %vm2007_vm1, %v3672_v11 }
 0x8b9   : > { %v3674_v23 = vpop.f32.mrf.mxu1 }
 0x8bb   : > { %v3677_v48 = vpop.f32.mrf.mxu1 }
 0x8bc   : > { %4453 = vmatmul.mubr.msk.f32.gmra.mxu0 %vm2007_vm1, %v3677_v48  ;;  %v4038_v48 = vld [vmem:[%s5815_s13 + $0x78] sm:$0xff] }
 0x8bd   : > { %v3679_v56 = vpop.f32.mrf.mxu1 }
 0x8bf   : > { %v3682_v45 = vpop.f32.mrf.mxu1 }
 0x8c0   : > { %4455 = vmatprep.mubr.msk.f32.mxu0 %vm2007_vm1, %v3682_v45 }
 0x8c1   : > { %v3684_v24 = vpop.f32.mrf.mxu1 }
 0x8c2   : > { %v4037_v24 = vld [vmem:[%s5815_s13 + $0x70] sm:$0xff] }
 0x904   : > { %v3687_v3 = vpop.f32.mrf.mxu1 }
 0x905   : > { %4456 = vmatmul.mubr.msk.f32.gmra.mxu0 %vm2007_vm1, %v3687_v3 }
 0x906   : > { %v3689_v61 = vpop.f32.mrf.mxu1 }
 0x90a   : > { %v4412_v16 = vpop.f32.mrf.mxu0 }
 0x90b   : > { %v3870_v4 = vadd.f32 %v4412_v16, %v5817_v60 }
 0x90c   : > { %v3864_v53 = vpop.f32.mrf.mxu0 }
 0x90d   : > { %v4056_v52 = vadd.f32 %v4024_v8, %v3870_v4  ;;  %v3865_v29 = vadd.f32 %v5817_v60, %v3864_v53  ;;  %v4040_v4 = vld [vmem:[%s5815_s13 + $0x88] sm:$0xff] }
 0x90f   : > { %4088 = vst.msk [vmem:[%s5824_s15 + $0x8] sm:$0xff] %vm2007_vm1, %v4056_v52  ;;  %v4055_v28 = vadd.f32 %v4023_v5, %v3865_v29  ;;  %v4039_v52 = vld [vmem:[%s5815_s13 + $0x80] sm:$0xff] }
 0x911   : > { %4087 = vst.msk [vmem:[%s5824_s15] sm:$0xff] %vm2007_vm1, %v4055_v28 }
 0x912   : > { %v4415_v1 = vpop.f32.mrf.mxu0 }
 0x913   : > { %v3880_v31 = vadd.f32 %v4415_v1, %v5817_v60 }
 0x914   : > { %v3874_v34 = vpop.f32.mrf.mxu0 }
 0x915   : > { %v4058_v57 = vadd.f32 %v4026_v10, %v3880_v31  ;;  %v3875_v41 = vadd.f32 %v5817_v60, %v3874_v34  ;;  %v4042_v31 = vld [vmem:[%s5815_s13 + $0x98] sm:$0xff] }
 0x917   : > { %4090 = vst.msk [vmem:[%s5824_s15 + $0x18] sm:$0xff] %vm2007_vm1, %v4058_v57  ;;  %v4057_v46 = vadd.f32 %v4025_v22, %v3875_v41  ;;  %v4041_v57 = vld [vmem:[%s5815_s13 + $0x90] sm:$0xff] }
 0x919   : > { %4089 = vst.msk [vmem:[%s5824_s15 + $0x10] sm:$0xff] %vm2007_vm1, %v4057_v46 }
 0x91a   : > { %v4418_v12 = vpop.f32.mrf.mxu0 }
 0x91b   : > { %v3890_v38 = vadd.f32 %v4418_v12, %v5817_v60 }
 0x91c   : > { %v3884_v55 = vpop.f32.mrf.mxu0 }
 0x91d   : > { %v4060_v2 = vadd.f32 %v4028_v18, %v3890_v38  ;;  %v3885_v51 = vadd.f32 %v5817_v60, %v3884_v55  ;;  %v4044_v38 = vld [vmem:[%s5815_s13 + $0xa8] sm:$0xff] }
 0x91f   : > { %4092 = vst.msk [vmem:[%s5824_s15 + $0x28] sm:$0xff] %vm2007_vm1, %v4060_v2  ;;  %v4059_v33 = vadd.f32 %v4027_v59, %v3885_v51  ;;  %v4043_v2 = vld [vmem:[%s5815_s13 + $0xa0] sm:$0xff] }
 0x921   : > { %4091 = vst.msk [vmem:[%s5824_s15 + $0x20] sm:$0xff] %vm2007_vm1, %v4059_v33 }
 0x922   : > { %v4421_v50 = vpop.f32.mrf.mxu0 }
 0x923   : > { %v3900_v58 = vadd.f32 %v4421_v50, %v5817_v60 }
 0x924   : > { %v3894_v40 = vpop.f32.mrf.mxu0 }
 0x925   : > { %v4062_v39 = vadd.f32 %v4030_v9, %v3900_v58  ;;  %v3895_v25 = vadd.f32 %v5817_v60, %v3894_v40  ;;  %v4046_v58 = vld [vmem:[%s5815_s13 + $0xb8] sm:$0xff] }
 0x927   : > { %4094 = vst.msk [vmem:[%s5824_s15 + $0x38] sm:$0xff] %vm2007_vm1, %v4062_v39  ;;  %v4061_v14 = vadd.f32 %v4029_v27, %v3895_v25  ;;  %v4045_v39 = vld [vmem:[%s5815_s13 + $0xb0] sm:$0xff] }
 0x929   : > { %4093 = vst.msk [vmem:[%s5824_s15 + $0x30] sm:$0xff] %vm2007_vm1, %v4061_v14 }
 0x92c   : > { %v4424_v63 = vpop.f32.mrf.mxu0 }
 0x92d   : > { %v3910_v0 = vadd.f32 %v4424_v63, %v5817_v60 }
 0x92e   : > { %v3904_v15 = vpop.f32.mrf.mxu0 }
 0x92f   : > { %v4064_v17 = vadd.f32 %v4032_v54, %v3910_v0  ;;  %v3905_v20 = vadd.f32 %v5817_v60, %v3904_v15  ;;  %v4048_v0 = vld [vmem:[%s5815_s13 + $0xc8] sm:$0xff] }
 0x931   : > { %4096 = vst.msk [vmem:[%s5824_s15 + $0x48] sm:$0xff] %vm2007_vm1, %v4064_v17  ;;  %v4063_v6 = vadd.f32 %v4031_v26, %v3905_v20  ;;  %v4047_v17 = vld [vmem:[%s5815_s13 + $0xc0] sm:$0xff] }
 0x933   : > { %4095 = vst.msk [vmem:[%s5824_s15 + $0x40] sm:$0xff] %vm2007_vm1, %v4063_v6 }
 0x934   : > { %v4427_v30 = vpop.f32.mrf.mxu0 }
 0x935   : > { %v3920_v43 = vadd.f32 %v4427_v30, %v5817_v60 }
 0x936   : > { %v3914_v13 = vpop.f32.mrf.mxu0 }
 0x937   : > { %v4066_v44 = vadd.f32 %v4034_v32, %v3920_v43  ;;  %v3915_v62 = vadd.f32 %v5817_v60, %v3914_v13  ;;  %v4050_v43 = vld [vmem:[%s5815_s13 + $0xd8] sm:$0xff] }
 0x939   : > { %4098 = vst.msk [vmem:[%s5824_s15 + $0x58] sm:$0xff] %vm2007_vm1, %v4066_v44  ;;  %v4065_v42 = vadd.f32 %v4033_v36, %v3915_v62  ;;  %v4049_v44 = vld [vmem:[%s5815_s13 + $0xd0] sm:$0xff] }
 0x93b   : > { %4097 = vst.msk [vmem:[%s5824_s15 + $0x50] sm:$0xff] %vm2007_vm1, %v4065_v42 }
 0x93c   : > { %v4430_v47 = vpop.f32.mrf.mxu0 }
 0x93d   : > { %v3930_v19 = vadd.f32 %v4430_v47, %v5817_v60 }
 0x93e   : > { %v3924_v7 = vpop.f32.mrf.mxu0 }
 0x93f   : > { %v4068_v21 = vadd.f32 %v4036_v35, %v3930_v19  ;;  %v3925_v37 = vadd.f32 %v5817_v60, %v3924_v7  ;;  %v4052_v19 = vld [vmem:[%s5815_s13 + $0xe8] sm:$0xff] }
 0x941   : > { %4100 = vst.msk [vmem:[%s5824_s15 + $0x68] sm:$0xff] %vm2007_vm1, %v4068_v21  ;;  %v4067_v11 = vadd.f32 %v4035_v49, %v3925_v37  ;;  %v4051_v21 = vld [vmem:[%s5815_s13 + $0xe0] sm:$0xff] }
 0x943   : > { %4099 = vst.msk [vmem:[%s5824_s15 + $0x60] sm:$0xff] %vm2007_vm1, %v4067_v11 }
 0x944   : > { %v4433_v23 = vpop.f32.mrf.mxu0 }
 0x945   : > { %v3940_v56 = vadd.f32 %v4433_v23, %v5817_v60 }
 0x946   : > { %v3934_v45 = vpop.f32.mrf.mxu0 }
 0x947   : > { %v4070_v3 = vadd.f32 %v4038_v48, %v3940_v56  ;;  %v3935_v61 = vadd.f32 %v5817_v60, %v3934_v45  ;;  %v4054_v56 = vld [vmem:[%s5815_s13 + $0xf8] sm:$0xff] }
 0x949   : > { %4102 = vst.msk [vmem:[%s5824_s15 + $0x78] sm:$0xff] %vm2007_vm1, %v4070_v3  ;;  %v4069_v16 = vadd.f32 %v4037_v24, %v3935_v61  ;;  %v4053_v3 = vld [vmem:[%s5815_s13 + $0xf0] sm:$0xff] }
 0x94b   : > { %4101 = vst.msk [vmem:[%s5824_s15 + $0x70] sm:$0xff] %vm2007_vm1, %v4069_v16 }
 0x94c   : > { %v4436_v8 = vpop.f32.mrf.mxu0 }
 0x94d   : > { %v3950_v53 = vadd.f32 %v4436_v8, %v5817_v60 }
 0x94e   : > { %v3944_v5 = vpop.f32.mrf.mxu0 }
 0x94f   : > { %v4072_v29 = vadd.f32 %v4040_v4, %v3950_v53  ;;  %v3945_v28 = vadd.f32 %v5817_v60, %v3944_v5 }
 0x951   : > { %4104 = vst.msk [vmem:[%s5824_s15 + $0x88] sm:$0xff] %vm2007_vm1, %v4072_v29  ;;  %v4071_v1 = vadd.f32 %v4039_v52, %v3945_v28 }
 0x953   : > { %4103 = vst.msk [vmem:[%s5824_s15 + $0x80] sm:$0xff] %vm2007_vm1, %v4071_v1 }
 0x954   : > { %v4439_v10 = vpop.f32.mrf.mxu0 }
 0x955   : > { %v3960_v34 = vadd.f32 %v4439_v10, %v5817_v60 }
 0x956   : > { %v3954_v22 = vpop.f32.mrf.mxu0 }
 0x957   : > { %v4074_v41 = vadd.f32 %v4042_v31, %v3960_v34  ;;  %v3955_v46 = vadd.f32 %v5817_v60, %v3954_v22 }
 0x959   : > { %4106 = vst.msk [vmem:[%s5824_s15 + $0x98] sm:$0xff] %vm2007_vm1, %v4074_v41  ;;  %v4073_v12 = vadd.f32 %v4041_v57, %v3955_v46 }
 0x95b   : > { %4105 = vst.msk [vmem:[%s5824_s15 + $0x90] sm:$0xff] %vm2007_vm1, %v4073_v12 }
 0x95c   : > { %v4442_v18 = vpop.f32.mrf.mxu0 }
 0x95d   : > { %v3970_v55 = vadd.f32 %v4442_v18, %v5817_v60 }
 0x95e   : > { %v3964_v59 = vpop.f32.mrf.mxu0 }
 0x95f   : > { %v4076_v51 = vadd.f32 %v4044_v38, %v3970_v55  ;;  %v3965_v33 = vadd.f32 %v5817_v60, %v3964_v59 }
 0x961   : > { %4108 = vst.msk [vmem:[%s5824_s15 + $0xa8] sm:$0xff] %vm2007_vm1, %v4076_v51  ;;  %v4075_v50 = vadd.f32 %v4043_v2, %v3965_v33 }
 0x963   : > { %4107 = vst.msk [vmem:[%s5824_s15 + $0xa0] sm:$0xff] %vm2007_vm1, %v4075_v50 }
 0x964   : > { %v4445_v9 = vpop.f32.mrf.mxu0 }
 0x965   : > { %v3980_v40 = vadd.f32 %v4445_v9, %v5817_v60 }
 0x966   : > { %v3974_v27 = vpop.f32.mrf.mxu0 }
 0x967   : > { %v4078_v25 = vadd.f32 %v4046_v58, %v3980_v40  ;;  %v3975_v14 = vadd.f32 %v5817_v60, %v3974_v27 }
 0x969   : > { %4110 = vst.msk [vmem:[%s5824_s15 + $0xb8] sm:$0xff] %vm2007_vm1, %v4078_v25  ;;  %v4077_v63 = vadd.f32 %v4045_v39, %v3975_v14 }
 0x96b   : > { %4109 = vst.msk [vmem:[%s5824_s15 + $0xb0] sm:$0xff] %vm2007_vm1, %v4077_v63 }
 0x96c   : > { %v4448_v54 = vpop.f32.mrf.mxu0 }
 0x96d   : > { %v3990_v15 = vadd.f32 %v4448_v54, %v5817_v60 }
 0x96e   : > { %v3984_v26 = vpop.f32.mrf.mxu0 }
 0x96f   : > { %v4080_v20 = vadd.f32 %v4048_v0, %v3990_v15  ;;  %v3985_v6 = vadd.f32 %v5817_v60, %v3984_v26 }
 0x971   : > { %4112 = vst.msk [vmem:[%s5824_s15 + $0xc8] sm:$0xff] %vm2007_vm1, %v4080_v20  ;;  %v4079_v30 = vadd.f32 %v4047_v17, %v3985_v6 }
 0x973   : > { %4111 = vst.msk [vmem:[%s5824_s15 + $0xc0] sm:$0xff] %vm2007_vm1, %v4079_v30 }
 0x974   : > { %v4451_v32 = vpop.f32.mrf.mxu0 }
 0x975   : > { %v4000_v13 = vadd.f32 %v4451_v32, %v5817_v60 }
 0x976   : > { %v3994_v36 = vpop.f32.mrf.mxu0 }
 0x977   : > { %v4082_v62 = vadd.f32 %v4050_v43, %v4000_v13  ;;  %v3995_v42 = vadd.f32 %v5817_v60, %v3994_v36 }
 0x979   : > { %4114 = vst.msk [vmem:[%s5824_s15 + $0xd8] sm:$0xff] %vm2007_vm1, %v4082_v62  ;;  %v4081_v47 = vadd.f32 %v4049_v44, %v3995_v42 }
 0x97b   : > { %4113 = vst.msk [vmem:[%s5824_s15 + $0xd0] sm:$0xff] %vm2007_vm1, %v4081_v47 }
 0x97c   : > { %v4454_v35 = vpop.f32.mrf.mxu0 }
 0x97d   : > { %v4010_v7 = vadd.f32 %v4454_v35, %v5817_v60 }
 0x97e   : > { %v4004_v49 = vpop.f32.mrf.mxu0 }
 0x97f   : > { %v4084_v37 = vadd.f32 %v4052_v19, %v4010_v7  ;;  %v4005_v11 = vadd.f32 %v5817_v60, %v4004_v49 }
 0x981   : > { %4116 = vst.msk [vmem:[%s5824_s15 + $0xe8] sm:$0xff] %vm2007_vm1, %v4084_v37  ;;  %v4083_v23 = vadd.f32 %v4051_v21, %v4005_v11 }
 0x983   : > { %4115 = vst.msk [vmem:[%s5824_s15 + $0xe0] sm:$0xff] %vm2007_vm1, %v4083_v23 }
 0x9c5   : > { %v4457_v48 = vpop.f32.mrf.mxu0 }
 0x9c6   : > { %v4020_v45 = vadd.f32 %v4457_v48, %v5817_v60 }
 0x9c7   : > { %v4014_v24 = vpop.f32.mrf.mxu0 }
 0x9c8   : > { %v4086_v61 = vadd.f32 %v4054_v56, %v4020_v45  ;;  %v4015_v16 = vadd.f32 %v5817_v60, %v4014_v24 }
 0x9ca   : > { %4118 = vst.msk [vmem:[%s5824_s15 + $0xf8] sm:$0xff] %vm2007_vm1, %v4086_v61  ;;  %v4085_v8 = vadd.f32 %v4053_v3, %v4015_v16 }
 0x9cc   : > { %4117 = vst.msk [vmem:[%s5824_s15 + $0xf0] sm:$0xff] %vm2007_vm1, %v4085_v8 }
 0x9cd PF: > { %s23_s17 = sadd.s32 1, %s4815_s17  }
 0x9ce   : > { %p20_p3 = scmp.ge.s32.totalorder %s23_s17, 4  }
 0x9d0   :  { %22 = sbr.rel (!%p20_p3) target bundleno = 2 (0x2), region = 110 }
 0x9d5   :  { %4140 = vsyncpa [#allocation4], 1 }
 0x9d6   :  { %4142 = vsyncpa [#allocation4 + $0x1], 1 }
 0x9d7   :  { %4143 = vsyncpa [#allocation6], 1 }

</bundles_post_ra>
